<compile_context>
chip_gen: v6e
topology: v6e:2x2x1
jax: 0.10.0
libtpu: 0.0.40
codegen_flags: <defaults>
</compile_context>

<pallas_src>
import numpy as np
import jax
import jax.numpy as jnp
from jax.experimental import pallas as pl
from jax.experimental.pallas import tpu as pltpu

LEAKY_SLOPE = 0.01  # torch.nn.LeakyReLU default
KSIZE = 3


def _conv_lane_weights(w, W):
    """PyTorch (Cout, Cin, 3, 3) conv weight -> (9*(2C-1), W*C) lane-weight table.

    Row t = (dy*3+dx)*(2C-1) + d holds, at lane l = w*C + co, the scalar
    w[co, co+delta, dy, dx] with delta = d-(C-1) (zero where co+delta is out of
    range).  The kernel pairs row t with a lane-shifted slice of the padded
    activation, turning the conv into 9*(2C-1) whole-tile VPU FMAs.
    """
    C = w.shape[0]
    wp = jnp.transpose(w, (2, 3, 1, 0))                      # (3, 3, Cin, Cout)
    delta = jnp.arange(-(C - 1), C)                          # (2C-1,)
    co = jnp.arange(C)                                       # (C,)
    ci = co[None, :] + delta[:, None]                        # (2C-1, C)
    valid = (ci >= 0) & (ci < C)
    ci_c = jnp.clip(ci, 0, C - 1)
    co_b = jnp.broadcast_to(co[None, :], ci.shape)
    val = wp[:, :, ci_c, co_b]                               # (3, 3, 2C-1, C)
    val = jnp.where(valid[None, None], val, 0.0)
    val = jnp.broadcast_to(val[:, :, :, None, :],
                           (KSIZE, KSIZE, 2 * C - 1, W, C))
    return val.reshape(KSIZE * KSIZE * (2 * C - 1), W * C)


def resblock_forward(x_nchw, w1, b1, w2, b2):
    """x_nchw: (N, C, H, W) float32.  Weights in PyTorch layout (Cout, Cin, 3, 3)."""
    N, C, H, W = x_nchw.shape
    WC = W * C                       # lane width of the working layout
    ND = 2 * C - 1                   # number of channel-offset "diagonals"
    PADW = (W + 4) * C               # scratch lane width (1 guard col each side)

    # Layout glue at the module boundary: NCHW -> (N, H, W*C), lane = W*C.
    x = jnp.transpose(x_nchw, (0, 2, 3, 1)).reshape(N, H, WC)

    wv1 = _conv_lane_weights(w1, W)
    wv2 = _conv_lane_weights(w2, W)
    bv1 = jnp.tile(b1, W).reshape(1, WC)     # lane l gets b[l % C]
    bv2 = jnp.tile(b2, W).reshape(1, WC)

    def kernel(x_ref, wv1_ref, bv1_ref, wv2_ref, bv2_ref, o_ref, xp_ref):
        # xp_ref lane layout: storage col s in [0, W+4); s=0 and s=W+3 are
        # zeroed guard columns (only ever multiplied by zero weights); cols
        # 1..W+2 hold the ReflectionPad2d(1)-padded row (padded col = s-1).
        zeros_col = jnp.zeros((H + 2, C), jnp.float32)
        xp_ref[:, 0:C] = zeros_col
        xp_ref[:, (W + 3) * C:(W + 4) * C] = zeros_col

        def reflect_pad(v):
            # v: (H, W*C) activation -> reflection-padded copy in xp_ref.
            xp_ref[1:H + 1, 2 * C:(W + 2) * C] = v                             # interior
            xp_ref[1:H + 1, C:2 * C] = v[:, C:2 * C]                           # left  <- col 1
            xp_ref[1:H + 1, (W + 2) * C:(W + 3) * C] = v[:, (W - 2) * C:(W - 1) * C]  # right <- col W-2
            xp_ref[0:1, :] = xp_ref[2:3, :]                                    # top    <- row 1 (covers corners)
            xp_ref[H + 1:H + 2, :] = xp_ref[H - 1:H, :]                        # bottom <- row H-2

        def conv(wv_ref, bv_ref):
            # 3x3 conv as 9*(2C-1) lane-shifted VPU FMAs (no im2col, no MXU).
            acc = jnp.zeros((H, WC), jnp.float32) + bv_ref[...]
            for dy in range(KSIZE):
                for dx in range(KSIZE):
                    for d in range(ND):
                        start = dx * C + d + 1          # lane offset into xp_ref
                        t = (dy * KSIZE + dx) * ND + d  # weight-table row
                        acc = acc + (xp_ref[dy:dy + H, start:start + WC]
                                     * wv_ref[t:t + 1, :])
            # TODO(synk): the lane-offset slices could use pltpu.roll (XLU) if
            # the relayout copies ever dominate; negligible at this size.
            return acc

        # --- conv1 + bias + LeakyReLU (Dropout = identity in eval mode) -----
        reflect_pad(x_ref[0])
        h = conv(wv1_ref, bv1_ref)
        h = jnp.where(h >= 0, h, LEAKY_SLOPE * h)

        # --- conv2 + bias + residual add (x re-read -> short live ranges) ---
        reflect_pad(h)
        y = conv(wv2_ref, bv2_ref) + x_ref[0]
        o_ref[0] = y.astype(o_ref.dtype)

    itemsize = 4
    flops = 2 * (2 * N * H * W * KSIZE * KSIZE * C * C)          # two convs
    bytes_accessed = (2 * N * H * WC
                      + 2 * KSIZE * KSIZE * ND * WC
                      + 2 * WC) * itemsize

    out = pl.pallas_call(
        kernel,
        out_shape=jax.ShapeDtypeStruct((N, H, WC), x.dtype),
        grid_spec=pltpu.PrefetchScalarGridSpec(
            num_scalar_prefetch=0,
            grid=(N,),
            in_specs=[
                pl.BlockSpec((1, H, WC), lambda n: (n, 0, 0)),
                pl.BlockSpec((KSIZE * KSIZE * ND, WC), lambda n: (0, 0)),
                pl.BlockSpec((1, WC), lambda n: (0, 0)),
                pl.BlockSpec((KSIZE * KSIZE * ND, WC), lambda n: (0, 0)),
                pl.BlockSpec((1, WC), lambda n: (0, 0)),
            ],
            out_specs=pl.BlockSpec((1, H, WC), lambda n: (n, 0, 0)),
            scratch_shapes=[
                pltpu.VMEM((H + 2, PADW), jnp.float32),   # padded activation only
            ],
        ),
        compiler_params=pltpu.CompilerParams(
            dimension_semantics=("parallel",),
            vmem_limit_bytes=64 * 1024 * 1024,
        ),
        cost_estimate=pl.CostEstimate(
            flops=flops, transcendentals=0, bytes_accessed=bytes_accessed),
    )(x, wv1, bv1, wv2, bv2)

    return jnp.transpose(out.reshape(N, H, W, C), (0, 3, 1, 2))  # back to NCHW


def _reference(x_nchw, w1, b1, w2, b2):
    """Pure-JAX reference using lax.conv_general_dilated (NCHW)."""
    def conv(x, w, b):
        xp = jnp.pad(x, ((0, 0), (0, 0), (1, 1), (1, 1)), mode="reflect")
        y = jax.lax.conv_general_dilated(
            xp, w, window_strides=(1, 1), padding="VALID",
            dimension_numbers=("NCHW", "OIHW", "NCHW"))
        return y + b[None, :, None, None]

    h = conv(x_nchw, w1, b1)
    h = jnp.where(h >= 0, h, LEAKY_SLOPE * h)
    t = conv(h, w2, b2)
    return t + x_nchw


if __name__ == "__main__":
    key = jax.random.PRNGKey(0)
    k_x, k_w1, k_b1, k_w2, k_b2 = jax.random.split(key, 5)

    N, C, H, W = 2, 4, 16, 16
    x = jax.random.normal(k_x, (N, C, H, W), jnp.float32)

    # Deterministic parameter init (PyTorch Conv2d layout: (Cout, Cin, kh, kw))
    fan_in = C * KSIZE * KSIZE
    bound = 1.0 / np.sqrt(fan_in)
    w1 = jax.random.uniform(k_w1, (C, C, KSIZE, KSIZE), jnp.float32, -bound, bound)
    b1 = jax.random.uniform(k_b1, (C,), jnp.float32, -bound, bound)
    w2 = jax.random.uniform(k_w2, (C, C, KSIZE, KSIZE), jnp.float32, -bound, bound)
    b2 = jax.random.uniform(k_b2, (C,), jnp.float32, -bound, bound)

    out = resblock_forward(x, w1, b1, w2, b2)
    out = jax.block_until_ready(out)

    ref = jax.block_until_ready(_reference(x, w1, b1, w2, b2))
    assert out.shape == (N, C, H, W), out.shape
    np.testing.assert_allclose(np.asarray(out), np.asarray(ref),
                               rtol=1e-4, atol=1e-4)
    print("KERNEL_OK")
</pallas_src>

<mosaic_0001>
module attributes {stable_mosaic.version = 11 : i64} {
  func.func @kernel(%arg0: i32, %arg1: memref<1x16x64xf32, #tpu.memory_space<vmem>>, %arg2: memref<63x64xf32, #tpu.memory_space<vmem>>, %arg3: memref<1x64xf32, #tpu.memory_space<vmem>>, %arg4: memref<63x64xf32, #tpu.memory_space<vmem>>, %arg5: memref<1x64xf32, #tpu.memory_space<vmem>>, %arg6: memref<1x16x64xf32, #tpu.memory_space<vmem>>, %arg7: memref<18x80xf32, #tpu.memory_space<vmem>>) attributes {dimension_semantics = [#tpu.dimension_semantics<parallel>], iteration_bounds = array<i64: 2>, scalar_prefetch = 0 : i64, scratch_operands = 1 : i64, tpu.core_type = #tpu.core_type<tc>, window_params = [{transform_indices = @transform_0, window_bounds = array<i64: 1, 16, 64>}, {pipeline_mode = #tpu.pipeline_mode<synchronous>, transform_indices = @transform_1, window_bounds = array<i64: 63, 64>}, {pipeline_mode = #tpu.pipeline_mode<synchronous>, transform_indices = @transform_2, window_bounds = array<i64: 1, 64>}, {pipeline_mode = #tpu.pipeline_mode<synchronous>, transform_indices = @transform_3, window_bounds = array<i64: 63, 64>}, {pipeline_mode = #tpu.pipeline_mode<synchronous>, transform_indices = @transform_4, window_bounds = array<i64: 1, 64>}, {transform_indices = @transform_5, window_bounds = array<i64: 1, 16, 64>}]} {
    %cst = arith.constant 0.000000e+00 : f32
    %0 = vector.broadcast %cst : f32 to vector<18x4xf32>
    %c0 = arith.constant 0 : index
    %c0_0 = arith.constant 0 : index
    %1 = vector.load %arg7[%c0, %c0_0] : memref<18x80xf32, #tpu.memory_space<vmem>>, vector<18x4xf32>
    tpu.vector_store %arg7[%c0, %c0_0], %0 {strides = array<i32>} : memref<18x80xf32, #tpu.memory_space<vmem>>, vector<18x4xf32>,
    %c0_1 = arith.constant 0 : index
    %c76 = arith.constant 76 : index
    %2 = vector.load %arg7[%c0_1, %c76] : memref<18x80xf32, #tpu.memory_space<vmem>>, vector<18x4xf32>
    tpu.vector_store %arg7[%c0_1, %c76], %0 {strides = array<i32>} : memref<18x80xf32, #tpu.memory_space<vmem>>, vector<18x4xf32>,
    %c0_2 = arith.constant 0 : index
    %c0_3 = arith.constant 0 : index
    %c0_4 = arith.constant 0 : index
    %3 = vector.load %arg1[%c0_2, %c0_3, %c0_4] : memref<1x16x64xf32, #tpu.memory_space<vmem>>, vector<1x16x64xf32>
    %4 = vector.shape_cast %3 : vector<1x16x64xf32> to vector<16x64xf32>
    %c1 = arith.constant 1 : index
    %c8 = arith.constant 8 : index
    %5 = vector.load %arg7[%c1, %c8] : memref<18x80xf32, #tpu.memory_space<vmem>>, vector<16x64xf32>
    tpu.vector_store %arg7[%c1, %c8], %4 {strides = array<i32>} : memref<18x80xf32, #tpu.memory_space<vmem>>, vector<16x64xf32>,
    %6 = vector.extract_strided_slice %4 {offsets = [0, 4], sizes = [16, 4], strides = [1, 1]} : vector<16x64xf32> to vector<16x4xf32>
    %c1_5 = arith.constant 1 : index
    %c4 = arith.constant 4 : index
    %7 = vector.load %arg7[%c1_5, %c4] : memref<18x80xf32, #tpu.memory_space<vmem>>, vector<16x4xf32>
    tpu.vector_store %arg7[%c1_5, %c4], %6 {strides = array<i32>} : memref<18x80xf32, #tpu.memory_space<vmem>>, vector<16x4xf32>,
    %8 = vector.extract_strided_slice %4 {offsets = [0, 56], sizes = [16, 4], strides = [1, 1]} : vector<16x64xf32> to vector<16x4xf32>
    %c1_6 = arith.constant 1 : index
    %c72 = arith.constant 72 : index
    %9 = vector.load %arg7[%c1_6, %c72] : memref<18x80xf32, #tpu.memory_space<vmem>>, vector<16x4xf32>
    tpu.vector_store %arg7[%c1_6, %c72], %8 {strides = array<i32>} : memref<18x80xf32, #tpu.memory_space<vmem>>, vector<16x4xf32>,
    %c2 = arith.constant 2 : index
    %c0_7 = arith.constant 0 : index
    %10 = vector.load %arg7[%c2, %c0_7] : memref<18x80xf32, #tpu.memory_space<vmem>>, vector<1x80xf32>
    %c0_8 = arith.constant 0 : index
    %c0_9 = arith.constant 0 : index
    %11 = vector.load %arg7[%c0_8, %c0_9] : memref<18x80xf32, #tpu.memory_space<vmem>>, vector<1x80xf32>
    tpu.vector_store %arg7[%c0_8, %c0_9], %10 {strides = array<i32>} : memref<18x80xf32, #tpu.memory_space<vmem>>, vector<1x80xf32>,
    %c15 = arith.constant 15 : index
    %c0_10 = arith.constant 0 : index
    %12 = vector.load %arg7[%c15, %c0_10] : memref<18x80xf32, #tpu.memory_space<vmem>>, vector<1x80xf32>
    %c17 = arith.constant 17 : index
    %c0_11 = arith.constant 0 : index
    %13 = vector.load %arg7[%c17, %c0_11] : memref<18x80xf32, #tpu.memory_space<vmem>>, vector<1x80xf32>
    tpu.vector_store %arg7[%c17, %c0_11], %12 {strides = array<i32>} : memref<18x80xf32, #tpu.memory_space<vmem>>, vector<1x80xf32>,
    %cst_12 = arith.constant 0.000000e+00 : f32
    %14 = vector.broadcast %cst_12 : f32 to vector<16x64xf32>
    %c0_13 = arith.constant 0 : index
    %c0_14 = arith.constant 0 : index
    %15 = vector.load %arg3[%c0_13, %c0_14] : memref<1x64xf32, #tpu.memory_space<vmem>>, vector<1x64xf32>
    %16 = vector.broadcast %15 : vector<1x64xf32> to vector<16x64xf32>
    %17 = arith.addf %14, %16 : vector<16x64xf32>
    %c0_15 = arith.constant 0 : index
    %c1_16 = arith.constant 1 : index
    %18 = vector.load %arg7[%c0_15, %c1_16] : memref<18x80xf32, #tpu.memory_space<vmem>>, vector<16x64xf32>
    %c0_17 = arith.constant 0 : index
    %c0_18 = arith.constant 0 : index
    %19 = vector.load %arg2[%c0_17, %c0_18] : memref<63x64xf32, #tpu.memory_space<vmem>>, vector<1x64xf32>
    %20 = vector.broadcast %19 : vector<1x64xf32> to vector<16x64xf32>
    %21 = arith.mulf %18, %20 : vector<16x64xf32>
    %22 = arith.addf %17, %21 : vector<16x64xf32>
    %c0_19 = arith.constant 0 : index
    %c2_20 = arith.constant 2 : index
    %23 = vector.load %arg7[%c0_19, %c2_20] : memref<18x80xf32, #tpu.memory_space<vmem>>, vector<16x64xf32>
    %c1_21 = arith.constant 1 : index
    %c0_22 = arith.constant 0 : index
    %24 = vector.load %arg2[%c1_21, %c0_22] : memref<63x64xf32, #tpu.memory_space<vmem>>, vector<1x64xf32>
    %25 = vector.broadcast %24 : vector<1x64xf32> to vector<16x64xf32>
    %26 = arith.mulf %23, %25 : vector<16x64xf32>
    %27 = arith.addf %22, %26 : vector<16x64xf32>
    %c0_23 = arith.constant 0 : index
    %c3 = arith.constant 3 : index
    %28 = vector.load %arg7[%c0_23, %c3] : memref<18x80xf32, #tpu.memory_space<vmem>>, vector<16x64xf32>
    %c2_24 = arith.constant 2 : index
    %c0_25 = arith.constant 0 : index
    %29 = vector.load %arg2[%c2_24, %c0_25] : memref<63x64xf32, #tpu.memory_space<vmem>>, vector<1x64xf32>
    %30 = vector.broadcast %29 : vector<1x64xf32> to vector<16x64xf32>
    %31 = arith.mulf %28, %30 : vector<16x64xf32>
    %32 = arith.addf %27, %31 : vector<16x64xf32>
    %c0_26 = arith.constant 0 : index
    %c4_27 = arith.constant 4 : index
    %33 = vector.load %arg7[%c0_26, %c4_27] : memref<18x80xf32, #tpu.memory_space<vmem>>, vector<16x64xf32>
    %c3_28 = arith.constant 3 : index
    %c0_29 = arith.constant 0 : index
    %34 = vector.load %arg2[%c3_28, %c0_29] : memref<63x64xf32, #tpu.memory_space<vmem>>, vector<1x64xf32>
    %35 = vector.broadcast %34 : vector<1x64xf32> to vector<16x64xf32>
    %36 = arith.mulf %33, %35 : vector<16x64xf32>
    %37 = arith.addf %32, %36 : vector<16x64xf32>
    %c0_30 = arith.constant 0 : index
    %c5 = arith.constant 5 : index
    %38 = vector.load %arg7[%c0_30, %c5] : memref<18x80xf32, #tpu.memory_space<vmem>>, vector<16x64xf32>
    %c4_31 = arith.constant 4 : index
    %c0_32 = arith.constant 0 : index
    %39 = vector.load %arg2[%c4_31, %c0_32] : memref<63x64xf32, #tpu.memory_space<vmem>>, vector<1x64xf32>
    %40 = vector.broadcast %39 : vector<1x64xf32> to vector<16x64xf32>
    %41 = arith.mulf %38, %40 : vector<16x64xf32>
    %42 = arith.addf %37, %41 : vector<16x64xf32>
    %c0_33 = arith.constant 0 : index
    %c6 = arith.constant 6 : index
    %43 = vector.load %arg7[%c0_33, %c6] : memref<18x80xf32, #tpu.memory_space<vmem>>, vector<16x64xf32>
    %c5_34 = arith.constant 5 : index
    %c0_35 = arith.constant 0 : index
    %44 = vector.load %arg2[%c5_34, %c0_35] : memref<63x64xf32, #tpu.memory_space<vmem>>, vector<1x64xf32>
    %45 = vector.broadcast %44 : vector<1x64xf32> to vector<16x64xf32>
    %46 = arith.mulf %43, %45 : vector<16x64xf32>
    %47 = arith.addf %42, %46 : vector<16x64xf32>
    %c0_36 = arith.constant 0 : index
    %c7 = arith.constant 7 : index
    %48 = vector.load %arg7[%c0_36, %c7] : memref<18x80xf32, #tpu.memory_space<vmem>>, vector<16x64xf32>
    %c6_37 = arith.constant 6 : index
    %c0_38 = arith.constant 0 : index
    %49 = vector.load %arg2[%c6_37, %c0_38] : memref<63x64xf32, #tpu.memory_space<vmem>>, vector<1x64xf32>
    %50 = vector.broadcast %49 : vector<1x64xf32> to vector<16x64xf32>
    %51 = arith.mulf %48, %50 : vector<16x64xf32>
    %52 = arith.addf %47, %51 : vector<16x64xf32>
    %c0_39 = arith.constant 0 : index
    %c5_40 = arith.constant 5 : index
    %53 = vector.load %arg7[%c0_39, %c5_40] : memref<18x80xf32, #tpu.memory_space<vmem>>, vector<16x64xf32>
    %c7_41 = arith.constant 7 : index
    %c0_42 = arith.constant 0 : index
    %54 = vector.load %arg2[%c7_41, %c0_42] : memref<63x64xf32, #tpu.memory_space<vmem>>, vector<1x64xf32>
    %55 = vector.broadcast %54 : vector<1x64xf32> to vector<16x64xf32>
    %56 = arith.mulf %53, %55 : vector<16x64xf32>
    %57 = arith.addf %52, %56 : vector<16x64xf32>
    %c0_43 = arith.constant 0 : index
    %c6_44 = arith.constant 6 : index
    %58 = vector.load %arg7[%c0_43, %c6_44] : memref<18x80xf32, #tpu.memory_space<vmem>>, vector<16x64xf32>
    %c8_45 = arith.constant 8 : index
    %c0_46 = arith.constant 0 : index
    %59 = vector.load %arg2[%c8_45, %c0_46] : memref<63x64xf32, #tpu.memory_space<vmem>>, vector<1x64xf32>
    %60 = vector.broadcast %59 : vector<1x64xf32> to vector<16x64xf32>
    %61 = arith.mulf %58, %60 : vector<16x64xf32>
    %62 = arith.addf %57, %61 : vector<16x64xf32>
    %c0_47 = arith.constant 0 : index
    %c7_48 = arith.constant 7 : index
    %63 = vector.load %arg7[%c0_47, %c7_48] : memref<18x80xf32, #tpu.memory_space<vmem>>, vector<16x64xf32>
    %c9 = arith.constant 9 : index
    %c0_49 = arith.constant 0 : index
    %64 = vector.load %arg2[%c9, %c0_49] : memref<63x64xf32, #tpu.memory_space<vmem>>, vector<1x64xf32>
    %65 = vector.broadcast %64 : vector<1x64xf32> to vector<16x64xf32>
    %66 = arith.mulf %63, %65 : vector<16x64xf32>
    %67 = arith.addf %62, %66 : vector<16x64xf32>
    %c0_50 = arith.constant 0 : index
    %c8_51 = arith.constant 8 : index
    %68 = vector.load %arg7[%c0_50, %c8_51] : memref<18x80xf32, #tpu.memory_space<vmem>>, vector<16x64xf32>
    %c10 = arith.constant 10 : index
    %c0_52 = arith.constant 0 : index
    %69 = vector.load %arg2[%c10, %c0_52] : memref<63x64xf32, #tpu.memory_space<vmem>>, vector<1x64xf32>
    %70 = vector.broadcast %69 : vector<1x64xf32> to vector<16x64xf32>
    %71 = arith.mulf %68, %70 : vector<16x64xf32>
    %72 = arith.addf %67, %71 : vector<16x64xf32>
    %c0_53 = arith.constant 0 : index
    %c9_54 = arith.constant 9 : index
    %73 = vector.load %arg7[%c0_53, %c9_54] : memref<18x80xf32, #tpu.memory_space<vmem>>, vector<16x64xf32>
    %c11 = arith.constant 11 : index
    %c0_55 = arith.constant 0 : index
    %74 = vector.load %arg2[%c11, %c0_55] : memref<63x64xf32, #tpu.memory_space<vmem>>, vector<1x64xf32>
    %75 = vector.broadcast %74 : vector<1x64xf32> to vector<16x64xf32>
    %76 = arith.mulf %73, %75 : vector<16x64xf32>
    %77 = arith.addf %72, %76 : vector<16x64xf32>
    %c0_56 = arith.constant 0 : index
    %c10_57 = arith.constant 10 : index
    %78 = vector.load %arg7[%c0_56, %c10_57] : memref<18x80xf32, #tpu.memory_space<vmem>>, vector<16x64xf32>
    %c12 = arith.constant 12 : index
    %c0_58 = arith.constant 0 : index
    %79 = vector.load %arg2[%c12, %c0_58] : memref<63x64xf32, #tpu.memory_space<vmem>>, vector<1x64xf32>
    %80 = vector.broadcast %79 : vector<1x64xf32> to vector<16x64xf32>
    %81 = arith.mulf %78, %80 : vector<16x64xf32>
    %82 = arith.addf %77, %81 : vector<16x64xf32>
    %c0_59 = arith.constant 0 : index
    %c11_60 = arith.constant 11 : index
    %83 = vector.load %arg7[%c0_59, %c11_60] : memref<18x80xf32, #tpu.memory_space<vmem>>, vector<16x64xf32>
    %c13 = arith.constant 13 : index
    %c0_61 = arith.constant 0 : index
    %84 = vector.load %arg2[%c13, %c0_61] : memref<63x64xf32, #tpu.memory_space<vmem>>, vector<1x64xf32>
    %85 = vector.broadcast %84 : vector<1x64xf32> to vector<16x64xf32>
    %86 = arith.mulf %83, %85 : vector<16x64xf32>
    %87 = arith.addf %82, %86 : vector<16x64xf32>
    %c0_62 = arith.constant 0 : index
    %c9_63 = arith.constant 9 : index
    %88 = vector.load %arg7[%c0_62, %c9_63] : memref<18x80xf32, #tpu.memory_space<vmem>>, vector<16x64xf32>
    %c14 = arith.constant 14 : index
    %c0_64 = arith.constant 0 : index
    %89 = vector.load %arg2[%c14, %c0_64] : memref<63x64xf32, #tpu.memory_space<vmem>>, vector<1x64xf32>
    %90 = vector.broadcast %89 : vector<1x64xf32> to vector<16x64xf32>
    %91 = arith.mulf %88, %90 : vector<16x64xf32>
    %92 = arith.addf %87, %91 : vector<16x64xf32>
    %c0_65 = arith.constant 0 : index
    %c10_66 = arith.constant 10 : index
    %93 = vector.load %arg7[%c0_65, %c10_66] : memref<18x80xf32, #tpu.memory_space<vmem>>, vector<16x64xf32>
    %c15_67 = arith.constant 15 : index
    %c0_68 = arith.constant 0 : index
    %94 = vector.load %arg2[%c15_67, %c0_68] : memref<63x64xf32, #tpu.memory_space<vmem>>, vector<1x64xf32>
    %95 = vector.broadcast %94 : vector<1x64xf32> to vector<16x64xf32>
    %96 = arith.mulf %93, %95 : vector<16x64xf32>
    %97 = arith.addf %92, %96 : vector<16x64xf32>
    %c0_69 = arith.constant 0 : index
    %c11_70 = arith.constant 11 : index
    %98 = vector.load %arg7[%c0_69, %c11_70] : memref<18x80xf32, #tpu.memory_space<vmem>>, vector<16x64xf32>
    %c16 = arith.constant 16 : index
    %c0_71 = arith.constant 0 : index
    %99 = vector.load %arg2[%c16, %c0_71] : memref<63x64xf32, #tpu.memory_space<vmem>>, vector<1x64xf32>
    %100 = vector.broadcast %99 : vector<1x64xf32> to vector<16x64xf32>
    %101 = arith.mulf %98, %100 : vector<16x64xf32>
    %102 = arith.addf %97, %101 : vector<16x64xf32>
    %c0_72 = arith.constant 0 : index
    %c12_73 = arith.constant 12 : index
    %103 = vector.load %arg7[%c0_72, %c12_73] : memref<18x80xf32, #tpu.memory_space<vmem>>, vector<16x64xf32>
    %c17_74 = arith.constant 17 : index
    %c0_75 = arith.constant 0 : index
    %104 = vector.load %arg2[%c17_74, %c0_75] : memref<63x64xf32, #tpu.memory_space<vmem>>, vector<1x64xf32>
    %105 = vector.broadcast %104 : vector<1x64xf32> to vector<16x64xf32>
    %106 = arith.mulf %103, %105 : vector<16x64xf32>
    %107 = arith.addf %102, %106 : vector<16x64xf32>
    %c0_76 = arith.constant 0 : index
    %c13_77 = arith.constant 13 : index
    %108 = vector.load %arg7[%c0_76, %c13_77] : memref<18x80xf32, #tpu.memory_space<vmem>>, vector<16x64xf32>
    %c18 = arith.constant 18 : index
    %c0_78 = arith.constant 0 : index
    %109 = vector.load %arg2[%c18, %c0_78] : memref<63x64xf32, #tpu.memory_space<vmem>>, vector<1x64xf32>
    %110 = vector.broadcast %109 : vector<1x64xf32> to vector<16x64xf32>
    %111 = arith.mulf %108, %110 : vector<16x64xf32>
    %112 = arith.addf %107, %111 : vector<16x64xf32>
    %c0_79 = arith.constant 0 : index
    %c14_80 = arith.constant 14 : index
    %113 = vector.load %arg7[%c0_79, %c14_80] : memref<18x80xf32, #tpu.memory_space<vmem>>, vector<16x64xf32>
    %c19 = arith.constant 19 : index
    %c0_81 = arith.constant 0 : index
    %114 = vector.load %arg2[%c19, %c0_81] : memref<63x64xf32, #tpu.memory_space<vmem>>, vector<1x64xf32>
    %115 = vector.broadcast %114 : vector<1x64xf32> to vector<16x64xf32>
    %116 = arith.mulf %113, %115 : vector<16x64xf32>
    %117 = arith.addf %112, %116 : vector<16x64xf32>
    %c0_82 = arith.constant 0 : index
    %c15_83 = arith.constant 15 : index
    %118 = vector.load %arg7[%c0_82, %c15_83] : memref<18x80xf32, #tpu.memory_space<vmem>>, vector<16x64xf32>
    %c20 = arith.constant 20 : index
    %c0_84 = arith.constant 0 : index
    %119 = vector.load %arg2[%c20, %c0_84] : memref<63x64xf32, #tpu.memory_space<vmem>>, vector<1x64xf32>
    %120 = vector.broadcast %119 : vector<1x64xf32> to vector<16x64xf32>
    %121 = arith.mulf %118, %120 : vector<16x64xf32>
    %122 = arith.addf %117, %121 : vector<16x64xf32>
    %c1_85 = arith.constant 1 : index
    %c1_86 = arith.constant 1 : index
    %123 = vector.load %arg7[%c1_85, %c1_86] : memref<18x80xf32, #tpu.memory_space<vmem>>, vector<16x64xf32>
    %c21 = arith.constant 21 : index
    %c0_87 = arith.constant 0 : index
    %124 = vector.load %arg2[%c21, %c0_87] : memref<63x64xf32, #tpu.memory_space<vmem>>, vector<1x64xf32>
    %125 = vector.broadcast %124 : vector<1x64xf32> to vector<16x64xf32>
    %126 = arith.mulf %123, %125 : vector<16x64xf32>
    %127 = arith.addf %122, %126 : vector<16x64xf32>
    %c1_88 = arith.constant 1 : index
    %c2_89 = arith.constant 2 : index
    %128 = vector.load %arg7[%c1_88, %c2_89] : memref<18x80xf32, #tpu.memory_space<vmem>>, vector<16x64xf32>
    %c22 = arith.constant 22 : index
    %c0_90 = arith.constant 0 : index
    %129 = vector.load %arg2[%c22, %c0_90] : memref<63x64xf32, #tpu.memory_space<vmem>>, vector<1x64xf32>
    %130 = vector.broadcast %129 : vector<1x64xf32> to vector<16x64xf32>
    %131 = arith.mulf %128, %130 : vector<16x64xf32>
    %132 = arith.addf %127, %131 : vector<16x64xf32>
    %c1_91 = arith.constant 1 : index
    %c3_92 = arith.constant 3 : index
    %133 = vector.load %arg7[%c1_91, %c3_92] : memref<18x80xf32, #tpu.memory_space<vmem>>, vector<16x64xf32>
    %c23 = arith.constant 23 : index
    %c0_93 = arith.constant 0 : index
    %134 = vector.load %arg2[%c23, %c0_93] : memref<63x64xf32, #tpu.memory_space<vmem>>, vector<1x64xf32>
    %135 = vector.broadcast %134 : vector<1x64xf32> to vector<16x64xf32>
    %136 = arith.mulf %133, %135 : vector<16x64xf32>
    %137 = arith.addf %132, %136 : vector<16x64xf32>
    %c1_94 = arith.constant 1 : index
    %c4_95 = arith.constant 4 : index
    %138 = vector.load %arg7[%c1_94, %c4_95] : memref<18x80xf32, #tpu.memory_space<vmem>>, vector<16x64xf32>
    %c24 = arith.constant 24 : index
    %c0_96 = arith.constant 0 : index
    %139 = vector.load %arg2[%c24, %c0_96] : memref<63x64xf32, #tpu.memory_space<vmem>>, vector<1x64xf32>
    %140 = vector.broadcast %139 : vector<1x64xf32> to vector<16x64xf32>
    %141 = arith.mulf %138, %140 : vector<16x64xf32>
    %142 = arith.addf %137, %141 : vector<16x64xf32>
    %c1_97 = arith.constant 1 : index
    %c5_98 = arith.constant 5 : index
    %143 = vector.load %arg7[%c1_97, %c5_98] : memref<18x80xf32, #tpu.memory_space<vmem>>, vector<16x64xf32>
    %c25 = arith.constant 25 : index
    %c0_99 = arith.constant 0 : index
    %144 = vector.load %arg2[%c25, %c0_99] : memref<63x64xf32, #tpu.memory_space<vmem>>, vector<1x64xf32>
    %145 = vector.broadcast %144 : vector<1x64xf32> to vector<16x64xf32>
    %146 = arith.mulf %143, %145 : vector<16x64xf32>
    %147 = arith.addf %142, %146 : vector<16x64xf32>
    %c1_100 = arith.constant 1 : index
    %c6_101 = arith.constant 6 : index
    %148 = vector.load %arg7[%c1_100, %c6_101] : memref<18x80xf32, #tpu.memory_space<vmem>>, vector<16x64xf32>
    %c26 = arith.constant 26 : index
    %c0_102 = arith.constant 0 : index
    %149 = vector.load %arg2[%c26, %c0_102] : memref<63x64xf32, #tpu.memory_space<vmem>>, vector<1x64xf32>
    %150 = vector.broadcast %149 : vector<1x64xf32> to vector<16x64xf32>
    %151 = arith.mulf %148, %150 : vector<16x64xf32>
    %152 = arith.addf %147, %151 : vector<16x64xf32>
    %c1_103 = arith.constant 1 : index
    %c7_104 = arith.constant 7 : index
    %153 = vector.load %arg7[%c1_103, %c7_104] : memref<18x80xf32, #tpu.memory_space<vmem>>, vector<16x64xf32>
    %c27 = arith.constant 27 : index
    %c0_105 = arith.constant 0 : index
    %154 = vector.load %arg2[%c27, %c0_105] : memref<63x64xf32, #tpu.memory_space<vmem>>, vector<1x64xf32>
    %155 = vector.broadcast %154 : vector<1x64xf32> to vector<16x64xf32>
    %156 = arith.mulf %153, %155 : vector<16x64xf32>
    %157 = arith.addf %152, %156 : vector<16x64xf32>
    %c1_106 = arith.constant 1 : index
    %c5_107 = arith.constant 5 : index
    %158 = vector.load %arg7[%c1_106, %c5_107] : memref<18x80xf32, #tpu.memory_space<vmem>>, vector<16x64xf32>
    %c28 = arith.constant 28 : index
    %c0_108 = arith.constant 0 : index
    %159 = vector.load %arg2[%c28, %c0_108] : memref<63x64xf32, #tpu.memory_space<vmem>>, vector<1x64xf32>
    %160 = vector.broadcast %159 : vector<1x64xf32> to vector<16x64xf32>
    %161 = arith.mulf %158, %160 : vector<16x64xf32>
    %162 = arith.addf %157, %161 : vector<16x64xf32>
    %c1_109 = arith.constant 1 : index
    %c6_110 = arith.constant 6 : index
    %163 = vector.load %arg7[%c1_109, %c6_110] : memref<18x80xf32, #tpu.memory_space<vmem>>, vector<16x64xf32>
    %c29 = arith.constant 29 : index
    %c0_111 = arith.constant 0 : index
    %164 = vector.load %arg2[%c29, %c0_111] : memref<63x64xf32, #tpu.memory_space<vmem>>, vector<1x64xf32>
    %165 = vector.broadcast %164 : vector<1x64xf32> to vector<16x64xf32>
    %166 = arith.mulf %163, %165 : vector<16x64xf32>
    %167 = arith.addf %162, %166 : vector<16x64xf32>
    %c1_112 = arith.constant 1 : index
    %c7_113 = arith.constant 7 : index
    %168 = vector.load %arg7[%c1_112, %c7_113] : memref<18x80xf32, #tpu.memory_space<vmem>>, vector<16x64xf32>
    %c30 = arith.constant 30 : index
    %c0_114 = arith.constant 0 : index
    %169 = vector.load %arg2[%c30, %c0_114] : memref<63x64xf32, #tpu.memory_space<vmem>>, vector<1x64xf32>
    %170 = vector.broadcast %169 : vector<1x64xf32> to vector<16x64xf32>
    %171 = arith.mulf %168, %170 : vector<16x64xf32>
    %172 = arith.addf %167, %171 : vector<16x64xf32>
    %c1_115 = arith.constant 1 : index
    %c8_116 = arith.constant 8 : index
    %173 = vector.load %arg7[%c1_115, %c8_116] : memref<18x80xf32, #tpu.memory_space<vmem>>, vector<16x64xf32>
    %c31 = arith.constant 31 : index
    %c0_117 = arith.constant 0 : index
    %174 = vector.load %arg2[%c31, %c0_117] : memref<63x64xf32, #tpu.memory_space<vmem>>, vector<1x64xf32>
    %175 = vector.broadcast %174 : vector<1x64xf32> to vector<16x64xf32>
    %176 = arith.mulf %173, %175 : vector<16x64xf32>
    %177 = arith.addf %172, %176 : vector<16x64xf32>
    %c1_118 = arith.constant 1 : index
    %c9_119 = arith.constant 9 : index
    %178 = vector.load %arg7[%c1_118, %c9_119] : memref<18x80xf32, #tpu.memory_space<vmem>>, vector<16x64xf32>
    %c32 = arith.constant 32 : index
    %c0_120 = arith.constant 0 : index
    %179 = vector.load %arg2[%c32, %c0_120] : memref<63x64xf32, #tpu.memory_space<vmem>>, vector<1x64xf32>
    %180 = vector.broadcast %179 : vector<1x64xf32> to vector<16x64xf32>
    %181 = arith.mulf %178, %180 : vector<16x64xf32>
    %182 = arith.addf %177, %181 : vector<16x64xf32>
    %c1_121 = arith.constant 1 : index
    %c10_122 = arith.constant 10 : index
    %183 = vector.load %arg7[%c1_121, %c10_122] : memref<18x80xf32, #tpu.memory_space<vmem>>, vector<16x64xf32>
    %c33 = arith.constant 33 : index
    %c0_123 = arith.constant 0 : index
    %184 = vector.load %arg2[%c33, %c0_123] : memref<63x64xf32, #tpu.memory_space<vmem>>, vector<1x64xf32>
    %185 = vector.broadcast %184 : vector<1x64xf32> to vector<16x64xf32>
    %186 = arith.mulf %183, %185 : vector<16x64xf32>
    %187 = arith.addf %182, %186 : vector<16x64xf32>
    %c1_124 = arith.constant 1 : index
    %c11_125 = arith.constant 11 : index
    %188 = vector.load %arg7[%c1_124, %c11_125] : memref<18x80xf32, #tpu.memory_space<vmem>>, vector<16x64xf32>
    %c34 = arith.constant 34 : index
    %c0_126 = arith.constant 0 : index
    %189 = vector.load %arg2[%c34, %c0_126] : memref<63x64xf32, #tpu.memory_space<vmem>>, vector<1x64xf32>
    %190 = vector.broadcast %189 : vector<1x64xf32> to vector<16x64xf32>
    %191 = arith.mulf %188, %190 : vector<16x64xf32>
    %192 = arith.addf %187, %191 : vector<16x64xf32>
    %c1_127 = arith.constant 1 : index
    %c9_128 = arith.constant 9 : index
    %193 = vector.load %arg7[%c1_127, %c9_128] : memref<18x80xf32, #tpu.memory_space<vmem>>, vector<16x64xf32>
    %c35 = arith.constant 35 : index
    %c0_129 = arith.constant 0 : index
    %194 = vector.load %arg2[%c35, %c0_129] : memref<63x64xf32, #tpu.memory_space<vmem>>, vector<1x64xf32>
    %195 = vector.broadcast %194 : vector<1x64xf32> to vector<16x64xf32>
    %196 = arith.mulf %193, %195 : vector<16x64xf32>
    %197 = arith.addf %192, %196 : vector<16x64xf32>
    %c1_130 = arith.constant 1 : index
    %c10_131 = arith.constant 10 : index
    %198 = vector.load %arg7[%c1_130, %c10_131] : memref<18x80xf32, #tpu.memory_space<vmem>>, vector<16x64xf32>
    %c36 = arith.constant 36 : index
    %c0_132 = arith.constant 0 : index
    %199 = vector.load %arg2[%c36, %c0_132] : memref<63x64xf32, #tpu.memory_space<vmem>>, vector<1x64xf32>
    %200 = vector.broadcast %199 : vector<1x64xf32> to vector<16x64xf32>
    %201 = arith.mulf %198, %200 : vector<16x64xf32>
    %202 = arith.addf %197, %201 : vector<16x64xf32>
    %c1_133 = arith.constant 1 : index
    %c11_134 = arith.constant 11 : index
    %203 = vector.load %arg7[%c1_133, %c11_134] : memref<18x80xf32, #tpu.memory_space<vmem>>, vector<16x64xf32>
    %c37 = arith.constant 37 : index
    %c0_135 = arith.constant 0 : index
    %204 = vector.load %arg2[%c37, %c0_135] : memref<63x64xf32, #tpu.memory_space<vmem>>, vector<1x64xf32>
    %205 = vector.broadcast %204 : vector<1x64xf32> to vector<16x64xf32>
    %206 = arith.mulf %203, %205 : vector<16x64xf32>
    %207 = arith.addf %202, %206 : vector<16x64xf32>
    %c1_136 = arith.constant 1 : index
    %c12_137 = arith.constant 12 : index
    %208 = vector.load %arg7[%c1_136, %c12_137] : memref<18x80xf32, #tpu.memory_space<vmem>>, vector<16x64xf32>
    %c38 = arith.constant 38 : index
    %c0_138 = arith.constant 0 : index
    %209 = vector.load %arg2[%c38, %c0_138] : memref<63x64xf32, #tpu.memory_space<vmem>>, vector<1x64xf32>
    %210 = vector.broadcast %209 : vector<1x64xf32> to vector<16x64xf32>
    %211 = arith.mulf %208, %210 : vector<16x64xf32>
    %212 = arith.addf %207, %211 : vector<16x64xf32>
    %c1_139 = arith.constant 1 : index
    %c13_140 = arith.constant 13 : index
    %213 = vector.load %arg7[%c1_139, %c13_140] : memref<18x80xf32, #tpu.memory_space<vmem>>, vector<16x64xf32>
    %c39 = arith.constant 39 : index
    %c0_141 = arith.constant 0 : index
    %214 = vector.load %arg2[%c39, %c0_141] : memref<63x64xf32, #tpu.memory_space<vmem>>, vector<1x64xf32>
    %215 = vector.broadcast %214 : vector<1x64xf32> to vector<16x64xf32>
    %216 = arith.mulf %213, %215 : vector<16x64xf32>
    %217 = arith.addf %212, %216 : vector<16x64xf32>
    %c1_142 = arith.constant 1 : index
    %c14_143 = arith.constant 14 : index
    %218 = vector.load %arg7[%c1_142, %c14_143] : memref<18x80xf32, #tpu.memory_space<vmem>>, vector<16x64xf32>
    %c40 = arith.constant 40 : index
    %c0_144 = arith.constant 0 : index
    %219 = vector.load %arg2[%c40, %c0_144] : memref<63x64xf32, #tpu.memory_space<vmem>>, vector<1x64xf32>
    %220 = vector.broadcast %219 : vector<1x64xf32> to vector<16x64xf32>
    %221 = arith.mulf %218, %220 : vector<16x64xf32>
    %222 = arith.addf %217, %221 : vector<16x64xf32>
    %c1_145 = arith.constant 1 : index
    %c15_146 = arith.constant 15 : index
    %223 = vector.load %arg7[%c1_145, %c15_146] : memref<18x80xf32, #tpu.memory_space<vmem>>, vector<16x64xf32>
    %c41 = arith.constant 41 : index
    %c0_147 = arith.constant 0 : index
    %224 = vector.load %arg2[%c41, %c0_147] : memref<63x64xf32, #tpu.memory_space<vmem>>, vector<1x64xf32>
    %225 = vector.broadcast %224 : vector<1x64xf32> to vector<16x64xf32>
    %226 = arith.mulf %223, %225 : vector<16x64xf32>
    %227 = arith.addf %222, %226 : vector<16x64xf32>
    %c2_148 = arith.constant 2 : index
    %c1_149 = arith.constant 1 : index
    %228 = vector.load %arg7[%c2_148, %c1_149] : memref<18x80xf32, #tpu.memory_space<vmem>>, vector<16x64xf32>
    %c42 = arith.constant 42 : index
    %c0_150 = arith.constant 0 : index
    %229 = vector.load %arg2[%c42, %c0_150] : memref<63x64xf32, #tpu.memory_space<vmem>>, vector<1x64xf32>
    %230 = vector.broadcast %229 : vector<1x64xf32> to vector<16x64xf32>
    %231 = arith.mulf %228, %230 : vector<16x64xf32>
    %232 = arith.addf %227, %231 : vector<16x64xf32>
    %c2_151 = arith.constant 2 : index
    %c2_152 = arith.constant 2 : index
    %233 = vector.load %arg7[%c2_151, %c2_152] : memref<18x80xf32, #tpu.memory_space<vmem>>, vector<16x64xf32>
    %c43 = arith.constant 43 : index
    %c0_153 = arith.constant 0 : index
    %234 = vector.load %arg2[%c43, %c0_153] : memref<63x64xf32, #tpu.memory_space<vmem>>, vector<1x64xf32>
    %235 = vector.broadcast %234 : vector<1x64xf32> to vector<16x64xf32>
    %236 = arith.mulf %233, %235 : vector<16x64xf32>
    %237 = arith.addf %232, %236 : vector<16x64xf32>
    %c2_154 = arith.constant 2 : index
    %c3_155 = arith.constant 3 : index
    %238 = vector.load %arg7[%c2_154, %c3_155] : memref<18x80xf32, #tpu.memory_space<vmem>>, vector<16x64xf32>
    %c44 = arith.constant 44 : index
    %c0_156 = arith.constant 0 : index
    %239 = vector.load %arg2[%c44, %c0_156] : memref<63x64xf32, #tpu.memory_space<vmem>>, vector<1x64xf32>
    %240 = vector.broadcast %239 : vector<1x64xf32> to vector<16x64xf32>
    %241 = arith.mulf %238, %240 : vector<16x64xf32>
    %242 = arith.addf %237, %241 : vector<16x64xf32>
    %c2_157 = arith.constant 2 : index
    %c4_158 = arith.constant 4 : index
    %243 = vector.load %arg7[%c2_157, %c4_158] : memref<18x80xf32, #tpu.memory_space<vmem>>, vector<16x64xf32>
    %c45 = arith.constant 45 : index
    %c0_159 = arith.constant 0 : index
    %244 = vector.load %arg2[%c45, %c0_159] : memref<63x64xf32, #tpu.memory_space<vmem>>, vector<1x64xf32>
    %245 = vector.broadcast %244 : vector<1x64xf32> to vector<16x64xf32>
    %246 = arith.mulf %243, %245 : vector<16x64xf32>
    %247 = arith.addf %242, %246 : vector<16x64xf32>
    %c2_160 = arith.constant 2 : index
    %c5_161 = arith.constant 5 : index
    %248 = vector.load %arg7[%c2_160, %c5_161] : memref<18x80xf32, #tpu.memory_space<vmem>>, vector<16x64xf32>
    %c46 = arith.constant 46 : index
    %c0_162 = arith.constant 0 : index
    %249 = vector.load %arg2[%c46, %c0_162] : memref<63x64xf32, #tpu.memory_space<vmem>>, vector<1x64xf32>
    %250 = vector.broadcast %249 : vector<1x64xf32> to vector<16x64xf32>
    %251 = arith.mulf %248, %250 : vector<16x64xf32>
    %252 = arith.addf %247, %251 : vector<16x64xf32>
    %c2_163 = arith.constant 2 : index
    %c6_164 = arith.constant 6 : index
    %253 = vector.load %arg7[%c2_163, %c6_164] : memref<18x80xf32, #tpu.memory_space<vmem>>, vector<16x64xf32>
    %c47 = arith.constant 47 : index
    %c0_165 = arith.constant 0 : index
    %254 = vector.load %arg2[%c47, %c0_165] : memref<63x64xf32, #tpu.memory_space<vmem>>, vector<1x64xf32>
    %255 = vector.broadcast %254 : vector<1x64xf32> to vector<16x64xf32>
    %256 = arith.mulf %253, %255 : vector<16x64xf32>
    %257 = arith.addf %252, %256 : vector<16x64xf32>
    %c2_166 = arith.constant 2 : index
    %c7_167 = arith.constant 7 : index
    %258 = vector.load %arg7[%c2_166, %c7_167] : memref<18x80xf32, #tpu.memory_space<vmem>>, vector<16x64xf32>
    %c48 = arith.constant 48 : index
    %c0_168 = arith.constant 0 : index
    %259 = vector.load %arg2[%c48, %c0_168] : memref<63x64xf32, #tpu.memory_space<vmem>>, vector<1x64xf32>
    %260 = vector.broadcast %259 : vector<1x64xf32> to vector<16x64xf32>
    %261 = arith.mulf %258, %260 : vector<16x64xf32>
    %262 = arith.addf %257, %261 : vector<16x64xf32>
    %c2_169 = arith.constant 2 : index
    %c5_170 = arith.constant 5 : index
    %263 = vector.load %arg7[%c2_169, %c5_170] : memref<18x80xf32, #tpu.memory_space<vmem>>, vector<16x64xf32>
    %c49 = arith.constant 49 : index
    %c0_171 = arith.constant 0 : index
    %264 = vector.load %arg2[%c49, %c0_171] : memref<63x64xf32, #tpu.memory_space<vmem>>, vector<1x64xf32>
    %265 = vector.broadcast %264 : vector<1x64xf32> to vector<16x64xf32>
    %266 = arith.mulf %263, %265 : vector<16x64xf32>
    %267 = arith.addf %262, %266 : vector<16x64xf32>
    %c2_172 = arith.constant 2 : index
    %c6_173 = arith.constant 6 : index
    %268 = vector.load %arg7[%c2_172, %c6_173] : memref<18x80xf32, #tpu.memory_space<vmem>>, vector<16x64xf32>
    %c50 = arith.constant 50 : index
    %c0_174 = arith.constant 0 : index
    %269 = vector.load %arg2[%c50, %c0_174] : memref<63x64xf32, #tpu.memory_space<vmem>>, vector<1x64xf32>
    %270 = vector.broadcast %269 : vector<1x64xf32> to vector<16x64xf32>
    %271 = arith.mulf %268, %270 : vector<16x64xf32>
    %272 = arith.addf %267, %271 : vector<16x64xf32>
    %c2_175 = arith.constant 2 : index
    %c7_176 = arith.constant 7 : index
    %273 = vector.load %arg7[%c2_175, %c7_176] : memref<18x80xf32, #tpu.memory_space<vmem>>, vector<16x64xf32>
    %c51 = arith.constant 51 : index
    %c0_177 = arith.constant 0 : index
    %274 = vector.load %arg2[%c51, %c0_177] : memref<63x64xf32, #tpu.memory_space<vmem>>, vector<1x64xf32>
    %275 = vector.broadcast %274 : vector<1x64xf32> to vector<16x64xf32>
    %276 = arith.mulf %273, %275 : vector<16x64xf32>
    %277 = arith.addf %272, %276 : vector<16x64xf32>
    %c2_178 = arith.constant 2 : index
    %c8_179 = arith.constant 8 : index
    %278 = vector.load %arg7[%c2_178, %c8_179] : memref<18x80xf32, #tpu.memory_space<vmem>>, vector<16x64xf32>
    %c52 = arith.constant 52 : index
    %c0_180 = arith.constant 0 : index
    %279 = vector.load %arg2[%c52, %c0_180] : memref<63x64xf32, #tpu.memory_space<vmem>>, vector<1x64xf32>
    %280 = vector.broadcast %279 : vector<1x64xf32> to vector<16x64xf32>
    %281 = arith.mulf %278, %280 : vector<16x64xf32>
    %282 = arith.addf %277, %281 : vector<16x64xf32>
    %c2_181 = arith.constant 2 : index
    %c9_182 = arith.constant 9 : index
    %283 = vector.load %arg7[%c2_181, %c9_182] : memref<18x80xf32, #tpu.memory_space<vmem>>, vector<16x64xf32>
    %c53 = arith.constant 53 : index
    %c0_183 = arith.constant 0 : index
    %284 = vector.load %arg2[%c53, %c0_183] : memref<63x64xf32, #tpu.memory_space<vmem>>, vector<1x64xf32>
    %285 = vector.broadcast %284 : vector<1x64xf32> to vector<16x64xf32>
    %286 = arith.mulf %283, %285 : vector<16x64xf32>
    %287 = arith.addf %282, %286 : vector<16x64xf32>
    %c2_184 = arith.constant 2 : index
    %c10_185 = arith.constant 10 : index
    %288 = vector.load %arg7[%c2_184, %c10_185] : memref<18x80xf32, #tpu.memory_space<vmem>>, vector<16x64xf32>
    %c54 = arith.constant 54 : index
    %c0_186 = arith.constant 0 : index
    %289 = vector.load %arg2[%c54, %c0_186] : memref<63x64xf32, #tpu.memory_space<vmem>>, vector<1x64xf32>
    %290 = vector.broadcast %289 : vector<1x64xf32> to vector<16x64xf32>
    %291 = arith.mulf %288, %290 : vector<16x64xf32>
    %292 = arith.addf %287, %291 : vector<16x64xf32>
    %c2_187 = arith.constant 2 : index
    %c11_188 = arith.constant 11 : index
    %293 = vector.load %arg7[%c2_187, %c11_188] : memref<18x80xf32, #tpu.memory_space<vmem>>, vector<16x64xf32>
    %c55 = arith.constant 55 : index
    %c0_189 = arith.constant 0 : index
    %294 = vector.load %arg2[%c55, %c0_189] : memref<63x64xf32, #tpu.memory_space<vmem>>, vector<1x64xf32>
    %295 = vector.broadcast %294 : vector<1x64xf32> to vector<16x64xf32>
    %296 = arith.mulf %293, %295 : vector<16x64xf32>
    %297 = arith.addf %292, %296 : vector<16x64xf32>
    %c2_190 = arith.constant 2 : index
    %c9_191 = arith.constant 9 : index
    %298 = vector.load %arg7[%c2_190, %c9_191] : memref<18x80xf32, #tpu.memory_space<vmem>>, vector<16x64xf32>
    %c56 = arith.constant 56 : index
    %c0_192 = arith.constant 0 : index
    %299 = vector.load %arg2[%c56, %c0_192] : memref<63x64xf32, #tpu.memory_space<vmem>>, vector<1x64xf32>
    %300 = vector.broadcast %299 : vector<1x64xf32> to vector<16x64xf32>
    %301 = arith.mulf %298, %300 : vector<16x64xf32>
    %302 = arith.addf %297, %301 : vector<16x64xf32>
    %c2_193 = arith.constant 2 : index
    %c10_194 = arith.constant 10 : index
    %303 = vector.load %arg7[%c2_193, %c10_194] : memref<18x80xf32, #tpu.memory_space<vmem>>, vector<16x64xf32>
    %c57 = arith.constant 57 : index
    %c0_195 = arith.constant 0 : index
    %304 = vector.load %arg2[%c57, %c0_195] : memref<63x64xf32, #tpu.memory_space<vmem>>, vector<1x64xf32>
    %305 = vector.broadcast %304 : vector<1x64xf32> to vector<16x64xf32>
    %306 = arith.mulf %303, %305 : vector<16x64xf32>
    %307 = arith.addf %302, %306 : vector<16x64xf32>
    %c2_196 = arith.constant 2 : index
    %c11_197 = arith.constant 11 : index
    %308 = vector.load %arg7[%c2_196, %c11_197] : memref<18x80xf32, #tpu.memory_space<vmem>>, vector<16x64xf32>
    %c58 = arith.constant 58 : index
    %c0_198 = arith.constant 0 : index
    %309 = vector.load %arg2[%c58, %c0_198] : memref<63x64xf32, #tpu.memory_space<vmem>>, vector<1x64xf32>
    %310 = vector.broadcast %309 : vector<1x64xf32> to vector<16x64xf32>
    %311 = arith.mulf %308, %310 : vector<16x64xf32>
    %312 = arith.addf %307, %311 : vector<16x64xf32>
    %c2_199 = arith.constant 2 : index
    %c12_200 = arith.constant 12 : index
    %313 = vector.load %arg7[%c2_199, %c12_200] : memref<18x80xf32, #tpu.memory_space<vmem>>, vector<16x64xf32>
    %c59 = arith.constant 59 : index
    %c0_201 = arith.constant 0 : index
    %314 = vector.load %arg2[%c59, %c0_201] : memref<63x64xf32, #tpu.memory_space<vmem>>, vector<1x64xf32>
    %315 = vector.broadcast %314 : vector<1x64xf32> to vector<16x64xf32>
    %316 = arith.mulf %313, %315 : vector<16x64xf32>
    %317 = arith.addf %312, %316 : vector<16x64xf32>
    %c2_202 = arith.constant 2 : index
    %c13_203 = arith.constant 13 : index
    %318 = vector.load %arg7[%c2_202, %c13_203] : memref<18x80xf32, #tpu.memory_space<vmem>>, vector<16x64xf32>
    %c60 = arith.constant 60 : index
    %c0_204 = arith.constant 0 : index
    %319 = vector.load %arg2[%c60, %c0_204] : memref<63x64xf32, #tpu.memory_space<vmem>>, vector<1x64xf32>
    %320 = vector.broadcast %319 : vector<1x64xf32> to vector<16x64xf32>
    %321 = arith.mulf %318, %320 : vector<16x64xf32>
    %322 = arith.addf %317, %321 : vector<16x64xf32>
    %c2_205 = arith.constant 2 : index
    %c14_206 = arith.constant 14 : index
    %323 = vector.load %arg7[%c2_205, %c14_206] : memref<18x80xf32, #tpu.memory_space<vmem>>, vector<16x64xf32>
    %c61 = arith.constant 61 : index
    %c0_207 = arith.constant 0 : index
    %324 = vector.load %arg2[%c61, %c0_207] : memref<63x64xf32, #tpu.memory_space<vmem>>, vector<1x64xf32>
    %325 = vector.broadcast %324 : vector<1x64xf32> to vector<16x64xf32>
    %326 = arith.mulf %323, %325 : vector<16x64xf32>
    %327 = arith.addf %322, %326 : vector<16x64xf32>
    %c2_208 = arith.constant 2 : index
    %c15_209 = arith.constant 15 : index
    %328 = vector.load %arg7[%c2_208, %c15_209] : memref<18x80xf32, #tpu.memory_space<vmem>>, vector<16x64xf32>
    %c62 = arith.constant 62 : index
    %c0_210 = arith.constant 0 : index
    %329 = vector.load %arg2[%c62, %c0_210] : memref<63x64xf32, #tpu.memory_space<vmem>>, vector<1x64xf32>
    %330 = vector.broadcast %329 : vector<1x64xf32> to vector<16x64xf32>
    %331 = arith.mulf %328, %330 : vector<16x64xf32>
    %332 = arith.addf %327, %331 : vector<16x64xf32>
    %cst_211 = arith.constant 0.000000e+00 : f32
    %333 = vector.broadcast %cst_211 : f32 to vector<16x64xf32>
    %334 = arith.cmpf oge, %332, %333 : vector<16x64xf32>
    %cst_212 = arith.constant 0.00999999977 : f32
    %335 = vector.broadcast %cst_212 : f32 to vector<16x64xf32>
    %336 = arith.mulf %335, %332 : vector<16x64xf32>
    %337 = arith.select %334, %332, %336 : vector<16x64xi1>, vector<16x64xf32>
    %c1_213 = arith.constant 1 : index
    %c8_214 = arith.constant 8 : index
    %338 = vector.load %arg7[%c1_213, %c8_214] : memref<18x80xf32, #tpu.memory_space<vmem>>, vector<16x64xf32>
    tpu.vector_store %arg7[%c1_213, %c8_214], %337 {strides = array<i32>} : memref<18x80xf32, #tpu.memory_space<vmem>>, vector<16x64xf32>,
    %339 = vector.extract_strided_slice %337 {offsets = [0, 4], sizes = [16, 4], strides = [1, 1]} : vector<16x64xf32> to vector<16x4xf32>
    %c1_215 = arith.constant 1 : index
    %c4_216 = arith.constant 4 : index
    %340 = vector.load %arg7[%c1_215, %c4_216] : memref<18x80xf32, #tpu.memory_space<vmem>>, vector<16x4xf32>
    tpu.vector_store %arg7[%c1_215, %c4_216], %339 {strides = array<i32>} : memref<18x80xf32, #tpu.memory_space<vmem>>, vector<16x4xf32>,
    %341 = vector.extract_strided_slice %337 {offsets = [0, 56], sizes = [16, 4], strides = [1, 1]} : vector<16x64xf32> to vector<16x4xf32>
    %c1_217 = arith.constant 1 : index
    %c72_218 = arith.constant 72 : index
    %342 = vector.load %arg7[%c1_217, %c72_218] : memref<18x80xf32, #tpu.memory_space<vmem>>, vector<16x4xf32>
    tpu.vector_store %arg7[%c1_217, %c72_218], %341 {strides = array<i32>} : memref<18x80xf32, #tpu.memory_space<vmem>>, vector<16x4xf32>,
    %c2_219 = arith.constant 2 : index
    %c0_220 = arith.constant 0 : index
    %343 = vector.load %arg7[%c2_219, %c0_220] : memref<18x80xf32, #tpu.memory_space<vmem>>, vector<1x80xf32>
    %c0_221 = arith.constant 0 : index
    %c0_222 = arith.constant 0 : index
    %344 = vector.load %arg7[%c0_221, %c0_222] : memref<18x80xf32, #tpu.memory_space<vmem>>, vector<1x80xf32>
    tpu.vector_store %arg7[%c0_221, %c0_222], %343 {strides = array<i32>} : memref<18x80xf32, #tpu.memory_space<vmem>>, vector<1x80xf32>,
    %c15_223 = arith.constant 15 : index
    %c0_224 = arith.constant 0 : index
    %345 = vector.load %arg7[%c15_223, %c0_224] : memref<18x80xf32, #tpu.memory_space<vmem>>, vector<1x80xf32>
    %c17_225 = arith.constant 17 : index
    %c0_226 = arith.constant 0 : index
    %346 = vector.load %arg7[%c17_225, %c0_226] : memref<18x80xf32, #tpu.memory_space<vmem>>, vector<1x80xf32>
    tpu.vector_store %arg7[%c17_225, %c0_226], %345 {strides = array<i32>} : memref<18x80xf32, #tpu.memory_space<vmem>>, vector<1x80xf32>,
    %cst_227 = arith.constant 0.000000e+00 : f32
    %347 = vector.broadcast %cst_227 : f32 to vector<16x64xf32>
    %c0_228 = arith.constant 0 : index
    %c0_229 = arith.constant 0 : index
    %348 = vector.load %arg5[%c0_228, %c0_229] : memref<1x64xf32, #tpu.memory_space<vmem>>, vector<1x64xf32>
    %349 = vector.broadcast %348 : vector<1x64xf32> to vector<16x64xf32>
    %350 = arith.addf %347, %349 : vector<16x64xf32>
    %c0_230 = arith.constant 0 : index
    %c1_231 = arith.constant 1 : index
    %351 = vector.load %arg7[%c0_230, %c1_231] : memref<18x80xf32, #tpu.memory_space<vmem>>, vector<16x64xf32>
    %c0_232 = arith.constant 0 : index
    %c0_233 = arith.constant 0 : index
    %352 = vector.load %arg4[%c0_232, %c0_233] : memref<63x64xf32, #tpu.memory_space<vmem>>, vector<1x64xf32>
    %353 = vector.broadcast %352 : vector<1x64xf32> to vector<16x64xf32>
    %354 = arith.mulf %351, %353 : vector<16x64xf32>
    %355 = arith.addf %350, %354 : vector<16x64xf32>
    %c0_234 = arith.constant 0 : index
    %c2_235 = arith.constant 2 : index
    %356 = vector.load %arg7[%c0_234, %c2_235] : memref<18x80xf32, #tpu.memory_space<vmem>>, vector<16x64xf32>
    %c1_236 = arith.constant 1 : index
    %c0_237 = arith.constant 0 : index
    %357 = vector.load %arg4[%c1_236, %c0_237] : memref<63x64xf32, #tpu.memory_space<vmem>>, vector<1x64xf32>
    %358 = vector.broadcast %357 : vector<1x64xf32> to vector<16x64xf32>
    %359 = arith.mulf %356, %358 : vector<16x64xf32>
    %360 = arith.addf %355, %359 : vector<16x64xf32>
    %c0_238 = arith.constant 0 : index
    %c3_239 = arith.constant 3 : index
    %361 = vector.load %arg7[%c0_238, %c3_239] : memref<18x80xf32, #tpu.memory_space<vmem>>, vector<16x64xf32>
    %c2_240 = arith.constant 2 : index
    %c0_241 = arith.constant 0 : index
    %362 = vector.load %arg4[%c2_240, %c0_241] : memref<63x64xf32, #tpu.memory_space<vmem>>, vector<1x64xf32>
    %363 = vector.broadcast %362 : vector<1x64xf32> to vector<16x64xf32>
    %364 = arith.mulf %361, %363 : vector<16x64xf32>
    %365 = arith.addf %360, %364 : vector<16x64xf32>
    %c0_242 = arith.constant 0 : index
    %c4_243 = arith.constant 4 : index
    %366 = vector.load %arg7[%c0_242, %c4_243] : memref<18x80xf32, #tpu.memory_space<vmem>>, vector<16x64xf32>
    %c3_244 = arith.constant 3 : index
    %c0_245 = arith.constant 0 : index
    %367 = vector.load %arg4[%c3_244, %c0_245] : memref<63x64xf32, #tpu.memory_space<vmem>>, vector<1x64xf32>
    %368 = vector.broadcast %367 : vector<1x64xf32> to vector<16x64xf32>
    %369 = arith.mulf %366, %368 : vector<16x64xf32>
    %370 = arith.addf %365, %369 : vector<16x64xf32>
    %c0_246 = arith.constant 0 : index
    %c5_247 = arith.constant 5 : index
    %371 = vector.load %arg7[%c0_246, %c5_247] : memref<18x80xf32, #tpu.memory_space<vmem>>, vector<16x64xf32>
    %c4_248 = arith.constant 4 : index
    %c0_249 = arith.constant 0 : index
    %372 = vector.load %arg4[%c4_248, %c0_249] : memref<63x64xf32, #tpu.memory_space<vmem>>, vector<1x64xf32>
    %373 = vector.broadcast %372 : vector<1x64xf32> to vector<16x64xf32>
    %374 = arith.mulf %371, %373 : vector<16x64xf32>
    %375 = arith.addf %370, %374 : vector<16x64xf32>
    %c0_250 = arith.constant 0 : index
    %c6_251 = arith.constant 6 : index
    %376 = vector.load %arg7[%c0_250, %c6_251] : memref<18x80xf32, #tpu.memory_space<vmem>>, vector<16x64xf32>
    %c5_252 = arith.constant 5 : index
    %c0_253 = arith.constant 0 : index
    %377 = vector.load %arg4[%c5_252, %c0_253] : memref<63x64xf32, #tpu.memory_space<vmem>>, vector<1x64xf32>
    %378 = vector.broadcast %377 : vector<1x64xf32> to vector<16x64xf32>
    %379 = arith.mulf %376, %378 : vector<16x64xf32>
    %380 = arith.addf %375, %379 : vector<16x64xf32>
    %c0_254 = arith.constant 0 : index
    %c7_255 = arith.constant 7 : index
    %381 = vector.load %arg7[%c0_254, %c7_255] : memref<18x80xf32, #tpu.memory_space<vmem>>, vector<16x64xf32>
    %c6_256 = arith.constant 6 : index
    %c0_257 = arith.constant 0 : index
    %382 = vector.load %arg4[%c6_256, %c0_257] : memref<63x64xf32, #tpu.memory_space<vmem>>, vector<1x64xf32>
    %383 = vector.broadcast %382 : vector<1x64xf32> to vector<16x64xf32>
    %384 = arith.mulf %381, %383 : vector<16x64xf32>
    %385 = arith.addf %380, %384 : vector<16x64xf32>
    %c0_258 = arith.constant 0 : index
    %c5_259 = arith.constant 5 : index
    %386 = vector.load %arg7[%c0_258, %c5_259] : memref<18x80xf32, #tpu.memory_space<vmem>>, vector<16x64xf32>
    %c7_260 = arith.constant 7 : index
    %c0_261 = arith.constant 0 : index
    %387 = vector.load %arg4[%c7_260, %c0_261] : memref<63x64xf32, #tpu.memory_space<vmem>>, vector<1x64xf32>
    %388 = vector.broadcast %387 : vector<1x64xf32> to vector<16x64xf32>
    %389 = arith.mulf %386, %388 : vector<16x64xf32>
    %390 = arith.addf %385, %389 : vector<16x64xf32>
    %c0_262 = arith.constant 0 : index
    %c6_263 = arith.constant 6 : index
    %391 = vector.load %arg7[%c0_262, %c6_263] : memref<18x80xf32, #tpu.memory_space<vmem>>, vector<16x64xf32>
    %c8_264 = arith.constant 8 : index
    %c0_265 = arith.constant 0 : index
    %392 = vector.load %arg4[%c8_264, %c0_265] : memref<63x64xf32, #tpu.memory_space<vmem>>, vector<1x64xf32>
    %393 = vector.broadcast %392 : vector<1x64xf32> to vector<16x64xf32>
    %394 = arith.mulf %391, %393 : vector<16x64xf32>
    %395 = arith.addf %390, %394 : vector<16x64xf32>
    %c0_266 = arith.constant 0 : index
    %c7_267 = arith.constant 7 : index
    %396 = vector.load %arg7[%c0_266, %c7_267] : memref<18x80xf32, #tpu.memory_space<vmem>>, vector<16x64xf32>
    %c9_268 = arith.constant 9 : index
    %c0_269 = arith.constant 0 : index
    %397 = vector.load %arg4[%c9_268, %c0_269] : memref<63x64xf32, #tpu.memory_space<vmem>>, vector<1x64xf32>
    %398 = vector.broadcast %397 : vector<1x64xf32> to vector<16x64xf32>
    %399 = arith.mulf %396, %398 : vector<16x64xf32>
    %400 = arith.addf %395, %399 : vector<16x64xf32>
    %c0_270 = arith.constant 0 : index
    %c8_271 = arith.constant 8 : index
    %401 = vector.load %arg7[%c0_270, %c8_271] : memref<18x80xf32, #tpu.memory_space<vmem>>, vector<16x64xf32>
    %c10_272 = arith.constant 10 : index
    %c0_273 = arith.constant 0 : index
    %402 = vector.load %arg4[%c10_272, %c0_273] : memref<63x64xf32, #tpu.memory_space<vmem>>, vector<1x64xf32>
    %403 = vector.broadcast %402 : vector<1x64xf32> to vector<16x64xf32>
    %404 = arith.mulf %401, %403 : vector<16x64xf32>
    %405 = arith.addf %400, %404 : vector<16x64xf32>
    %c0_274 = arith.constant 0 : index
    %c9_275 = arith.constant 9 : index
    %406 = vector.load %arg7[%c0_274, %c9_275] : memref<18x80xf32, #tpu.memory_space<vmem>>, vector<16x64xf32>
    %c11_276 = arith.constant 11 : index
    %c0_277 = arith.constant 0 : index
    %407 = vector.load %arg4[%c11_276, %c0_277] : memref<63x64xf32, #tpu.memory_space<vmem>>, vector<1x64xf32>
    %408 = vector.broadcast %407 : vector<1x64xf32> to vector<16x64xf32>
    %409 = arith.mulf %406, %408 : vector<16x64xf32>
    %410 = arith.addf %405, %409 : vector<16x64xf32>
    %c0_278 = arith.constant 0 : index
    %c10_279 = arith.constant 10 : index
    %411 = vector.load %arg7[%c0_278, %c10_279] : memref<18x80xf32, #tpu.memory_space<vmem>>, vector<16x64xf32>
    %c12_280 = arith.constant 12 : index
    %c0_281 = arith.constant 0 : index
    %412 = vector.load %arg4[%c12_280, %c0_281] : memref<63x64xf32, #tpu.memory_space<vmem>>, vector<1x64xf32>
    %413 = vector.broadcast %412 : vector<1x64xf32> to vector<16x64xf32>
    %414 = arith.mulf %411, %413 : vector<16x64xf32>
    %415 = arith.addf %410, %414 : vector<16x64xf32>
    %c0_282 = arith.constant 0 : index
    %c11_283 = arith.constant 11 : index
    %416 = vector.load %arg7[%c0_282, %c11_283] : memref<18x80xf32, #tpu.memory_space<vmem>>, vector<16x64xf32>
    %c13_284 = arith.constant 13 : index
    %c0_285 = arith.constant 0 : index
    %417 = vector.load %arg4[%c13_284, %c0_285] : memref<63x64xf32, #tpu.memory_space<vmem>>, vector<1x64xf32>
    %418 = vector.broadcast %417 : vector<1x64xf32> to vector<16x64xf32>
    %419 = arith.mulf %416, %418 : vector<16x64xf32>
    %420 = arith.addf %415, %419 : vector<16x64xf32>
    %c0_286 = arith.constant 0 : index
    %c9_287 = arith.constant 9 : index
    %421 = vector.load %arg7[%c0_286, %c9_287] : memref<18x80xf32, #tpu.memory_space<vmem>>, vector<16x64xf32>
    %c14_288 = arith.constant 14 : index
    %c0_289 = arith.constant 0 : index
    %422 = vector.load %arg4[%c14_288, %c0_289] : memref<63x64xf32, #tpu.memory_space<vmem>>, vector<1x64xf32>
    %423 = vector.broadcast %422 : vector<1x64xf32> to vector<16x64xf32>
    %424 = arith.mulf %421, %423 : vector<16x64xf32>
    %425 = arith.addf %420, %424 : vector<16x64xf32>
    %c0_290 = arith.constant 0 : index
    %c10_291 = arith.constant 10 : index
    %426 = vector.load %arg7[%c0_290, %c10_291] : memref<18x80xf32, #tpu.memory_space<vmem>>, vector<16x64xf32>
    %c15_292 = arith.constant 15 : index
    %c0_293 = arith.constant 0 : index
    %427 = vector.load %arg4[%c15_292, %c0_293] : memref<63x64xf32, #tpu.memory_space<vmem>>, vector<1x64xf32>
    %428 = vector.broadcast %427 : vector<1x64xf32> to vector<16x64xf32>
    %429 = arith.mulf %426, %428 : vector<16x64xf32>
    %430 = arith.addf %425, %429 : vector<16x64xf32>
    %c0_294 = arith.constant 0 : index
    %c11_295 = arith.constant 11 : index
    %431 = vector.load %arg7[%c0_294, %c11_295] : memref<18x80xf32, #tpu.memory_space<vmem>>, vector<16x64xf32>
    %c16_296 = arith.constant 16 : index
    %c0_297 = arith.constant 0 : index
    %432 = vector.load %arg4[%c16_296, %c0_297] : memref<63x64xf32, #tpu.memory_space<vmem>>, vector<1x64xf32>
    %433 = vector.broadcast %432 : vector<1x64xf32> to vector<16x64xf32>
    %434 = arith.mulf %431, %433 : vector<16x64xf32>
    %435 = arith.addf %430, %434 : vector<16x64xf32>
    %c0_298 = arith.constant 0 : index
    %c12_299 = arith.constant 12 : index
    %436 = vector.load %arg7[%c0_298, %c12_299] : memref<18x80xf32, #tpu.memory_space<vmem>>, vector<16x64xf32>
    %c17_300 = arith.constant 17 : index
    %c0_301 = arith.constant 0 : index
    %437 = vector.load %arg4[%c17_300, %c0_301] : memref<63x64xf32, #tpu.memory_space<vmem>>, vector<1x64xf32>
    %438 = vector.broadcast %437 : vector<1x64xf32> to vector<16x64xf32>
    %439 = arith.mulf %436, %438 : vector<16x64xf32>
    %440 = arith.addf %435, %439 : vector<16x64xf32>
    %c0_302 = arith.constant 0 : index
    %c13_303 = arith.constant 13 : index
    %441 = vector.load %arg7[%c0_302, %c13_303] : memref<18x80xf32, #tpu.memory_space<vmem>>, vector<16x64xf32>
    %c18_304 = arith.constant 18 : index
    %c0_305 = arith.constant 0 : index
    %442 = vector.load %arg4[%c18_304, %c0_305] : memref<63x64xf32, #tpu.memory_space<vmem>>, vector<1x64xf32>
    %443 = vector.broadcast %442 : vector<1x64xf32> to vector<16x64xf32>
    %444 = arith.mulf %441, %443 : vector<16x64xf32>
    %445 = arith.addf %440, %444 : vector<16x64xf32>
    %c0_306 = arith.constant 0 : index
    %c14_307 = arith.constant 14 : index
    %446 = vector.load %arg7[%c0_306, %c14_307] : memref<18x80xf32, #tpu.memory_space<vmem>>, vector<16x64xf32>
    %c19_308 = arith.constant 19 : index
    %c0_309 = arith.constant 0 : index
    %447 = vector.load %arg4[%c19_308, %c0_309] : memref<63x64xf32, #tpu.memory_space<vmem>>, vector<1x64xf32>
    %448 = vector.broadcast %447 : vector<1x64xf32> to vector<16x64xf32>
    %449 = arith.mulf %446, %448 : vector<16x64xf32>
    %450 = arith.addf %445, %449 : vector<16x64xf32>
    %c0_310 = arith.constant 0 : index
    %c15_311 = arith.constant 15 : index
    %451 = vector.load %arg7[%c0_310, %c15_311] : memref<18x80xf32, #tpu.memory_space<vmem>>, vector<16x64xf32>
    %c20_312 = arith.constant 20 : index
    %c0_313 = arith.constant 0 : index
    %452 = vector.load %arg4[%c20_312, %c0_313] : memref<63x64xf32, #tpu.memory_space<vmem>>, vector<1x64xf32>
    %453 = vector.broadcast %452 : vector<1x64xf32> to vector<16x64xf32>
    %454 = arith.mulf %451, %453 : vector<16x64xf32>
    %455 = arith.addf %450, %454 : vector<16x64xf32>
    %c1_314 = arith.constant 1 : index
    %c1_315 = arith.constant 1 : index
    %456 = vector.load %arg7[%c1_314, %c1_315] : memref<18x80xf32, #tpu.memory_space<vmem>>, vector<16x64xf32>
    %c21_316 = arith.constant 21 : index
    %c0_317 = arith.constant 0 : index
    %457 = vector.load %arg4[%c21_316, %c0_317] : memref<63x64xf32, #tpu.memory_space<vmem>>, vector<1x64xf32>
    %458 = vector.broadcast %457 : vector<1x64xf32> to vector<16x64xf32>
    %459 = arith.mulf %456, %458 : vector<16x64xf32>
    %460 = arith.addf %455, %459 : vector<16x64xf32>
    %c1_318 = arith.constant 1 : index
    %c2_319 = arith.constant 2 : index
    %461 = vector.load %arg7[%c1_318, %c2_319] : memref<18x80xf32, #tpu.memory_space<vmem>>, vector<16x64xf32>
    %c22_320 = arith.constant 22 : index
    %c0_321 = arith.constant 0 : index
    %462 = vector.load %arg4[%c22_320, %c0_321] : memref<63x64xf32, #tpu.memory_space<vmem>>, vector<1x64xf32>
    %463 = vector.broadcast %462 : vector<1x64xf32> to vector<16x64xf32>
    %464 = arith.mulf %461, %463 : vector<16x64xf32>
    %465 = arith.addf %460, %464 : vector<16x64xf32>
    %c1_322 = arith.constant 1 : index
    %c3_323 = arith.constant 3 : index
    %466 = vector.load %arg7[%c1_322, %c3_323] : memref<18x80xf32, #tpu.memory_space<vmem>>, vector<16x64xf32>
    %c23_324 = arith.constant 23 : index
    %c0_325 = arith.constant 0 : index
    %467 = vector.load %arg4[%c23_324, %c0_325] : memref<63x64xf32, #tpu.memory_space<vmem>>, vector<1x64xf32>
    %468 = vector.broadcast %467 : vector<1x64xf32> to vector<16x64xf32>
    %469 = arith.mulf %466, %468 : vector<16x64xf32>
    %470 = arith.addf %465, %469 : vector<16x64xf32>
    %c1_326 = arith.constant 1 : index
    %c4_327 = arith.constant 4 : index
    %471 = vector.load %arg7[%c1_326, %c4_327] : memref<18x80xf32, #tpu.memory_space<vmem>>, vector<16x64xf32>
    %c24_328 = arith.constant 24 : index
    %c0_329 = arith.constant 0 : index
    %472 = vector.load %arg4[%c24_328, %c0_329] : memref<63x64xf32, #tpu.memory_space<vmem>>, vector<1x64xf32>
    %473 = vector.broadcast %472 : vector<1x64xf32> to vector<16x64xf32>
    %474 = arith.mulf %471, %473 : vector<16x64xf32>
    %475 = arith.addf %470, %474 : vector<16x64xf32>
    %c1_330 = arith.constant 1 : index
    %c5_331 = arith.constant 5 : index
    %476 = vector.load %arg7[%c1_330, %c5_331] : memref<18x80xf32, #tpu.memory_space<vmem>>, vector<16x64xf32>
    %c25_332 = arith.constant 25 : index
    %c0_333 = arith.constant 0 : index
    %477 = vector.load %arg4[%c25_332, %c0_333] : memref<63x64xf32, #tpu.memory_space<vmem>>, vector<1x64xf32>
    %478 = vector.broadcast %477 : vector<1x64xf32> to vector<16x64xf32>
    %479 = arith.mulf %476, %478 : vector<16x64xf32>
    %480 = arith.addf %475, %479 : vector<16x64xf32>
    %c1_334 = arith.constant 1 : index
    %c6_335 = arith.constant 6 : index
    %481 = vector.load %arg7[%c1_334, %c6_335] : memref<18x80xf32, #tpu.memory_space<vmem>>, vector<16x64xf32>
    %c26_336 = arith.constant 26 : index
    %c0_337 = arith.constant 0 : index
    %482 = vector.load %arg4[%c26_336, %c0_337] : memref<63x64xf32, #tpu.memory_space<vmem>>, vector<1x64xf32>
    %483 = vector.broadcast %482 : vector<1x64xf32> to vector<16x64xf32>
    %484 = arith.mulf %481, %483 : vector<16x64xf32>
    %485 = arith.addf %480, %484 : vector<16x64xf32>
    %c1_338 = arith.constant 1 : index
    %c7_339 = arith.constant 7 : index
    %486 = vector.load %arg7[%c1_338, %c7_339] : memref<18x80xf32, #tpu.memory_space<vmem>>, vector<16x64xf32>
    %c27_340 = arith.constant 27 : index
    %c0_341 = arith.constant 0 : index
    %487 = vector.load %arg4[%c27_340, %c0_341] : memref<63x64xf32, #tpu.memory_space<vmem>>, vector<1x64xf32>
    %488 = vector.broadcast %487 : vector<1x64xf32> to vector<16x64xf32>
    %489 = arith.mulf %486, %488 : vector<16x64xf32>
    %490 = arith.addf %485, %489 : vector<16x64xf32>
    %c1_342 = arith.constant 1 : index
    %c5_343 = arith.constant 5 : index
    %491 = vector.load %arg7[%c1_342, %c5_343] : memref<18x80xf32, #tpu.memory_space<vmem>>, vector<16x64xf32>
    %c28_344 = arith.constant 28 : index
    %c0_345 = arith.constant 0 : index
    %492 = vector.load %arg4[%c28_344, %c0_345] : memref<63x64xf32, #tpu.memory_space<vmem>>, vector<1x64xf32>
    %493 = vector.broadcast %492 : vector<1x64xf32> to vector<16x64xf32>
    %494 = arith.mulf %491, %493 : vector<16x64xf32>
    %495 = arith.addf %490, %494 : vector<16x64xf32>
    %c1_346 = arith.constant 1 : index
    %c6_347 = arith.constant 6 : index
    %496 = vector.load %arg7[%c1_346, %c6_347] : memref<18x80xf32, #tpu.memory_space<vmem>>, vector<16x64xf32>
    %c29_348 = arith.constant 29 : index
    %c0_349 = arith.constant 0 : index
    %497 = vector.load %arg4[%c29_348, %c0_349] : memref<63x64xf32, #tpu.memory_space<vmem>>, vector<1x64xf32>
    %498 = vector.broadcast %497 : vector<1x64xf32> to vector<16x64xf32>
    %499 = arith.mulf %496, %498 : vector<16x64xf32>
    %500 = arith.addf %495, %499 : vector<16x64xf32>
    %c1_350 = arith.constant 1 : index
    %c7_351 = arith.constant 7 : index
    %501 = vector.load %arg7[%c1_350, %c7_351] : memref<18x80xf32, #tpu.memory_space<vmem>>, vector<16x64xf32>
    %c30_352 = arith.constant 30 : index
    %c0_353 = arith.constant 0 : index
    %502 = vector.load %arg4[%c30_352, %c0_353] : memref<63x64xf32, #tpu.memory_space<vmem>>, vector<1x64xf32>
    %503 = vector.broadcast %502 : vector<1x64xf32> to vector<16x64xf32>
    %504 = arith.mulf %501, %503 : vector<16x64xf32>
    %505 = arith.addf %500, %504 : vector<16x64xf32>
    %c1_354 = arith.constant 1 : index
    %c8_355 = arith.constant 8 : index
    %506 = vector.load %arg7[%c1_354, %c8_355] : memref<18x80xf32, #tpu.memory_space<vmem>>, vector<16x64xf32>
    %c31_356 = arith.constant 31 : index
    %c0_357 = arith.constant 0 : index
    %507 = vector.load %arg4[%c31_356, %c0_357] : memref<63x64xf32, #tpu.memory_space<vmem>>, vector<1x64xf32>
    %508 = vector.broadcast %507 : vector<1x64xf32> to vector<16x64xf32>
    %509 = arith.mulf %506, %508 : vector<16x64xf32>
    %510 = arith.addf %505, %509 : vector<16x64xf32>
    %c1_358 = arith.constant 1 : index
    %c9_359 = arith.constant 9 : index
    %511 = vector.load %arg7[%c1_358, %c9_359] : memref<18x80xf32, #tpu.memory_space<vmem>>, vector<16x64xf32>
    %c32_360 = arith.constant 32 : index
    %c0_361 = arith.constant 0 : index
    %512 = vector.load %arg4[%c32_360, %c0_361] : memref<63x64xf32, #tpu.memory_space<vmem>>, vector<1x64xf32>
    %513 = vector.broadcast %512 : vector<1x64xf32> to vector<16x64xf32>
    %514 = arith.mulf %511, %513 : vector<16x64xf32>
    %515 = arith.addf %510, %514 : vector<16x64xf32>
    %c1_362 = arith.constant 1 : index
    %c10_363 = arith.constant 10 : index
    %516 = vector.load %arg7[%c1_362, %c10_363] : memref<18x80xf32, #tpu.memory_space<vmem>>, vector<16x64xf32>
    %c33_364 = arith.constant 33 : index
    %c0_365 = arith.constant 0 : index
    %517 = vector.load %arg4[%c33_364, %c0_365] : memref<63x64xf32, #tpu.memory_space<vmem>>, vector<1x64xf32>
    %518 = vector.broadcast %517 : vector<1x64xf32> to vector<16x64xf32>
    %519 = arith.mulf %516, %518 : vector<16x64xf32>
    %520 = arith.addf %515, %519 : vector<16x64xf32>
    %c1_366 = arith.constant 1 : index
    %c11_367 = arith.constant 11 : index
    %521 = vector.load %arg7[%c1_366, %c11_367] : memref<18x80xf32, #tpu.memory_space<vmem>>, vector<16x64xf32>
    %c34_368 = arith.constant 34 : index
    %c0_369 = arith.constant 0 : index
    %522 = vector.load %arg4[%c34_368, %c0_369] : memref<63x64xf32, #tpu.memory_space<vmem>>, vector<1x64xf32>
    %523 = vector.broadcast %522 : vector<1x64xf32> to vector<16x64xf32>
    %524 = arith.mulf %521, %523 : vector<16x64xf32>
    %525 = arith.addf %520, %524 : vector<16x64xf32>
    %c1_370 = arith.constant 1 : index
    %c9_371 = arith.constant 9 : index
    %526 = vector.load %arg7[%c1_370, %c9_371] : memref<18x80xf32, #tpu.memory_space<vmem>>, vector<16x64xf32>
    %c35_372 = arith.constant 35 : index
    %c0_373 = arith.constant 0 : index
    %527 = vector.load %arg4[%c35_372, %c0_373] : memref<63x64xf32, #tpu.memory_space<vmem>>, vector<1x64xf32>
    %528 = vector.broadcast %527 : vector<1x64xf32> to vector<16x64xf32>
    %529 = arith.mulf %526, %528 : vector<16x64xf32>
    %530 = arith.addf %525, %529 : vector<16x64xf32>
    %c1_374 = arith.constant 1 : index
    %c10_375 = arith.constant 10 : index
    %531 = vector.load %arg7[%c1_374, %c10_375] : memref<18x80xf32, #tpu.memory_space<vmem>>, vector<16x64xf32>
    %c36_376 = arith.constant 36 : index
    %c0_377 = arith.constant 0 : index
    %532 = vector.load %arg4[%c36_376, %c0_377] : memref<63x64xf32, #tpu.memory_space<vmem>>, vector<1x64xf32>
    %533 = vector.broadcast %532 : vector<1x64xf32> to vector<16x64xf32>
    %534 = arith.mulf %531, %533 : vector<16x64xf32>
    %535 = arith.addf %530, %534 : vector<16x64xf32>
    %c1_378 = arith.constant 1 : index
    %c11_379 = arith.constant 11 : index
    %536 = vector.load %arg7[%c1_378, %c11_379] : memref<18x80xf32, #tpu.memory_space<vmem>>, vector<16x64xf32>
    %c37_380 = arith.constant 37 : index
    %c0_381 = arith.constant 0 : index
    %537 = vector.load %arg4[%c37_380, %c0_381] : memref<63x64xf32, #tpu.memory_space<vmem>>, vector<1x64xf32>
    %538 = vector.broadcast %537 : vector<1x64xf32> to vector<16x64xf32>
    %539 = arith.mulf %536, %538 : vector<16x64xf32>
    %540 = arith.addf %535, %539 : vector<16x64xf32>
    %c1_382 = arith.constant 1 : index
    %c12_383 = arith.constant 12 : index
    %541 = vector.load %arg7[%c1_382, %c12_383] : memref<18x80xf32, #tpu.memory_space<vmem>>, vector<16x64xf32>
    %c38_384 = arith.constant 38 : index
    %c0_385 = arith.constant 0 : index
    %542 = vector.load %arg4[%c38_384, %c0_385] : memref<63x64xf32, #tpu.memory_space<vmem>>, vector<1x64xf32>
    %543 = vector.broadcast %542 : vector<1x64xf32> to vector<16x64xf32>
    %544 = arith.mulf %541, %543 : vector<16x64xf32>
    %545 = arith.addf %540, %544 : vector<16x64xf32>
    %c1_386 = arith.constant 1 : index
    %c13_387 = arith.constant 13 : index
    %546 = vector.load %arg7[%c1_386, %c13_387] : memref<18x80xf32, #tpu.memory_space<vmem>>, vector<16x64xf32>
    %c39_388 = arith.constant 39 : index
    %c0_389 = arith.constant 0 : index
    %547 = vector.load %arg4[%c39_388, %c0_389] : memref<63x64xf32, #tpu.memory_space<vmem>>, vector<1x64xf32>
    %548 = vector.broadcast %547 : vector<1x64xf32> to vector<16x64xf32>
    %549 = arith.mulf %546, %548 : vector<16x64xf32>
    %550 = arith.addf %545, %549 : vector<16x64xf32>
    %c1_390 = arith.constant 1 : index
    %c14_391 = arith.constant 14 : index
    %551 = vector.load %arg7[%c1_390, %c14_391] : memref<18x80xf32, #tpu.memory_space<vmem>>, vector<16x64xf32>
    %c40_392 = arith.constant 40 : index
    %c0_393 = arith.constant 0 : index
    %552 = vector.load %arg4[%c40_392, %c0_393] : memref<63x64xf32, #tpu.memory_space<vmem>>, vector<1x64xf32>
    %553 = vector.broadcast %552 : vector<1x64xf32> to vector<16x64xf32>
    %554 = arith.mulf %551, %553 : vector<16x64xf32>
    %555 = arith.addf %550, %554 : vector<16x64xf32>
    %c1_394 = arith.constant 1 : index
    %c15_395 = arith.constant 15 : index
    %556 = vector.load %arg7[%c1_394, %c15_395] : memref<18x80xf32, #tpu.memory_space<vmem>>, vector<16x64xf32>
    %c41_396 = arith.constant 41 : index
    %c0_397 = arith.constant 0 : index
    %557 = vector.load %arg4[%c41_396, %c0_397] : memref<63x64xf32, #tpu.memory_space<vmem>>, vector<1x64xf32>
    %558 = vector.broadcast %557 : vector<1x64xf32> to vector<16x64xf32>
    %559 = arith.mulf %556, %558 : vector<16x64xf32>
    %560 = arith.addf %555, %559 : vector<16x64xf32>
    %c2_398 = arith.constant 2 : index
    %c1_399 = arith.constant 1 : index
    %561 = vector.load %arg7[%c2_398, %c1_399] : memref<18x80xf32, #tpu.memory_space<vmem>>, vector<16x64xf32>
    %c42_400 = arith.constant 42 : index
    %c0_401 = arith.constant 0 : index
    %562 = vector.load %arg4[%c42_400, %c0_401] : memref<63x64xf32, #tpu.memory_space<vmem>>, vector<1x64xf32>
    %563 = vector.broadcast %562 : vector<1x64xf32> to vector<16x64xf32>
    %564 = arith.mulf %561, %563 : vector<16x64xf32>
    %565 = arith.addf %560, %564 : vector<16x64xf32>
    %c2_402 = arith.constant 2 : index
    %c2_403 = arith.constant 2 : index
    %566 = vector.load %arg7[%c2_402, %c2_403] : memref<18x80xf32, #tpu.memory_space<vmem>>, vector<16x64xf32>
    %c43_404 = arith.constant 43 : index
    %c0_405 = arith.constant 0 : index
    %567 = vector.load %arg4[%c43_404, %c0_405] : memref<63x64xf32, #tpu.memory_space<vmem>>, vector<1x64xf32>
    %568 = vector.broadcast %567 : vector<1x64xf32> to vector<16x64xf32>
    %569 = arith.mulf %566, %568 : vector<16x64xf32>
    %570 = arith.addf %565, %569 : vector<16x64xf32>
    %c2_406 = arith.constant 2 : index
    %c3_407 = arith.constant 3 : index
    %571 = vector.load %arg7[%c2_406, %c3_407] : memref<18x80xf32, #tpu.memory_space<vmem>>, vector<16x64xf32>
    %c44_408 = arith.constant 44 : index
    %c0_409 = arith.constant 0 : index
    %572 = vector.load %arg4[%c44_408, %c0_409] : memref<63x64xf32, #tpu.memory_space<vmem>>, vector<1x64xf32>
    %573 = vector.broadcast %572 : vector<1x64xf32> to vector<16x64xf32>
    %574 = arith.mulf %571, %573 : vector<16x64xf32>
    %575 = arith.addf %570, %574 : vector<16x64xf32>
    %c2_410 = arith.constant 2 : index
    %c4_411 = arith.constant 4 : index
    %576 = vector.load %arg7[%c2_410, %c4_411] : memref<18x80xf32, #tpu.memory_space<vmem>>, vector<16x64xf32>
    %c45_412 = arith.constant 45 : index
    %c0_413 = arith.constant 0 : index
    %577 = vector.load %arg4[%c45_412, %c0_413] : memref<63x64xf32, #tpu.memory_space<vmem>>, vector<1x64xf32>
    %578 = vector.broadcast %577 : vector<1x64xf32> to vector<16x64xf32>
    %579 = arith.mulf %576, %578 : vector<16x64xf32>
    %580 = arith.addf %575, %579 : vector<16x64xf32>
    %c2_414 = arith.constant 2 : index
    %c5_415 = arith.constant 5 : index
    %581 = vector.load %arg7[%c2_414, %c5_415] : memref<18x80xf32, #tpu.memory_space<vmem>>, vector<16x64xf32>
    %c46_416 = arith.constant 46 : index
    %c0_417 = arith.constant 0 : index
    %582 = vector.load %arg4[%c46_416, %c0_417] : memref<63x64xf32, #tpu.memory_space<vmem>>, vector<1x64xf32>
    %583 = vector.broadcast %582 : vector<1x64xf32> to vector<16x64xf32>
    %584 = arith.mulf %581, %583 : vector<16x64xf32>
    %585 = arith.addf %580, %584 : vector<16x64xf32>
    %c2_418 = arith.constant 2 : index
    %c6_419 = arith.constant 6 : index
    %586 = vector.load %arg7[%c2_418, %c6_419] : memref<18x80xf32, #tpu.memory_space<vmem>>, vector<16x64xf32>
    %c47_420 = arith.constant 47 : index
    %c0_421 = arith.constant 0 : index
    %587 = vector.load %arg4[%c47_420, %c0_421] : memref<63x64xf32, #tpu.memory_space<vmem>>, vector<1x64xf32>
    %588 = vector.broadcast %587 : vector<1x64xf32> to vector<16x64xf32>
    %589 = arith.mulf %586, %588 : vector<16x64xf32>
    %590 = arith.addf %585, %589 : vector<16x64xf32>
    %c2_422 = arith.constant 2 : index
    %c7_423 = arith.constant 7 : index
    %591 = vector.load %arg7[%c2_422, %c7_423] : memref<18x80xf32, #tpu.memory_space<vmem>>, vector<16x64xf32>
    %c48_424 = arith.constant 48 : index
    %c0_425 = arith.constant 0 : index
    %592 = vector.load %arg4[%c48_424, %c0_425] : memref<63x64xf32, #tpu.memory_space<vmem>>, vector<1x64xf32>
    %593 = vector.broadcast %592 : vector<1x64xf32> to vector<16x64xf32>
    %594 = arith.mulf %591, %593 : vector<16x64xf32>
    %595 = arith.addf %590, %594 : vector<16x64xf32>
    %c2_426 = arith.constant 2 : index
    %c5_427 = arith.constant 5 : index
    %596 = vector.load %arg7[%c2_426, %c5_427] : memref<18x80xf32, #tpu.memory_space<vmem>>, vector<16x64xf32>
    %c49_428 = arith.constant 49 : index
    %c0_429 = arith.constant 0 : index
    %597 = vector.load %arg4[%c49_428, %c0_429] : memref<63x64xf32, #tpu.memory_space<vmem>>, vector<1x64xf32>
    %598 = vector.broadcast %597 : vector<1x64xf32> to vector<16x64xf32>
    %599 = arith.mulf %596, %598 : vector<16x64xf32>
    %600 = arith.addf %595, %599 : vector<16x64xf32>
    %c2_430 = arith.constant 2 : index
    %c6_431 = arith.constant 6 : index
    %601 = vector.load %arg7[%c2_430, %c6_431] : memref<18x80xf32, #tpu.memory_space<vmem>>, vector<16x64xf32>
    %c50_432 = arith.constant 50 : index
    %c0_433 = arith.constant 0 : index
    %602 = vector.load %arg4[%c50_432, %c0_433] : memref<63x64xf32, #tpu.memory_space<vmem>>, vector<1x64xf32>
    %603 = vector.broadcast %602 : vector<1x64xf32> to vector<16x64xf32>
    %604 = arith.mulf %601, %603 : vector<16x64xf32>
    %605 = arith.addf %600, %604 : vector<16x64xf32>
    %c2_434 = arith.constant 2 : index
    %c7_435 = arith.constant 7 : index
    %606 = vector.load %arg7[%c2_434, %c7_435] : memref<18x80xf32, #tpu.memory_space<vmem>>, vector<16x64xf32>
    %c51_436 = arith.constant 51 : index
    %c0_437 = arith.constant 0 : index
    %607 = vector.load %arg4[%c51_436, %c0_437] : memref<63x64xf32, #tpu.memory_space<vmem>>, vector<1x64xf32>
    %608 = vector.broadcast %607 : vector<1x64xf32> to vector<16x64xf32>
    %609 = arith.mulf %606, %608 : vector<16x64xf32>
    %610 = arith.addf %605, %609 : vector<16x64xf32>
    %c2_438 = arith.constant 2 : index
    %c8_439 = arith.constant 8 : index
    %611 = vector.load %arg7[%c2_438, %c8_439] : memref<18x80xf32, #tpu.memory_space<vmem>>, vector<16x64xf32>
    %c52_440 = arith.constant 52 : index
    %c0_441 = arith.constant 0 : index
    %612 = vector.load %arg4[%c52_440, %c0_441] : memref<63x64xf32, #tpu.memory_space<vmem>>, vector<1x64xf32>
    %613 = vector.broadcast %612 : vector<1x64xf32> to vector<16x64xf32>
    %614 = arith.mulf %611, %613 : vector<16x64xf32>
    %615 = arith.addf %610, %614 : vector<16x64xf32>
    %c2_442 = arith.constant 2 : index
    %c9_443 = arith.constant 9 : index
    %616 = vector.load %arg7[%c2_442, %c9_443] : memref<18x80xf32, #tpu.memory_space<vmem>>, vector<16x64xf32>
    %c53_444 = arith.constant 53 : index
    %c0_445 = arith.constant 0 : index
    %617 = vector.load %arg4[%c53_444, %c0_445] : memref<63x64xf32, #tpu.memory_space<vmem>>, vector<1x64xf32>
    %618 = vector.broadcast %617 : vector<1x64xf32> to vector<16x64xf32>
    %619 = arith.mulf %616, %618 : vector<16x64xf32>
    %620 = arith.addf %615, %619 : vector<16x64xf32>
    %c2_446 = arith.constant 2 : index
    %c10_447 = arith.constant 10 : index
    %621 = vector.load %arg7[%c2_446, %c10_447] : memref<18x80xf32, #tpu.memory_space<vmem>>, vector<16x64xf32>
    %c54_448 = arith.constant 54 : index
    %c0_449 = arith.constant 0 : index
    %622 = vector.load %arg4[%c54_448, %c0_449] : memref<63x64xf32, #tpu.memory_space<vmem>>, vector<1x64xf32>
    %623 = vector.broadcast %622 : vector<1x64xf32> to vector<16x64xf32>
    %624 = arith.mulf %621, %623 : vector<16x64xf32>
    %625 = arith.addf %620, %624 : vector<16x64xf32>
    %c2_450 = arith.constant 2 : index
    %c11_451 = arith.constant 11 : index
    %626 = vector.load %arg7[%c2_450, %c11_451] : memref<18x80xf32, #tpu.memory_space<vmem>>, vector<16x64xf32>
    %c55_452 = arith.constant 55 : index
    %c0_453 = arith.constant 0 : index
    %627 = vector.load %arg4[%c55_452, %c0_453] : memref<63x64xf32, #tpu.memory_space<vmem>>, vector<1x64xf32>
    %628 = vector.broadcast %627 : vector<1x64xf32> to vector<16x64xf32>
    %629 = arith.mulf %626, %628 : vector<16x64xf32>
    %630 = arith.addf %625, %629 : vector<16x64xf32>
    %c2_454 = arith.constant 2 : index
    %c9_455 = arith.constant 9 : index
    %631 = vector.load %arg7[%c2_454, %c9_455] : memref<18x80xf32, #tpu.memory_space<vmem>>, vector<16x64xf32>
    %c56_456 = arith.constant 56 : index
    %c0_457 = arith.constant 0 : index
    %632 = vector.load %arg4[%c56_456, %c0_457] : memref<63x64xf32, #tpu.memory_space<vmem>>, vector<1x64xf32>
    %633 = vector.broadcast %632 : vector<1x64xf32> to vector<16x64xf32>
    %634 = arith.mulf %631, %633 : vector<16x64xf32>
    %635 = arith.addf %630, %634 : vector<16x64xf32>
    %c2_458 = arith.constant 2 : index
    %c10_459 = arith.constant 10 : index
    %636 = vector.load %arg7[%c2_458, %c10_459] : memref<18x80xf32, #tpu.memory_space<vmem>>, vector<16x64xf32>
    %c57_460 = arith.constant 57 : index
    %c0_461 = arith.constant 0 : index
    %637 = vector.load %arg4[%c57_460, %c0_461] : memref<63x64xf32, #tpu.memory_space<vmem>>, vector<1x64xf32>
    %638 = vector.broadcast %637 : vector<1x64xf32> to vector<16x64xf32>
    %639 = arith.mulf %636, %638 : vector<16x64xf32>
    %640 = arith.addf %635, %639 : vector<16x64xf32>
    %c2_462 = arith.constant 2 : index
    %c11_463 = arith.constant 11 : index
    %641 = vector.load %arg7[%c2_462, %c11_463] : memref<18x80xf32, #tpu.memory_space<vmem>>, vector<16x64xf32>
    %c58_464 = arith.constant 58 : index
    %c0_465 = arith.constant 0 : index
    %642 = vector.load %arg4[%c58_464, %c0_465] : memref<63x64xf32, #tpu.memory_space<vmem>>, vector<1x64xf32>
    %643 = vector.broadcast %642 : vector<1x64xf32> to vector<16x64xf32>
    %644 = arith.mulf %641, %643 : vector<16x64xf32>
    %645 = arith.addf %640, %644 : vector<16x64xf32>
    %c2_466 = arith.constant 2 : index
    %c12_467 = arith.constant 12 : index
    %646 = vector.load %arg7[%c2_466, %c12_467] : memref<18x80xf32, #tpu.memory_space<vmem>>, vector<16x64xf32>
    %c59_468 = arith.constant 59 : index
    %c0_469 = arith.constant 0 : index
    %647 = vector.load %arg4[%c59_468, %c0_469] : memref<63x64xf32, #tpu.memory_space<vmem>>, vector<1x64xf32>
    %648 = vector.broadcast %647 : vector<1x64xf32> to vector<16x64xf32>
    %649 = arith.mulf %646, %648 : vector<16x64xf32>
    %650 = arith.addf %645, %649 : vector<16x64xf32>
    %c2_470 = arith.constant 2 : index
    %c13_471 = arith.constant 13 : index
    %651 = vector.load %arg7[%c2_470, %c13_471] : memref<18x80xf32, #tpu.memory_space<vmem>>, vector<16x64xf32>
    %c60_472 = arith.constant 60 : index
    %c0_473 = arith.constant 0 : index
    %652 = vector.load %arg4[%c60_472, %c0_473] : memref<63x64xf32, #tpu.memory_space<vmem>>, vector<1x64xf32>
    %653 = vector.broadcast %652 : vector<1x64xf32> to vector<16x64xf32>
    %654 = arith.mulf %651, %653 : vector<16x64xf32>
    %655 = arith.addf %650, %654 : vector<16x64xf32>
    %c2_474 = arith.constant 2 : index
    %c14_475 = arith.constant 14 : index
    %656 = vector.load %arg7[%c2_474, %c14_475] : memref<18x80xf32, #tpu.memory_space<vmem>>, vector<16x64xf32>
    %c61_476 = arith.constant 61 : index
    %c0_477 = arith.constant 0 : index
    %657 = vector.load %arg4[%c61_476, %c0_477] : memref<63x64xf32, #tpu.memory_space<vmem>>, vector<1x64xf32>
    %658 = vector.broadcast %657 : vector<1x64xf32> to vector<16x64xf32>
    %659 = arith.mulf %656, %658 : vector<16x64xf32>
    %660 = arith.addf %655, %659 : vector<16x64xf32>
    %c2_478 = arith.constant 2 : index
    %c15_479 = arith.constant 15 : index
    %661 = vector.load %arg7[%c2_478, %c15_479] : memref<18x80xf32, #tpu.memory_space<vmem>>, vector<16x64xf32>
    %c62_480 = arith.constant 62 : index
    %c0_481 = arith.constant 0 : index
    %662 = vector.load %arg4[%c62_480, %c0_481] : memref<63x64xf32, #tpu.memory_space<vmem>>, vector<1x64xf32>
    %663 = vector.broadcast %662 : vector<1x64xf32> to vector<16x64xf32>
    %664 = arith.mulf %661, %663 : vector<16x64xf32>
    %665 = arith.addf %660, %664 : vector<16x64xf32>
    %c0_482 = arith.constant 0 : index
    %c0_483 = arith.constant 0 : index
    %c0_484 = arith.constant 0 : index
    %666 = vector.load %arg1[%c0_482, %c0_483, %c0_484] : memref<1x16x64xf32, #tpu.memory_space<vmem>>, vector<1x16x64xf32>
    %667 = vector.shape_cast %666 : vector<1x16x64xf32> to vector<16x64xf32>
    %668 = arith.addf %665, %667 : vector<16x64xf32>
    %c0_485 = arith.constant 0 : index
    %c0_486 = arith.constant 0 : index
    %c0_487 = arith.constant 0 : index
    %669 = vector.load %arg6[%c0_485, %c0_486, %c0_487] : memref<1x16x64xf32, #tpu.memory_space<vmem>>, vector<1x16x64xf32>
    %670 = vector.shape_cast %669 : vector<1x16x64xf32> to vector<16x64xf32>
    %671 = vector.shape_cast %668 : vector<16x64xf32> to vector<1x16x64xf32>
    tpu.vector_store %arg6[%c0_485, %c0_486, %c0_487], %671 {strides = array<i32>} : memref<1x16x64xf32, #tpu.memory_space<vmem>>, vector<1x16x64xf32>,
    return
  }
  func.func @transform_0(%arg0: i32) -> (i32, i32, i32) {
    %c0_i32 = arith.constant 0 : i32
    %c0_i32_0 = arith.constant 0 : i32
    %c0_i32_1 = arith.constant 0 : i32
    return %arg0, %c0_i32, %c0_i32_0 : i32, i32, i32
  }
  func.func @transform_1(%arg0: i32) -> (i32, i32) {
    %c0_i32 = arith.constant 0 : i32
    %c0_i32_0 = arith.constant 0 : i32
    %c0_i32_1 = arith.constant 0 : i32
    return %c0_i32, %c0_i32_0 : i32, i32
  }
  func.func @transform_2(%arg0: i32) -> (i32, i32) {
    %c0_i32 = arith.constant 0 : i32
    %c0_i32_0 = arith.constant 0 : i32
    %c0_i32_1 = arith.constant 0 : i32
    return %c0_i32, %c0_i32_0 : i32, i32
  }
  func.func @transform_3(%arg0: i32) -> (i32, i32) {
    %c0_i32 = arith.constant 0 : i32
    %c0_i32_0 = arith.constant 0 : i32
    %c0_i32_1 = arith.constant 0 : i32
    return %c0_i32, %c0_i32_0 : i32, i32
  }
  func.func @transform_4(%arg0: i32) -> (i32, i32) {
    %c0_i32 = arith.constant 0 : i32
    %c0_i32_0 = arith.constant 0 : i32
    %c0_i32_1 = arith.constant 0 : i32
    return %c0_i32, %c0_i32_0 : i32, i32
  }
  func.func @transform_5(%arg0: i32) -> (i32, i32, i32) {
    %c0_i32 = arith.constant 0 : i32
    %c0_i32_0 = arith.constant 0 : i32
    %c0_i32_1 = arith.constant 0 : i32
    return %arg0, %c0_i32, %c0_i32_0 : i32, i32, i32
  }
}

</mosaic_0001>

<bundles_post_ra>
// kernel: tpu_custom_call.1
= control target key start
LH: loop header
LB: loop body
LE: loop exit
PB: predicated region body
PF: predicated region fallthrough
CT: control target
= control target key end

     0   :  { %s5113_s0 = inlined_call_operand.hbm [shape: f32[2,16,64], index: 0, kind: input, shape index: {}]   ;;  %s5114_s1 = inlined_call_operand.hbm [shape: f32[63,64], index: 1, kind: input, shape index: {}]   ;;  %s5115_s2 = inlined_call_operand.vmem [shape: f32[1,64], index: 2, kind: input, shape index: {}]   ;;  %s5116_s3 = inlined_call_operand.hbm [shape: f32[63,64], index: 3, kind: input, shape index: {}]   ;;  %s5117_s4 = inlined_call_operand.vmem [shape: f32[1,64], index: 4, kind: input, shape index: {}]   ;;  %s5118_s5 = inlined_call_operand.hbm [shape: f32[2,16,64], index: 5, kind: output, shape index: {}]  }
   0x1   :  { %5206 = sst [smem:[#allocation94_spill]] %s5113_s0 }
   0x2   :  { %5207 = sst [smem:[#allocation95_spill]] %s5114_s1 }
   0x3   :  { %5208 = sst [smem:[#allocation96_spill]] %s5115_s2 }
   0x4   :  { %5209 = sst [smem:[#allocation97_spill]] %s5116_s3 }
   0x5   :  { %5210 = sst [smem:[#allocation98_spill]] %s5117_s4 }
   0x6   :  { %5211 = sst [smem:[#allocation99_spill]] %s5118_s5 }
   0x7   :  { %10 = vsyncpa [#allocation4], 0 }
   0x8   :  { %12 = vsyncpa [#allocation4 + $0x1], 0 }
   0x9   :  { %13 = vsyncpa [#allocation7], 0 }
   0xa   :  { %14 = vsyncpa [#allocation5], 0 }
   0xb   :  { %16 = vsyncpa [#allocation5 + $0x1], 0  ;;  %s3598_s18 = smov 0   ;;  %s3600_s19 = smov 0  }
   0xc   :  { %s3602_s20 = smov 0   ;;  %s3604_s21 = smov 0  }
   0xd LB: > { %5212 = sst [smem:[#allocation13_spill]] %s3515_s18  ;;  %s3619_s22 = sadd.s32 4294967295, %s3527_s21   ;;  %s3527_s21 = sphi %s3604_s21, %s5446_s21   ;;  %s3523_s20 = sphi %s3602_s20, %s5449_s20   ;;  %s3519_s19 = sphi %s3600_s19, %s5448_s19   ;;  %s3515_s18 = sphi %s3598_s18, %s5447_s18  }
   0xe   : > { %5213 = sst [smem:[#allocation14_spill]] %s3519_s19  ;;  %s3129_s23 = sadd.s32 4294967294, %s3527_s21  }
   0xf   : > { %5214 = sst [smem:[#allocation15_spill]] %s3523_s20  ;;  %p42_p0 = scmp.ne.s32.totalorder %s3519_s19, %s3515_s18 }
  0x10   : > { %5215 = sst [smem:[#allocation16_spill]] %s3527_s21  ;;  %p5119_p1 = scmp.eq.s32.totalorder %s3619_s22, 0 }
  0x11   : > { %5216 = sst [smem:[#allocation17_spill]] %s3619_s22  ;;  %p150_p2 = scmp.eq.s32.totalorder %s3619_s22, 1 }
  0x12   : > { %p156_p3 = scmp.eq.s32.totalorder %s3129_s23, 1  ;;  %p3628_p4 = por %p5119_p1, %p42_p0 }
  0x13   : > { %p3130_p5 = scmp.ge.s32.totalorder %s3527_s21, 1  ;;  %p163_p7 = scmp.lt.s32.totalorder %s3527_s21, 3 }
  0x14   : > { %s5217_s24 = scalar_select %p3628_p4, 1, 0 }
  0x15   : > { %p3633_p6 = por %p156_p3, %p42_p0  ;;  %p3638_p8 = pnand %p3130_p5, %p163_p7 }
  0x16   : > { %s3529_s27 = smov [#allocation6]   ;;  %s3530_s30 = smov [#allocation8]  }
  0x17   : > { %s5218_s25 = scalar_select %p3633_p6, 1, 0 }
  0x18   : > { %s5220_s26 = scalar_select %p3638_p8, 1, 0 }
  0x19   : > { %5219 = sst [smem:[#allocation18_spill]] %s5218_s25  ;;  %s175_s28 = sshll.u32 %s3529_s27, 4  ;;  %s176_s28 = int_to_ptr.vmem [resolvable:$true] %s175_s28 }
  0x1a   : > { %p3289_p9 = pneg %p3638_p8  ;;  %s191_s6 = sshll.u32 %s3530_s30, 4  ;;  %s192_s6 = int_to_ptr.vmem [resolvable:$true] %s191_s6 }
  0x1b   : > { %s3390_s7 = scalar_lea.vmem %s176_s28, 1024  ;;  %p3398_p5 = scmp.lt.s32.totalorder %s176_s28, %s176_s28 }
  0x1c   : > { %p3647_p11 = pnand %p3289_p9, %p5119_p1  ;;  %p3391_p13 = scmp.ne.s32.totalorder %s176_s28, %s3390_s7 }
  0x1d   : > { %p3399_p7 = scmp.lt.s32.totalorder %s3390_s7, %s3390_s7 }
  0x1e   : > { %p3381_p12 = pneg %p3647_p11 }
  0x1f   : > { %p3400_p10 = por %p3399_p7, %p3398_p5 }
  0x20   : > { %p3393_p0 = pnand %p3391_p13, %p3381_p12 }
  0x22   : > { %p3394_p3 = pneg %p3393_p0 }
  0x24   : > { %p3401_p9 = pnand %p3400_p10, %p3394_p3 }
  0x26   : > { %3404 = shalt.err (!%p3401_p9)
}
  0x27   : > { %s5120_s8 = smov 128   ;;  %s3532_s9 = smov 8  }
  0x28   : > { %s5222_s1 = sld [smem:[#allocation95_spill]]  ;;  %s3416_s12 = scalar_lea.vmem %s192_s6, 1024 }
  0x29   : > { %p3417_p13 = scmp.ne.s32.totalorder %s192_s6, %s3416_s12  ;;  %p3424_p10 = scmp.lt.s32.totalorder %s192_s6, %s192_s6 }
  0x2a   : > { %p3425_p3 = scmp.lt.s32.totalorder %s3416_s12, %s3416_s12 }
  0x2b   : > { %p3419_p0 = pnand %p3417_p13, %p3381_p12 }
  0x2c   : > { %p3426_p7 = por %p3425_p3, %p3424_p10 }
  0x2d   : > { %p3420_p5 = pneg %p3419_p0 }
  0x2e   : > { %3292 = dma.hbm_to_vmem [thread:$0]  (!%p3647_p11), %s5222_s1, 1024, %s176_s28, [#allocation7], %s5120_s8, %s5120_s8, %s3532_s9  }
  0x2f   : > { %p3427_p9 = pnand %p3426_p7, %p3420_p5 }
  0x31   : > { %3430 = shalt.err (!%p3427_p9)
}
  0x32   : > { %s5223_s3 = sld [smem:[#allocation97_spill]]  ;;  %s3676_s15 = sadd.s32 1, %s3527_s21  }
  0x33   : > { %5224 = sst [smem:[#allocation19_spill]] %s3676_s15  ;;  %s29_s16 = sadd.s32 1, %s3523_s20 }
  0x34   : > { %s26_s17 = ssub.s32 %s3527_s21, %s3676_s15  ;;  %p36_p12 = scmp.ne.s32.totalorder %s3523_s20, %s3519_s19 }
  0x35   : > { %p27_p13 = scmp.eq.s32.totalorder %s26_s17, 0  ;;  %p37_p0 = scmp.eq.s32.totalorder %s3527_s21, 0 }
  0x36   : > { %p3686_p5 = por %p150_p2, %p36_p12  ;;  %p3306_p10 = scmp.lt.s32.totalorder %s3527_s21, 2 }
  0x37   : > { %s3692_s27 = scalar_select %p27_p13, %s3523_s20, %s29_s16  }
  0x38   : > { %3295 = dma.hbm_to_vmem [thread:$0]  (!%p3647_p11), %s5223_s3, 1024, %s192_s6, [#allocation7], %s5120_s8, %s5120_s8, %s3532_s9  }
  0x39   : > { %s5225_s23 = scalar_select %p3686_p5, 1, 0 }
  0x3a   : > { %5227 = sst [smem:[#allocation21_spill]] %s3692_s27  ;;  %p38_p3 = por %p37_p0, %p36_p12 }
  0x3b   : > { %5226 = sst [smem:[#allocation20_spill]] %s5225_s23  ;;  %s208_s28 = sand.u32 1, %s3523_s20  }
  0x3c   : > { %s3134_s29 = sshll.u32 %s208_s28, 4  ;;  %s3275_s30 = sshll.u32 %s3527_s21, 8 }
  0x3d   : > { %s5228_s0 = sld [smem:[#allocation94_spill]]  ;;  %s212_s11 = scalar_lea.vmem [#allocation3], %s3134_s29 }
  0x3e   : > { %s219_s12 = sshll.u32 %s212_s11, 4  ;;  %p3703_p2 = pnand %p3306_p10, %p38_p3  ;;  %s3701_s12 = int_to_ptr.vmem [resolvable:$true] %s219_s12 }
  0x3f   : > { %s3707_s14 = scalar_lea.sflag [#allocation4], %s208_s28 }
  0x40   : > { %p3433_p7 = pneg %p3703_p2 }
  0x43   : > { %s3699_s10 = scalar_lea.hbm %s5228_s0, %s3275_s30  ;;  %s3436_s29 = scalar_lea.hbm %s5228_s0, 512 }
  0x44   : > { %s3431_s16 = scalar_lea.hbm %s3699_s10, 256  ;;  %p3437_p13 = scmp.lt.s32.totalorder %s3699_s10, %s5228_s0 }
  0x45   : > { %p3432_p11 = scmp.ne.s32.totalorder %s3699_s10, %s3431_s16  ;;  %p3438_p0 = scmp.lt.s32.totalorder %s3436_s29, %s3431_s16 }
  0x47   : > { %p3434_p9 = pnand %p3433_p7, %p3432_p11  ;;  %p3439_p10 = por %p3438_p0, %p3437_p13 }
  0x49   : > { %p3435_p12 = pneg %p3434_p9 }
  0x4b   : > { %p3440_p3 = pnand %p3439_p10, %p3435_p12 }
  0x4d   : > { %3443 = shalt.err (!%p3440_p3)
}
  0x4e   : > { %s3444_s28 = scalar_lea.vmem %s3701_s12, 256  ;;  %s3533_s11 = smov [#allocation3]  }
  0x4f   : > { %p3445_p1 = scmp.ne.s32.totalorder %s3701_s12, %s3444_s28  ;;  %s3449_s8 = sshll.u32 %s3533_s11, 4  ;;  %s3450_s8 = int_to_ptr.vmem [resolvable:$false] %s3449_s8 }
  0x50   : > { %s3451_s17 = scalar_lea.vmem %s3450_s8, 512  ;;  %p3452_p9 = scmp.lt.s32.totalorder %s3701_s12, %s3450_s8 }
  0x51   : > { %p3447_p6 = pnand %p3445_p1, %p3433_p7  ;;  %p3453_p5 = scmp.lt.s32.totalorder %s3451_s17, %s3444_s28 }
  0x53   : > { %p3448_p11 = pneg %p3447_p6  ;;  %p3454_p4 = por %p3453_p5, %p3452_p9 }
  0x55   : > { %p3455_p8 = pnand %p3454_p4, %p3448_p11 }
  0x57   : > { %3458 = shalt.err (!%p3455_p8)
}
  0x58   : > { %s5230_s16 = smov 128   ;;  %p5231_p1 = scmp.ne.s32.totalorder %s5220_s26, 0 }
  0x59   : > { %3299 = dma.hbm_to_vmem [thread:$0]  (!%p3703_p2), %s3699_s10, 256, %s3701_s12, %s3707_s14, %s5230_s16, %s5230_s16, %s3532_s9  }
  0x5a   : > { %231 = sbr.rel (%p5231_p1) target bundleno = 7200 (0x1c20), region = 40 }
  0x5f   : > { %s3734_s30 = sand.u32 1, %s3519_s19   ;;  %p5234_p4 = scmp.ne.s32.totalorder %s5217_s24, 0 }
  0x60   : > { %5232 = sst [smem:[#allocation22_spill]] %s3734_s30  ;;  %s5124_s8 = sshll.u32 %s3734_s30, 4 }
  0x61   : > { %s234_s29 = scalar_lea.sflag [#allocation4], %s3734_s30  ;;  %s3740_s13 = scalar_lea.vmem [#allocation3], %s5124_s8 }
  0x62   : > { %5233 = sst [smem:[#allocation23_spill]] %s3740_s13 }
  0x63   : > { %3502 = dma.done.wait (%p5234_p4), %s234_s29, 256  }
  0x64   : > { %3504 = vsyncadd (%p5234_p4), %s234_s29, 4294967040  ;;  %p5235_p6 = scmp.eq.s32.totalorder %s3619_s22, 0 }
  0x66   : > { %3506 = dma.done.wait (%p5235_p6), [#allocation7], 2048   ;;  %p5236_p8 = pmov %p5235_p6 }
  0x67   : > { %vm272_vm0 = vcmask 31744   ;;  %vm277_vm1 = vcmask 654944   ;;  %v3534_v0 = vmov 0.0   ;;  %vm275_vm2 = vcmask 25600   ;;  %v3751_v1 = vld [vmem:[%s3740_s13] sm:$0xff]  ;;  %s5125_s24 = smov 16  }
  0x68   : > { %3508 = vsyncadd (%p5236_p8), [#allocation7], 4294965248  ;;  %273 = vst.msk [vmem:[#allocation2] sm:$0xff] %vm272_vm0, %v3534_v0  ;;  %vm280_vm3 = vcmask 648800   ;;  %298 = vrot.lane.b32.xlu1 %v3751_v1, %s5125_s24  ;;  %s5145_s26 = smov 8   ;;  %v3758_v2 = vld [vmem:[%s3740_s13 + $0x8] sm:$0xff] }
  0x69   : > { %274 = vst.msk [vmem:[#allocation2 + $0x8] sm:$0xff] %vm272_vm0, %v3534_v0  ;;  %286 = vrot.lane.b32.xlu0 %v3751_v1, %s5145_s26  ;;  %v3144_v3 = vld [vmem:[#allocation6 + $0x1] ss:$0 sm:$0xff]  ;;  %v3143_v4 = vld [vmem:[#allocation6] ss:$0 sm:$0xff]  ;;  %s5129_s9 = smov 2  }
  0x6a   : > { %278 = vst.msk [vmem:[#allocation2] sm:$0xff] %vm277_vm1, %v3534_v0  ;;  %279 = vst.msk [vmem:[#allocation2 + $0x8] sm:$0xff] %vm277_vm1, %v3534_v0  ;;  %s5131_s10 = smov 1   ;;  %v3146_v5 = vld [vmem:[#allocation6 + $0x3] ss:$0 sm:$0xff]  ;;  %s5153_s12 = smov 4  }
  0x6b   : > { %276 = vst.msk [vmem:[#allocation2 + $0x10] sm:$0x3] %vm275_vm2, %v3534_v0  ;;  %v3145_v6 = vld [vmem:[#allocation6 + $0x2] ss:$0 sm:$0xff]  ;;  %s5155_s14 = smov 3   ;;  %s5149_s6 = smov 6  }
  0x6c   : > { %281 = vst.msk [vmem:[#allocation2 + $0x10] sm:$0x3] %vm280_vm3, %v3534_v0  ;;  %300 = vrot.lane.b32.xlu1 %v3758_v2, %s5125_s24  ;;  %v3148_v7 = vld [vmem:[#allocation6 + $0x5] ss:$0 sm:$0xff]  ;;  %v3147_v8 = vld [vmem:[#allocation6 + $0x4] ss:$0 sm:$0xff] }
  0x6d   : > { %288 = vrot.lane.b32.xlu0 %v3758_v2, %s5145_s26  ;;  %s5151_s7 = smov 5   ;;  %v3150_v9 = vld [vmem:[#allocation6 + $0x7] ss:$0 sm:$0xff]  ;;  %v3149_v10 = vld [vmem:[#allocation6 + $0x6] ss:$0 sm:$0xff]  ;;  %s5147_s28 = smov 7  }
  0x6e   : > { %v3152_v11 = vld [vmem:[#allocation6 + $0x9] ss:$0 sm:$0xff]  ;;  %v3151_v12 = vld [vmem:[#allocation6 + $0x8] ss:$0 sm:$0xff]  ;;  %v3154_v13 = vld [vmem:[#allocation6 + $0xb] ss:$0 sm:$0xff] }
  0x6f   : > { %v3153_v14 = vld [vmem:[#allocation6 + $0xa] ss:$0 sm:$0xff]  ;;  %s5143_s11 = smov 9   ;;  %v3156_v15 = vld [vmem:[#allocation6 + $0xd] ss:$0 sm:$0xff]  ;;  %s5141_s17 = smov 11  }
  0x70   : > { %349 = vrot.lane.b32.xlu1 %v3144_v3, %s5129_s9  ;;  %v3155_v16 = vld [vmem:[#allocation6 + $0xc] ss:$0 sm:$0xff]  ;;  %s5127_s16 = smov 10   ;;  %v3158_v17 = vld [vmem:[#allocation6 + $0xf] ss:$0 sm:$0xff]  ;;  %s5139_s29 = smov 12  }
  0x71   : > { %328 = vrot.lane.b32.xlu0 %v3143_v4, %s5131_s10  ;;  %v3157_v18 = vld [vmem:[#allocation6 + $0xe] ss:$0 sm:$0xff]  ;;  %v3160_v19 = vld [vmem:[#allocation6 + $0x11] ss:$0 sm:$0xff]  ;;  %v3159_v20 = vld [vmem:[#allocation6 + $0x10] ss:$0 sm:$0xff] }
  0x72   : > { %v3162_v21 = vld [vmem:[#allocation6 + $0x13] ss:$0 sm:$0xff]  ;;  %v3161_v22 = vld [vmem:[#allocation6 + $0x12] ss:$0 sm:$0xff]  ;;  %s5135_s8 = smov 14   ;;  %s5137_s24 = smov 13  }
  0x73   : > { %v3164_v23 = vld [vmem:[#allocation6 + $0x15] ss:$0 sm:$0xff]  ;;  %v3163_v24 = vld [vmem:[#allocation6 + $0x14] ss:$0 sm:$0xff]  ;;  %v3165_v25 = vld [vmem:[#allocation6 + $0x16] ss:$0 sm:$0xff] }
  0x74   : > { %391 = vrot.lane.b32.xlu1 %v3146_v5, %s5153_s12  ;;  %vm292_vm4 = vcmask 588864   ;;  %vm295_vm5 = vcmask 64544   ;;  %vm304_vm6 = vcmask 622144   ;;  %vm308_vm7 = vcmask 647168   ;;  %s5179_s12 = smov 114   ;;  %s5277_s0 = smov 14  }
  0x75   : > { %370 = vrot.lane.b32.xlu0 %v3145_v6, %s5155_s14  ;;  %s5183_s14 = smov 115   ;;  %s5280_s1 = smov 114   ;;  %vm3020_vm10 = vcmask 523264  }
  0x76   : > { %s5281_s3 = smov 15   ;;  %s5284_s27 = smov 113  }
  0x77   : > { %s5285_s20 = smov 1   ;;  %s5288_s19 = smov 127  }
  0x78   : > { %433 = vrot.lane.b32.xlu1 %v3148_v7, %s5149_s6  ;;  %s5289_s15 = smov 2   ;;  %s5292_s21 = smov 126  }
  0x79   : > { %412 = vrot.lane.b32.xlu0 %v3147_v8, %s5151_s7  ;;  %s5295_s25 = smov 125   ;;  %s5298_s18 = smov 124  }
  0x7a   : > { %s5301_s5 = smov 123   ;;  %s5304_s23 = smov 122  }
  0x7b   : > { %s5307_s30 = smov 121   ;;  %s5316_s13 = smov 120  }
  0x7c   : > { %475 = vrot.lane.b32.xlu1 %v3150_v9, %s5151_s7  ;;  %s5157_s7 = smov 116   ;;  %s5319_s22 = smov 119  }
  0x7d   : > { %454 = vrot.lane.b32.xlu0 %v3149_v10, %s5147_s28  ;;  %s5324_s4 = smov 117   ;;  %s5337_s2 = sld [smem:[#allocation96_spill]] }
  0x80   : > { %517 = vrot.lane.b32.xlu1 %v3152_v11, %s5147_s28  ;;  %s5185_s28 = smov 117  }
  0x81   : > { %496 = vrot.lane.b32.xlu0 %v3151_v12, %s5149_s6  ;;  %s5161_s6 = smov 118  }
  0x84   : > { %559 = vrot.lane.b32.xlu1 %v3154_v13, %s5143_s11 }
  0x85   : > { %538 = vrot.lane.b32.xlu0 %v3153_v14, %s5145_s26  ;;  %s5177_s26 = smov 120  }
  0x88   : > { %601 = vrot.lane.b32.xlu1 %v3156_v15, %s5141_s17 }
  0x89   : > { %580 = vrot.lane.b32.xlu0 %v3155_v16, %s5127_s16 }
  0x8c   : > { %643 = vrot.lane.b32.xlu1 %v3158_v17, %s5127_s16  ;;  %s5133_s16 = smov 15  }
  0x8d   : > { %622 = vrot.lane.b32.xlu0 %v3157_v18, %s5143_s11  ;;  %s5181_s11 = smov 119  }
  0x90   : > { %685 = vrot.lane.b32.xlu1 %v3160_v19, %s5139_s29  ;;  %s5171_s29 = smov 123  }
  0x91   : > { %664 = vrot.lane.b32.xlu0 %v3159_v20, %s5141_s17  ;;  %s5175_s17 = smov 121  }
  0x94   : > { %727 = vrot.lane.b32.xlu1 %v3162_v21, %s5135_s8  ;;  %s5165_s8 = smov 125  }
  0x95   : > { %706 = vrot.lane.b32.xlu0 %v3161_v22, %s5137_s24  ;;  %s5173_s24 = smov 122  }
  0x98   : > { %771 = vrot.lane.b32.xlu1 %v3164_v23, %s5131_s10  ;;  %s5159_s10 = smov 127  }
  0x99   : > { %748 = vrot.lane.b32.xlu0 %v3163_v24, %s5133_s16  ;;  %s5169_s16 = smov 124  }
  0x9d   : > { %792 = vrot.lane.b32.xlu0 %v3165_v25, %s5129_s9  ;;  %s5163_s9 = smov 126  }
  0xda   : > { %v299_v26 = vpop.permute.xlu1 %298 }
  0xdb   : > { %v287_v27 = vpop.permute.xlu0 %286 }
  0xdc   : > { %293 = vst.msk [vmem:[#allocation2 + $0x1] sm:$0xff] %vm292_vm4, %v287_v27 }
  0xdd   : > { %296 = vst.msk [vmem:[#allocation2 + $0x1] sm:$0xff] %vm295_vm5, %v3751_v1 }
  0xde   : > { %305 = vst.msk [vmem:[#allocation2 + $0x1] sm:$0xff] %vm304_vm6, %v299_v26  ;;  %v301_v28 = vpop.permute.xlu1 %300 }
  0xdf   : > { %v289_v29 = vpop.permute.xlu0 %288 }
  0xe0   : > { %294 = vst.msk [vmem:[#allocation2 + $0x9] sm:$0xff] %vm292_vm4, %v289_v29 }
  0xe1   : > { %297 = vst.msk [vmem:[#allocation2 + $0x9] sm:$0xff] %vm295_vm5, %v3758_v2 }
  0xe2   : > { %306 = vst.msk [vmem:[#allocation2 + $0x9] sm:$0xff] %vm304_vm6, %v301_v28  ;;  %v3795_v30 = vpop.permute.xlu1 %349 }
  0xe3   : > { %v3797_v31 = vpop.permute.xlu0 %328 }
  0xe5   : > { %v307_v32 = vld [vmem:[#allocation2 + $0x2] sm:$0x1] }
  0xe6   : > { %309 = vst.msk [vmem:[#allocation2] sm:$0x1] %vm308_vm7, %v307_v32  ;;  %v3800_v33 = vpop.permute.xlu1 %391  ;;  %v3904_v15 = vld [vmem:[#allocation2 + $0x1] sm:$0xff] }
  0xe7   : > { %v3802_v34 = vpop.permute.xlu0 %370 }
  0xe9   : > { %v310_v35 = vld [vmem:[#allocation2 + $0xf] sm:$0x1] }
  0xea   : > { %v3804_v36 = vld [vmem:[#allocation2 + $0x8] sm:$0xff]  ;;  %311 = vst.msk [vmem:[#allocation2 + $0x11] sm:$0x1] %vm308_vm7, %v310_v35  ;;  %v3811_v39 = vpop.permute.xlu1 %433 }
  0xeb   : > { %v353_v37 = vmul.f32 %v3795_v30, %v3804_v36  ;;  %v332_v38 = vmul.f32 %v3797_v31, %v3804_v36  ;;  %v3813_v40 = vpop.permute.xlu0 %412  ;;  %v395_v41 = vmul.f32 %v3800_v33, %v3804_v36  ;;  %v374_v42 = vmul.f32 %v3802_v34, %v3804_v36  ;;  %v3898_v11 = vld [vmem:[#allocation2 + $0x9] sm:$0xff] }
  0xec   : > { %v437_v45 = vmul.f32 %v3811_v39, %v3804_v36  ;;  %v416_v46 = vmul.f32 %v3813_v40, %v3804_v36 }
  0xed   : > { %358 = vrot.lane.b32.xlu1 %v353_v37, %s5163_s9  ;;  %337 = vrot.lane.b32.xlu0 %v332_v38, %s5159_s10  ;;  %v320_v17 = vld [vmem:[#allocation2] sm:$0xff] }
  0xee   : > { %v3821_v43 = vpop.permute.xlu1 %475  ;;  %v331_v19 = vmul.f32 %v3797_v31, %v320_v17  ;;  %v352_v20 = vmul.f32 %v3795_v30, %v320_v17  ;;  %v373_v21 = vmul.f32 %v3802_v34, %v320_v17  ;;  %v394_v22 = vmul.f32 %v3800_v33, %v320_v17 }
  0xef   : > { %v3823_v44 = vpop.permute.xlu0 %454  ;;  %v479_v49 = vmul.f32 %v3821_v43, %v3804_v36  ;;  %v415_v23 = vmul.f32 %v3813_v40, %v320_v17  ;;  %v436_v24 = vmul.f32 %v3811_v39, %v320_v17  ;;  %v478_v26 = vmul.f32 %v3821_v43, %v320_v17 }
  0xf0   : > { %v458_v50 = vmul.f32 %v3823_v44, %v3804_v36  ;;  %v457_v25 = vmul.f32 %v3823_v44, %v320_v17 }
  0xf1   : > { %400 = vrot.lane.b32.xlu1 %v395_v41, %s5169_s16  ;;  %379 = vrot.lane.b32.xlu0 %v374_v42, %s5165_s8  ;;  %v3166_v41 = vld [vmem:[#allocation6 + $0x17] ss:$0 sm:$0xff] }
  0xf2   : > { %v3831_v47 = vpop.permute.xlu1 %517 }
  0xf3   : > { %v3833_v48 = vpop.permute.xlu0 %496  ;;  %v521_v53 = vmul.f32 %v3831_v47, %v3804_v36  ;;  %v520_v28 = vmul.f32 %v3831_v47, %v320_v17 }
  0xf4   : > { %v500_v54 = vmul.f32 %v3833_v48, %v3804_v36  ;;  %v499_v27 = vmul.f32 %v3833_v48, %v320_v17 }
  0xf5   : > { %442 = vrot.lane.b32.xlu1 %v437_v45, %s5173_s24  ;;  %421 = vrot.lane.b32.xlu0 %v416_v46, %s5171_s29 }
  0xf6   : > { %v3841_v51 = vpop.permute.xlu1 %559 }
  0xf7   : > { %v3843_v52 = vpop.permute.xlu0 %538  ;;  %v563_v57 = vmul.f32 %v3841_v51, %v3804_v36  ;;  %v562_v30 = vmul.f32 %v3841_v51, %v320_v17 }
  0xf8   : > { %v542_v58 = vmul.f32 %v3843_v52, %v3804_v36  ;;  %v541_v29 = vmul.f32 %v3843_v52, %v320_v17 }
  0xf9   : > { %484 = vrot.lane.b32.xlu1 %v479_v49, %s5171_s29  ;;  %463 = vrot.lane.b32.xlu0 %v458_v50, %s5175_s17 }
  0xfa   : > { %v3851_v55 = vpop.permute.xlu1 %601 }
  0xfb   : > { %v3853_v56 = vpop.permute.xlu0 %580  ;;  %v605_v61 = vmul.f32 %v3851_v55, %v3804_v36  ;;  %v604_v32 = vmul.f32 %v3851_v55, %v320_v17 }
  0xfc   : > { %v584_v62 = vmul.f32 %v3853_v56, %v3804_v36  ;;  %v583_v31 = vmul.f32 %v3853_v56, %v320_v17 }
  0xfd   : > { %526 = vrot.lane.b32.xlu1 %v521_v53, %s5175_s17  ;;  %505 = vrot.lane.b32.xlu0 %v500_v54, %s5173_s24 }
  0xfe   : > { %v3861_v59 = vpop.permute.xlu1 %643 }
  0xff   : > { %v3863_v60 = vpop.permute.xlu0 %622  ;;  %v647_v1 = vmul.f32 %v3861_v59, %v3804_v36  ;;  %v646_v34 = vmul.f32 %v3861_v59, %v320_v17 }
 0x100   : > { %v626_v2 = vmul.f32 %v3863_v60, %v3804_v36  ;;  %v625_v33 = vmul.f32 %v3863_v60, %v320_v17 }
 0x101   : > { %568 = vrot.lane.b32.xlu1 %v563_v57, %s5181_s11  ;;  %547 = vrot.lane.b32.xlu0 %v542_v58, %s5177_s26 }
 0x102   : > { %v3871_v63 = vpop.permute.xlu1 %685 }
 0x103   : > { %v3873_v0 = vpop.permute.xlu0 %664  ;;  %v689_v5 = vmul.f32 %v3871_v63, %v3804_v36 }
 0x104   : > { %v668_v6 = vmul.f32 %v3873_v0, %v3804_v36  ;;  %v667_v35 = vmul.f32 %v3873_v0, %v320_v17 }
 0x105   : > { %610 = vrot.lane.b32.xlu1 %v605_v61, %s5185_s28  ;;  %589 = vrot.lane.b32.xlu0 %v584_v62, %s5161_s6 }
 0x106   : > { %v3884_v4 = vpop.permute.xlu1 %727 }
 0x107   : > { %v3881_v3 = vpop.permute.xlu0 %706  ;;  %v731_v8 = vmul.f32 %v3884_v4, %v3804_v36  ;;  %v730_v38 = vmul.f32 %v3884_v4, %v320_v17 }
 0x108   : > { %v710_v9 = vmul.f32 %v3881_v3, %v3804_v36  ;;  %v709_v37 = vmul.f32 %v3881_v3, %v320_v17 }
 0x109   : > { %652 = vrot.lane.b32.xlu1 %v647_v1, %s5161_s6  ;;  %631 = vrot.lane.b32.xlu0 %v626_v2, %s5181_s11 }
 0x10a   : > { %v772_v10 = vpop.permute.xlu1 %771 }
 0x10b   : > { %v749_v7 = vpop.permute.xlu0 %748  ;;  %v775_v12 = vmul.f32 %v772_v10, %v3898_v11  ;;  %v774_v18 = vmul.f32 %v772_v10, %v3904_v15 }
 0x10c   : > { %v752_v13 = vmul.f32 %v749_v7, %v3804_v36  ;;  %v688_v36 = vmul.f32 %v3871_v63, %v320_v17  ;;  %v751_v39 = vmul.f32 %v749_v7, %v320_v17 }
 0x10d   : > { %694 = vrot.lane.b32.xlu1 %v689_v5, %s5157_s7  ;;  %673 = vrot.lane.b32.xlu0 %v668_v6, %s5185_s28  ;;  %s5167_s7 = smov 113  }
 0x10f   : > { %v793_v14 = vpop.permute.xlu0 %792 }
 0x110   : > { %v795_v16 = vmul.f32 %v793_v14, %v3904_v15  ;;  %v796_v40 = vmul.f32 %v793_v14, %v3898_v11 }
 0x111   : > { %736 = vrot.lane.b32.xlu1 %v731_v8, %s5179_s12  ;;  %715 = vrot.lane.b32.xlu0 %v710_v9, %s5183_s14  ;;  %v3167_v8 = vld [vmem:[#allocation6 + $0x18] ss:$0 sm:$0xff] }
 0x115   : > { %780 = vrot.lane.b32.xlu1 %v775_v12, %s5159_s10  ;;  %757 = vrot.lane.b32.xlu0 %v752_v13, %s5167_s7 }
 0x119   : > { %799 = vrot.lane.b32.xlu1 %v795_v16, %s5163_s9  ;;  %778 = vrot.lane.b32.xlu0 %v774_v18, %s5159_s10 }
 0x11d   : > { %335 = vrot.lane.b32.xlu1 %v331_v19, %s5159_s10  ;;  %356 = vrot.lane.b32.xlu0 %v352_v20, %s5163_s9  ;;  %s5237_s10 = smov 116  }
 0x121   : > { %377 = vrot.lane.b32.xlu1 %v373_v21, %s5165_s8  ;;  %398 = vrot.lane.b32.xlu0 %v394_v22, %s5169_s16 }
 0x125   : > { %419 = vrot.lane.b32.xlu1 %v415_v23, %s5171_s29  ;;  %440 = vrot.lane.b32.xlu0 %v436_v24, %s5173_s24 }
 0x129   : > { %461 = vrot.lane.b32.xlu1 %v457_v25, %s5175_s17  ;;  %482 = vrot.lane.b32.xlu0 %v478_v26, %s5171_s29 }
 0x12d   : > { %503 = vrot.lane.b32.xlu1 %v499_v27, %s5173_s24  ;;  %524 = vrot.lane.b32.xlu0 %v520_v28, %s5175_s17 }
 0x131   : > { %545 = vrot.lane.b32.xlu1 %v541_v29, %s5177_s26  ;;  %566 = vrot.lane.b32.xlu0 %v562_v30, %s5181_s11 }
 0x135   : > { %587 = vrot.lane.b32.xlu1 %v583_v31, %s5161_s6  ;;  %608 = vrot.lane.b32.xlu0 %v604_v32, %s5185_s28 }
 0x139   : > { %629 = vrot.lane.b32.xlu1 %v625_v33, %s5181_s11  ;;  %650 = vrot.lane.b32.xlu0 %v646_v34, %s5161_s6  ;;  %s5238_s6 = smov 3   ;;  %v3168_v34 = vld [vmem:[#allocation6 + $0x19] ss:$0 sm:$0xff] }
 0x13d   : > { %671 = vrot.lane.b32.xlu1 %v667_v35, %s5185_s28  ;;  %692 = vrot.lane.b32.xlu0 %v688_v36, %s5237_s10 }
 0x141   : > { %713 = vrot.lane.b32.xlu1 %v709_v37, %s5183_s14  ;;  %734 = vrot.lane.b32.xlu0 %v730_v38, %s5179_s12  ;;  %s5261_s12 = smov 11   ;;  %s5273_s14 = smov 13  }
 0x145   : > { %755 = vrot.lane.b32.xlu1 %v751_v39, %s5167_s7  ;;  %801 = vrot.lane.b32.xlu0 %v796_v40, %s5163_s9  ;;  %s5239_s9 = smov 4   ;;  %v3169_v40 = vld [vmem:[#allocation6 + $0x1a] ss:$0 sm:$0xff]  ;;  %s5241_s7 = smov 6  }
 0x149   : > { %813 = vrot.lane.b32.xlu1 %v3166_v41, %s5238_s6 }
 0x15f   : > { %v3955_v42 = vpop.permute.xlu1 %358  ;;  %v3993_v61 = vpop.permute.xlu0 %337 }
 0x163   : > { %v3957_v43 = vpop.permute.xlu1 %400  ;;  %v3997_v63 = vpop.permute.xlu0 %379 }
 0x167   : > { %v3959_v44 = vpop.permute.xlu1 %442  ;;  %v4003_v2 = vpop.permute.xlu0 %421 }
 0x16b   : > { %v3961_v45 = vpop.permute.xlu1 %484  ;;  %v4007_v4 = vpop.permute.xlu0 %463 }
 0x16f   : > { %v3963_v46 = vpop.permute.xlu1 %526  ;;  %v4013_v9 = vpop.permute.xlu0 %505 }
 0x173   : > { %v3965_v47 = vpop.permute.xlu1 %568  ;;  %v4016_v10 = vpop.permute.xlu0 %547 }
 0x177   : > { %v3967_v48 = vpop.permute.xlu1 %610  ;;  %v4018_v12 = vpop.permute.xlu0 %589 }
 0x17b   : > { %v3969_v49 = vpop.permute.xlu1 %652  ;;  %v4020_v13 = vpop.permute.xlu0 %631 }
 0x17f   : > { %v3971_v50 = vpop.permute.xlu1 %694  ;;  %v4022_v14 = vpop.permute.xlu0 %673 }
 0x183   : > { %v3973_v51 = vpop.permute.xlu1 %736  ;;  %v4024_v16 = vpop.permute.xlu0 %715 }
 0x187   : > { %v3975_v52 = vpop.permute.xlu1 %780  ;;  %v4026_v17 = vpop.permute.xlu0 %757 }
 0x18b   : > { %v3977_v53 = vpop.permute.xlu1 %799  ;;  %v4028_v18 = vpop.permute.xlu0 %778 }
 0x18f   : > { %v3979_v54 = vpop.permute.xlu1 %335  ;;  %v4030_v19 = vpop.permute.xlu0 %356 }
 0x193   : > { %v3981_v55 = vpop.permute.xlu1 %377  ;;  %v4032_v20 = vpop.permute.xlu0 %398 }
 0x197   : > { %v3983_v56 = vpop.permute.xlu1 %419  ;;  %v4034_v21 = vpop.permute.xlu0 %440 }
 0x19b   : > { %v3985_v57 = vpop.permute.xlu1 %461  ;;  %v4036_v22 = vpop.permute.xlu0 %482 }
 0x19f   : > { %v3987_v58 = vpop.permute.xlu1 %503  ;;  %v4038_v23 = vpop.permute.xlu0 %524 }
 0x1a3   : > { %v3989_v59 = vpop.permute.xlu1 %545  ;;  %v4040_v24 = vpop.permute.xlu0 %566 }
 0x1a7   : > { %v3991_v60 = vpop.permute.xlu1 %587  ;;  %v4042_v25 = vpop.permute.xlu0 %608 }
 0x1ab   : > { %v3995_v62 = vpop.permute.xlu1 %629  ;;  %v4044_v26 = vpop.permute.xlu0 %650 }
 0x1af   : > { %v3999_v0 = vpop.permute.xlu1 %671  ;;  %v4046_v27 = vpop.permute.xlu0 %692 }
 0x1b3   : > { %v4001_v1 = vpop.permute.xlu1 %713  ;;  %v4048_v28 = vpop.permute.xlu0 %734 }
 0x1b7   : > { %v4005_v3 = vpop.permute.xlu1 %755  ;;  %v4050_v29 = vpop.permute.xlu0 %801 }
 0x1bb   : > { %v814_v5 = vpop.permute.xlu1 %813 }
 0x1bc   : > { %v816_v6 = vmul.f32 %v814_v5, %v3904_v15  ;;  %v817_v7 = vmul.f32 %v814_v5, %v3898_v11 }
 0x1be   : > { %822 = vrot.lane.b32.xlu1 %v817_v7, %s5165_s8  ;;  %820 = vrot.lane.b32.xlu0 %v816_v6, %s5165_s8  ;;  %s5240_s8 = smov 5  }
 0x1c2   : > { %834 = vrot.lane.b32.xlu0 %v3167_v8, %s5239_s9 }
 0x230   : > { %v4052_v30 = vpop.permute.xlu0 %820  ;;  %v4059_v35 = vpop.permute.xlu1 %822 }
 0x234   : > { %v835_v31 = vpop.permute.xlu0 %834 }
 0x235   : > { %v837_v32 = vmul.f32 %v835_v31, %v3904_v15  ;;  %v838_v33 = vmul.f32 %v835_v31, %v3898_v11  ;;  %v3170_v31 = vld [vmem:[#allocation6 + $0x1b] ss:$0 sm:$0xff] }
 0x237   : > { %843 = vrot.lane.b32.xlu0 %v838_v33, %s5169_s16  ;;  %841 = vrot.lane.b32.xlu1 %v837_v32, %s5169_s16  ;;  %s5243_s16 = smov 7  }
 0x23b   : > { %855 = vrot.lane.b32.xlu1 %v3168_v34, %s5240_s8 }
 0x2a9   : > { %v4061_v36 = vpop.permute.xlu1 %841  ;;  %v4068_v41 = vpop.permute.xlu0 %843 }
 0x2ad   : > { %v856_v37 = vpop.permute.xlu1 %855 }
 0x2ae   : > { %v858_v38 = vmul.f32 %v856_v37, %v3904_v15  ;;  %v859_v39 = vmul.f32 %v856_v37, %v3898_v11 }
 0x2b0   : > { %864 = vrot.lane.b32.xlu1 %v859_v39, %s5171_s29  ;;  %862 = vrot.lane.b32.xlu0 %v858_v38, %s5171_s29  ;;  %v3171_v39 = vld [vmem:[#allocation6 + $0x1c] ss:$0 sm:$0xff] }
 0x2b4   : > { %876 = vrot.lane.b32.xlu0 %v3169_v40, %s5241_s7 }
 0x322   : > { %v4070_v5 = vpop.permute.xlu0 %862  ;;  %v4077_v32 = vpop.permute.xlu1 %864 }
 0x323   : > { %5242 = vst [vmem:[#allocation24_spill] sm:$0xff] %v4070_v5 }
 0x326   : > { %v877_v6 = vpop.permute.xlu0 %876 }
 0x327   : > { %v879_v7 = vmul.f32 %v877_v6, %v3904_v15  ;;  %v880_v8 = vmul.f32 %v877_v6, %v3898_v11 }
 0x329   : > { %885 = vrot.lane.b32.xlu0 %v880_v8, %s5173_s24  ;;  %883 = vrot.lane.b32.xlu1 %v879_v7, %s5173_s24 }
 0x32d   : > { %897 = vrot.lane.b32.xlu1 %v3170_v31, %s5243_s16 }
 0x39b   : > { %v4079_v33 = vpop.permute.xlu1 %883  ;;  %v4086_v40 = vpop.permute.xlu0 %885 }
 0x39c   : > { %5244 = vst [vmem:[#allocation25_spill] sm:$0xff] %v4079_v33  ;;  %5245 = vst [vmem:[#allocation26_spill] sm:$0xff] %v4086_v40 }
 0x39f   : > { %v898_v34 = vpop.permute.xlu1 %897 }
 0x3a0   : > { %v900_v37 = vmul.f32 %v898_v34, %v3904_v15  ;;  %v901_v38 = vmul.f32 %v898_v34, %v3898_v11  ;;  %v3172_v34 = vld [vmem:[#allocation6 + $0x1d] ss:$0 sm:$0xff] }
 0x3a2   : > { %906 = vrot.lane.b32.xlu1 %v901_v38, %s5175_s17  ;;  %904 = vrot.lane.b32.xlu0 %v900_v37, %s5175_s17 }
 0x3a6   : > { %918 = vrot.lane.b32.xlu0 %v3171_v39, %s5240_s8 }
 0x414   : > { %v4088_v6 = vpop.permute.xlu0 %904  ;;  %v4095_v37 = vpop.permute.xlu1 %906 }
 0x415   : > { %5246 = vst [vmem:[#allocation27_spill] sm:$0xff] %v4088_v6  ;;  %5247 = vst [vmem:[#allocation28_spill] sm:$0xff] %v4095_v37 }
 0x418   : > { %v919_v7 = vpop.permute.xlu0 %918 }
 0x419   : > { %v921_v8 = vmul.f32 %v919_v7, %v3904_v15  ;;  %v922_v31 = vmul.f32 %v919_v7, %v3898_v11  ;;  %v3173_v7 = vld [vmem:[#allocation6 + $0x1e] ss:$0 sm:$0xff] }
 0x41b   : > { %927 = vrot.lane.b32.xlu0 %v922_v31, %s5171_s29  ;;  %925 = vrot.lane.b32.xlu1 %v921_v8, %s5171_s29  ;;  %s5251_s29 = smov 8  }
 0x41f   : > { %939 = vrot.lane.b32.xlu1 %v3172_v34, %s5241_s7 }
 0x48d   : > { %v4097_v38 = vpop.permute.xlu1 %925  ;;  %v4104_v8 = vpop.permute.xlu0 %927 }
 0x48e   : > { %5248 = vst [vmem:[#allocation29_spill] sm:$0xff] %v4097_v38  ;;  %5249 = vst [vmem:[#allocation30_spill] sm:$0xff] %v4104_v8 }
 0x491   : > { %v940_v39 = vpop.permute.xlu1 %939 }
 0x492   : > { %v942_v33 = vmul.f32 %v940_v39, %v3904_v15  ;;  %v943_v6 = vmul.f32 %v940_v39, %v3898_v11  ;;  %v3174_v39 = vld [vmem:[#allocation6 + $0x1f] ss:$0 sm:$0xff] }
 0x494   : > { %948 = vrot.lane.b32.xlu1 %v943_v6, %s5173_s24  ;;  %946 = vrot.lane.b32.xlu0 %v942_v33, %s5173_s24  ;;  %s5254_s24 = smov 9  }
 0x498   : > { %960 = vrot.lane.b32.xlu0 %v3173_v7, %s5243_s16 }
 0x506   : > { %v4106_v31 = vpop.permute.xlu0 %946  ;;  %v4113_v33 = vpop.permute.xlu1 %948 }
 0x507   : > { %5250 = vst [vmem:[#allocation31_spill] sm:$0xff] %v4106_v31  ;;  %5252 = vst [vmem:[#allocation32_spill] sm:$0xff] %v4113_v33 }
 0x50a   : > { %v961_v34 = vpop.permute.xlu0 %960 }
 0x50b   : > { %v963_v37 = vmul.f32 %v961_v34, %v3904_v15  ;;  %v964_v38 = vmul.f32 %v961_v34, %v3898_v11  ;;  %v3175_v34 = vld [vmem:[#allocation6 + $0x20] ss:$0 sm:$0xff] }
 0x50d   : > { %969 = vrot.lane.b32.xlu0 %v964_v38, %s5175_s17  ;;  %967 = vrot.lane.b32.xlu1 %v963_v37, %s5175_s17  ;;  %s5257_s17 = smov 10  }
 0x511   : > { %981 = vrot.lane.b32.xlu1 %v3174_v39, %s5251_s29 }
 0x57f   : > { %v4115_v6 = vpop.permute.xlu1 %967  ;;  %v4122_v37 = vpop.permute.xlu0 %969 }
 0x580   : > { %5253 = vst [vmem:[#allocation33_spill] sm:$0xff] %v4115_v6  ;;  %5255 = vst [vmem:[#allocation34_spill] sm:$0xff] %v4122_v37 }
 0x583   : > { %v982_v7 = vpop.permute.xlu1 %981 }
 0x584   : > { %v984_v8 = vmul.f32 %v982_v7, %v3904_v15  ;;  %v985_v31 = vmul.f32 %v982_v7, %v3898_v11  ;;  %v3176_v7 = vld [vmem:[#allocation6 + $0x21] ss:$0 sm:$0xff] }
 0x586   : > { %990 = vrot.lane.b32.xlu1 %v985_v31, %s5177_s26  ;;  %988 = vrot.lane.b32.xlu0 %v984_v8, %s5177_s26  ;;  %s5260_s26 = smov 118  }
 0x58a   : > { %1002 = vrot.lane.b32.xlu0 %v3175_v34, %s5254_s24 }
 0x5f8   : > { %v4124_v38 = vpop.permute.xlu0 %988  ;;  %v4131_v8 = vpop.permute.xlu1 %990 }
 0x5f9   : > { %5256 = vst [vmem:[#allocation35_spill] sm:$0xff] %v4124_v38  ;;  %5258 = vst [vmem:[#allocation36_spill] sm:$0xff] %v4131_v8 }
 0x5fc   : > { %v1003_v39 = vpop.permute.xlu0 %1002 }
 0x5fd   : > { %v1005_v33 = vmul.f32 %v1003_v39, %v3904_v15  ;;  %v1006_v6 = vmul.f32 %v1003_v39, %v3898_v11  ;;  %v3177_v39 = vld [vmem:[#allocation6 + $0x22] ss:$0 sm:$0xff] }
 0x5ff   : > { %1011 = vrot.lane.b32.xlu0 %v1006_v6, %s5181_s11  ;;  %1009 = vrot.lane.b32.xlu1 %v1005_v33, %s5181_s11 }
 0x603   : > { %1023 = vrot.lane.b32.xlu1 %v3176_v7, %s5257_s17 }
 0x671   : > { %v4133_v31 = vpop.permute.xlu1 %1009  ;;  %v4140_v33 = vpop.permute.xlu0 %1011 }
 0x672   : > { %5259 = vst [vmem:[#allocation37_spill] sm:$0xff] %v4133_v31  ;;  %5262 = vst [vmem:[#allocation38_spill] sm:$0xff] %v4140_v33 }
 0x675   : > { %v1024_v34 = vpop.permute.xlu1 %1023 }
 0x676   : > { %v1026_v37 = vmul.f32 %v1024_v34, %v3904_v15  ;;  %v1027_v38 = vmul.f32 %v1024_v34, %v3898_v11  ;;  %v3178_v34 = vld [vmem:[#allocation6 + $0x23] ss:$0 sm:$0xff] }
 0x678   : > { %1032 = vrot.lane.b32.xlu1 %v1027_v38, %s5260_s26  ;;  %1030 = vrot.lane.b32.xlu0 %v1026_v37, %s5260_s26 }
 0x67c   : > { %1044 = vrot.lane.b32.xlu0 %v3177_v39, %s5261_s12 }
 0x6ea   : > { %v4142_v6 = vpop.permute.xlu0 %1030  ;;  %v4149_v37 = vpop.permute.xlu1 %1032 }
 0x6eb   : > { %5263 = vst [vmem:[#allocation39_spill] sm:$0xff] %v4142_v6  ;;  %5264 = vst [vmem:[#allocation40_spill] sm:$0xff] %v4149_v37 }
 0x6ee   : > { %v1045_v7 = vpop.permute.xlu0 %1044 }
 0x6ef   : > { %v1047_v8 = vmul.f32 %v1045_v7, %v3904_v15  ;;  %v1048_v31 = vmul.f32 %v1045_v7, %v3898_v11  ;;  %v3179_v7 = vld [vmem:[#allocation6 + $0x24] ss:$0 sm:$0xff] }
 0x6f1   : > { %1053 = vrot.lane.b32.xlu0 %v1048_v31, %s5185_s28  ;;  %1051 = vrot.lane.b32.xlu1 %v1047_v8, %s5185_s28 }
 0x6f5   : > { %1065 = vrot.lane.b32.xlu1 %v3178_v34, %s5254_s24 }
 0x763   : > { %v4151_v38 = vpop.permute.xlu1 %1051  ;;  %v4158_v8 = vpop.permute.xlu0 %1053 }
 0x764   : > { %5265 = vst [vmem:[#allocation41_spill] sm:$0xff] %v4151_v38  ;;  %5266 = vst [vmem:[#allocation42_spill] sm:$0xff] %v4158_v8 }
 0x767   : > { %v1066_v39 = vpop.permute.xlu1 %1065 }
 0x768   : > { %v1068_v33 = vmul.f32 %v1066_v39, %v3904_v15  ;;  %v1069_v6 = vmul.f32 %v1066_v39, %v3898_v11  ;;  %v3180_v39 = vld [vmem:[#allocation6 + $0x25] ss:$0 sm:$0xff] }
 0x76a   : > { %1074 = vrot.lane.b32.xlu1 %v1069_v6, %s5181_s11  ;;  %1072 = vrot.lane.b32.xlu0 %v1068_v33, %s5181_s11  ;;  %s5270_s11 = smov 12  }
 0x76e   : > { %1086 = vrot.lane.b32.xlu0 %v3179_v7, %s5257_s17 }
 0x7dc   : > { %v4160_v31 = vpop.permute.xlu0 %1072  ;;  %v4167_v33 = vpop.permute.xlu1 %1074 }
 0x7dd   : > { %5267 = vst [vmem:[#allocation43_spill] sm:$0xff] %v4160_v31  ;;  %5268 = vst [vmem:[#allocation44_spill] sm:$0xff] %v4167_v33 }
 0x7e0   : > { %v1087_v34 = vpop.permute.xlu0 %1086 }
 0x7e1   : > { %v1089_v37 = vmul.f32 %v1087_v34, %v3904_v15  ;;  %v1090_v38 = vmul.f32 %v1087_v34, %v3898_v11  ;;  %v3181_v34 = vld [vmem:[#allocation6 + $0x26] ss:$0 sm:$0xff] }
 0x7e3   : > { %1095 = vrot.lane.b32.xlu0 %v1090_v38, %s5260_s26  ;;  %1093 = vrot.lane.b32.xlu1 %v1089_v37, %s5260_s26 }
 0x7e7   : > { %1107 = vrot.lane.b32.xlu1 %v3180_v39, %s5261_s12 }
 0x855   : > { %v4169_v6 = vpop.permute.xlu1 %1093  ;;  %v4176_v37 = vpop.permute.xlu0 %1095 }
 0x856   : > { %5269 = vst [vmem:[#allocation45_spill] sm:$0xff] %v4169_v6  ;;  %5271 = vst [vmem:[#allocation46_spill] sm:$0xff] %v4176_v37 }
 0x859   : > { %v1108_v7 = vpop.permute.xlu1 %1107 }
 0x85a   : > { %v1110_v8 = vmul.f32 %v1108_v7, %v3904_v15  ;;  %v1111_v31 = vmul.f32 %v1108_v7, %v3898_v11  ;;  %v3182_v7 = vld [vmem:[#allocation6 + $0x27] ss:$0 sm:$0xff] }
 0x85c   : > { %1116 = vrot.lane.b32.xlu1 %v1111_v31, %s5185_s28  ;;  %1114 = vrot.lane.b32.xlu0 %v1110_v8, %s5185_s28  ;;  %s5276_s28 = smov 115  }
 0x860   : > { %1128 = vrot.lane.b32.xlu0 %v3181_v34, %s5270_s11 }
 0x8ce   : > { %v4178_v38 = vpop.permute.xlu0 %1114  ;;  %v4185_v8 = vpop.permute.xlu1 %1116 }
 0x8cf   : > { %5272 = vst [vmem:[#allocation47_spill] sm:$0xff] %v4178_v38  ;;  %5274 = vst [vmem:[#allocation48_spill] sm:$0xff] %v4185_v8 }
 0x8d2   : > { %v1129_v39 = vpop.permute.xlu0 %1128 }
 0x8d3   : > { %v1131_v33 = vmul.f32 %v1129_v39, %v3904_v15  ;;  %v1132_v6 = vmul.f32 %v1129_v39, %v3898_v11  ;;  %v3183_v39 = vld [vmem:[#allocation6 + $0x28] ss:$0 sm:$0xff] }
 0x8d5   : > { %1137 = vrot.lane.b32.xlu0 %v1132_v6, %s5237_s10  ;;  %1135 = vrot.lane.b32.xlu1 %v1131_v33, %s5237_s10 }
 0x8d9   : > { %1149 = vrot.lane.b32.xlu1 %v3182_v7, %s5273_s14 }
 0x947   : > { %v4187_v31 = vpop.permute.xlu1 %1135  ;;  %v4194_v33 = vpop.permute.xlu0 %1137 }
 0x948   : > { %5275 = vst [vmem:[#allocation49_spill] sm:$0xff] %v4187_v31  ;;  %5278 = vst [vmem:[#allocation50_spill] sm:$0xff] %v4194_v33 }
 0x94b   : > { %v1150_v34 = vpop.permute.xlu1 %1149 }
 0x94c   : > { %v1152_v37 = vmul.f32 %v1150_v34, %v3904_v15  ;;  %v1153_v38 = vmul.f32 %v1150_v34, %v3898_v11  ;;  %v3184_v34 = vld [vmem:[#allocation6 + $0x29] ss:$0 sm:$0xff] }
 0x94e   : > { %1158 = vrot.lane.b32.xlu1 %v1153_v38, %s5276_s28  ;;  %1156 = vrot.lane.b32.xlu0 %v1152_v37, %s5276_s28 }
 0x952   : > { %1170 = vrot.lane.b32.xlu0 %v3183_v39, %s5277_s0 }
 0x9c0   : > { %v4196_v6 = vpop.permute.xlu0 %1156  ;;  %v4203_v37 = vpop.permute.xlu1 %1158 }
 0x9c1   : > { %5279 = vst [vmem:[#allocation51_spill] sm:$0xff] %v4196_v6  ;;  %5282 = vst [vmem:[#allocation52_spill] sm:$0xff] %v4203_v37  ;;  %v4218_v37 = vld [vmem:[#allocation2 + $0xa] sm:$0xff] }
 0x9c4   : > { %v1171_v7 = vpop.permute.xlu0 %1170 }
 0x9c5   : > { %v1173_v8 = vmul.f32 %v1171_v7, %v3904_v15  ;;  %v1174_v31 = vmul.f32 %v1171_v7, %v3898_v11  ;;  %v3185_v7 = vld [vmem:[#allocation6 + $0x2a] ss:$0 sm:$0xff] }
 0x9c7   : > { %1179 = vrot.lane.b32.xlu0 %v1174_v31, %s5280_s1  ;;  %1177 = vrot.lane.b32.xlu1 %v1173_v8, %s5280_s1 }
 0x9cb   : > { %1191 = vrot.lane.b32.xlu1 %v3184_v34, %s5281_s3  ;;  %v4216_v34 = vld [vmem:[#allocation2 + $0x2] sm:$0xff] }
 0xa39   : > { %v4205_v38 = vpop.permute.xlu1 %1177  ;;  %v4212_v8 = vpop.permute.xlu0 %1179 }
 0xa3a   : > { %5283 = vst [vmem:[#allocation53_spill] sm:$0xff] %v4205_v38  ;;  %5286 = vst [vmem:[#allocation54_spill] sm:$0xff] %v4212_v8 }
 0xa3d   : > { %v1192_v39 = vpop.permute.xlu1 %1191 }
 0xa3e   : > { %v1194_v33 = vmul.f32 %v1192_v39, %v3904_v15  ;;  %v1195_v6 = vmul.f32 %v1192_v39, %v3898_v11 }
 0xa40   : > { %1200 = vrot.lane.b32.xlu1 %v1195_v6, %s5284_s27  ;;  %1198 = vrot.lane.b32.xlu0 %v1194_v33, %s5284_s27  ;;  %v3186_v33 = vld [vmem:[#allocation6 + $0x2b] ss:$0 sm:$0xff] }
 0xa44   : > { %1214 = vrot.lane.b32.xlu0 %v3185_v7, %s5285_s20 }
 0xab2   : > { %v4214_v31 = vpop.permute.xlu0 %1198  ;;  %v4225_v6 = vpop.permute.xlu1 %1200 }
 0xab3   : > { %5287 = vst [vmem:[#allocation55_spill] sm:$0xff] %v4214_v31  ;;  %5290 = vst [vmem:[#allocation56_spill] sm:$0xff] %v4225_v6 }
 0xab6   : > { %v1215_v38 = vpop.permute.xlu0 %1214 }
 0xab7   : > { %v1217_v15 = vmul.f32 %v1215_v38, %v4216_v34  ;;  %v1218_v11 = vmul.f32 %v1215_v38, %v4218_v37  ;;  %v3187_v38 = vld [vmem:[#allocation6 + $0x2c] ss:$0 sm:$0xff] }
 0xab9   : > { %1223 = vrot.lane.b32.xlu0 %v1218_v11, %s5288_s19  ;;  %1221 = vrot.lane.b32.xlu1 %v1217_v15, %s5288_s19 }
 0xabd   : > { %1235 = vrot.lane.b32.xlu1 %v3186_v33, %s5289_s15 }
 0xb2b   : > { %v4227_v39 = vpop.permute.xlu1 %1221  ;;  %v4234_v15 = vpop.permute.xlu0 %1223 }
 0xb2c   : > { %5291 = vst [vmem:[#allocation57_spill] sm:$0xff] %v4227_v39  ;;  %5293 = vst [vmem:[#allocation58_spill] sm:$0xff] %v4234_v15 }
 0xb2f   : > { %v1236_v7 = vpop.permute.xlu1 %1235 }
 0xb30   : > { %v1238_v31 = vmul.f32 %v1236_v7, %v4216_v34  ;;  %v1239_v8 = vmul.f32 %v1236_v7, %v4218_v37  ;;  %v3188_v7 = vld [vmem:[#allocation6 + $0x2d] ss:$0 sm:$0xff] }
 0xb32   : > { %1244 = vrot.lane.b32.xlu1 %v1239_v8, %s5292_s21  ;;  %1242 = vrot.lane.b32.xlu0 %v1238_v31, %s5292_s21 }
 0xb36   : > { %1256 = vrot.lane.b32.xlu0 %v3187_v38, %s5238_s6 }
 0xba4   : > { %v4236_v11 = vpop.permute.xlu0 %1242  ;;  %v4243_v8 = vpop.permute.xlu1 %1244 }
 0xba5   : > { %5294 = vst [vmem:[#allocation59_spill] sm:$0xff] %v4236_v11  ;;  %5296 = vst [vmem:[#allocation60_spill] sm:$0xff] %v4243_v8 }
 0xba8   : > { %v1257_v33 = vpop.permute.xlu0 %1256 }
 0xba9   : > { %v1259_v6 = vmul.f32 %v1257_v33, %v4216_v34  ;;  %v1260_v39 = vmul.f32 %v1257_v33, %v4218_v37  ;;  %v3189_v33 = vld [vmem:[#allocation6 + $0x2e] ss:$0 sm:$0xff] }
 0xbab   : > { %1265 = vrot.lane.b32.xlu0 %v1260_v39, %s5295_s25  ;;  %1263 = vrot.lane.b32.xlu1 %v1259_v6, %s5295_s25 }
 0xbaf   : > { %1277 = vrot.lane.b32.xlu1 %v3188_v7, %s5239_s9 }
 0xc1d   : > { %v4245_v31 = vpop.permute.xlu1 %1263  ;;  %v4252_v6 = vpop.permute.xlu0 %1265 }
 0xc1e   : > { %5297 = vst [vmem:[#allocation61_spill] sm:$0xff] %v4245_v31  ;;  %5299 = vst [vmem:[#allocation62_spill] sm:$0xff] %v4252_v6 }
 0xc21   : > { %v1278_v38 = vpop.permute.xlu1 %1277 }
 0xc22   : > { %v1280_v15 = vmul.f32 %v1278_v38, %v4216_v34  ;;  %v1281_v11 = vmul.f32 %v1278_v38, %v4218_v37  ;;  %v3190_v38 = vld [vmem:[#allocation6 + $0x2f] ss:$0 sm:$0xff] }
 0xc24   : > { %1286 = vrot.lane.b32.xlu1 %v1281_v11, %s5298_s18  ;;  %1284 = vrot.lane.b32.xlu0 %v1280_v15, %s5298_s18 }
 0xc28   : > { %1298 = vrot.lane.b32.xlu0 %v3189_v33, %s5240_s8 }
 0xc96   : > { %v4254_v39 = vpop.permute.xlu0 %1284  ;;  %v4261_v15 = vpop.permute.xlu1 %1286 }
 0xc97   : > { %5300 = vst [vmem:[#allocation63_spill] sm:$0xff] %v4254_v39  ;;  %5302 = vst [vmem:[#allocation64_spill] sm:$0xff] %v4261_v15 }
 0xc9a   : > { %v1299_v7 = vpop.permute.xlu0 %1298 }
 0xc9b   : > { %v1301_v8 = vmul.f32 %v1299_v7, %v4216_v34  ;;  %v1302_v31 = vmul.f32 %v1299_v7, %v4218_v37  ;;  %v3191_v7 = vld [vmem:[#allocation6 + $0x30] ss:$0 sm:$0xff] }
 0xc9d   : > { %1307 = vrot.lane.b32.xlu0 %v1302_v31, %s5301_s5  ;;  %1305 = vrot.lane.b32.xlu1 %v1301_v8, %s5301_s5 }
 0xca1   : > { %1319 = vrot.lane.b32.xlu1 %v3190_v38, %s5241_s7 }
 0xd0f   : > { %v4263_v11 = vpop.permute.xlu1 %1305  ;;  %v4270_v8 = vpop.permute.xlu0 %1307 }
 0xd10   : > { %5303 = vst [vmem:[#allocation65_spill] sm:$0xff] %v4263_v11  ;;  %5305 = vst [vmem:[#allocation66_spill] sm:$0xff] %v4270_v8 }
 0xd13   : > { %v1320_v33 = vpop.permute.xlu1 %1319 }
 0xd14   : > { %v1322_v6 = vmul.f32 %v1320_v33, %v4216_v34  ;;  %v1323_v39 = vmul.f32 %v1320_v33, %v4218_v37  ;;  %v3192_v33 = vld [vmem:[#allocation6 + $0x31] ss:$0 sm:$0xff] }
 0xd16   : > { %1328 = vrot.lane.b32.xlu1 %v1323_v39, %s5304_s23  ;;  %1326 = vrot.lane.b32.xlu0 %v1322_v6, %s5304_s23 }
 0xd1a   : > { %1340 = vrot.lane.b32.xlu0 %v3191_v7, %s5243_s16 }
 0xd88   : > { %v4272_v31 = vpop.permute.xlu0 %1326  ;;  %v4279_v6 = vpop.permute.xlu1 %1328 }
 0xd89   : > { %5306 = vst [vmem:[#allocation67_spill] sm:$0xff] %v4272_v31  ;;  %5308 = vst [vmem:[#allocation68_spill] sm:$0xff] %v4279_v6 }
 0xd8c   : > { %v1341_v38 = vpop.permute.xlu0 %1340 }
 0xd8d   : > { %v1343_v15 = vmul.f32 %v1341_v38, %v4216_v34  ;;  %v1344_v11 = vmul.f32 %v1341_v38, %v4218_v37  ;;  %v3193_v38 = vld [vmem:[#allocation6 + $0x32] ss:$0 sm:$0xff] }
 0xd8f   : > { %1349 = vrot.lane.b32.xlu0 %v1344_v11, %s5307_s30  ;;  %1347 = vrot.lane.b32.xlu1 %v1343_v15, %s5307_s30 }
 0xd93   : > { %1361 = vrot.lane.b32.xlu1 %v3192_v33, %s5240_s8 }
 0xe01   : > { %v4281_v39 = vpop.permute.xlu1 %1347  ;;  %v4288_v15 = vpop.permute.xlu0 %1349 }
 0xe02   : > { %5309 = vst [vmem:[#allocation69_spill] sm:$0xff] %v4281_v39  ;;  %5310 = vst [vmem:[#allocation70_spill] sm:$0xff] %v4288_v15 }
 0xe05   : > { %v1362_v7 = vpop.permute.xlu1 %1361 }
 0xe06   : > { %v1364_v8 = vmul.f32 %v1362_v7, %v4216_v34  ;;  %v1365_v31 = vmul.f32 %v1362_v7, %v4218_v37  ;;  %v3194_v7 = vld [vmem:[#allocation6 + $0x33] ss:$0 sm:$0xff] }
 0xe08   : > { %1370 = vrot.lane.b32.xlu1 %v1365_v31, %s5301_s5  ;;  %1368 = vrot.lane.b32.xlu0 %v1364_v8, %s5301_s5 }
 0xe0c   : > { %1382 = vrot.lane.b32.xlu0 %v3193_v38, %s5241_s7 }
 0xe7a   : > { %v4290_v11 = vpop.permute.xlu0 %1368  ;;  %v4297_v8 = vpop.permute.xlu1 %1370 }
 0xe7b   : > { %5311 = vst [vmem:[#allocation71_spill] sm:$0xff] %v4290_v11  ;;  %5312 = vst [vmem:[#allocation72_spill] sm:$0xff] %v4297_v8 }
 0xe7e   : > { %v1383_v33 = vpop.permute.xlu0 %1382 }
 0xe7f   : > { %v1385_v6 = vmul.f32 %v1383_v33, %v4216_v34  ;;  %v1386_v39 = vmul.f32 %v1383_v33, %v4218_v37  ;;  %v3195_v33 = vld [vmem:[#allocation6 + $0x34] ss:$0 sm:$0xff] }
 0xe81   : > { %1391 = vrot.lane.b32.xlu0 %v1386_v39, %s5304_s23  ;;  %1389 = vrot.lane.b32.xlu1 %v1385_v6, %s5304_s23 }
 0xe85   : > { %1403 = vrot.lane.b32.xlu1 %v3194_v7, %s5243_s16 }
 0xef3   : > { %v4299_v31 = vpop.permute.xlu1 %1389  ;;  %v4306_v6 = vpop.permute.xlu0 %1391 }
 0xef4   : > { %5313 = vst [vmem:[#allocation73_spill] sm:$0xff] %v4299_v31  ;;  %5314 = vst [vmem:[#allocation74_spill] sm:$0xff] %v4306_v6 }
 0xef7   : > { %v1404_v38 = vpop.permute.xlu1 %1403 }
 0xef8   : > { %v1406_v15 = vmul.f32 %v1404_v38, %v4216_v34  ;;  %v1407_v11 = vmul.f32 %v1404_v38, %v4218_v37  ;;  %v3196_v38 = vld [vmem:[#allocation6 + $0x35] ss:$0 sm:$0xff] }
 0xefa   : > { %1412 = vrot.lane.b32.xlu1 %v1407_v11, %s5307_s30  ;;  %1410 = vrot.lane.b32.xlu0 %v1406_v15, %s5307_s30 }
 0xefe   : > { %1424 = vrot.lane.b32.xlu0 %v3195_v33, %s5251_s29 }
 0xf6c   : > { %v4308_v39 = vpop.permute.xlu0 %1410  ;;  %v4315_v15 = vpop.permute.xlu1 %1412 }
 0xf6d   : > { %5315 = vst [vmem:[#allocation75_spill] sm:$0xff] %v4308_v39  ;;  %5317 = vst [vmem:[#allocation76_spill] sm:$0xff] %v4315_v15 }
 0xf70   : > { %v1425_v7 = vpop.permute.xlu0 %1424 }
 0xf71   : > { %v1427_v8 = vmul.f32 %v1425_v7, %v4216_v34  ;;  %v1428_v31 = vmul.f32 %v1425_v7, %v4218_v37  ;;  %v3197_v7 = vld [vmem:[#allocation6 + $0x36] ss:$0 sm:$0xff] }
 0xf73   : > { %1433 = vrot.lane.b32.xlu0 %v1428_v31, %s5316_s13  ;;  %1431 = vrot.lane.b32.xlu1 %v1427_v8, %s5316_s13 }
 0xf77   : > { %1445 = vrot.lane.b32.xlu1 %v3196_v38, %s5254_s24 }
 0xfe5   : > { %v4317_v11 = vpop.permute.xlu1 %1431  ;;  %v4324_v8 = vpop.permute.xlu0 %1433 }
 0xfe6   : > { %5318 = vst [vmem:[#allocation77_spill] sm:$0xff] %v4317_v11  ;;  %5320 = vst [vmem:[#allocation78_spill] sm:$0xff] %v4324_v8 }
 0xfe9   : > { %v1446_v33 = vpop.permute.xlu1 %1445 }
 0xfea   : > { %v1448_v6 = vmul.f32 %v1446_v33, %v4216_v34  ;;  %v1449_v39 = vmul.f32 %v1446_v33, %v4218_v37  ;;  %v3198_v33 = vld [vmem:[#allocation6 + $0x37] ss:$0 sm:$0xff] }
 0xfec   : > { %1454 = vrot.lane.b32.xlu1 %v1449_v39, %s5319_s22  ;;  %1452 = vrot.lane.b32.xlu0 %v1448_v6, %s5319_s22 }
 0xff0   : > { %1466 = vrot.lane.b32.xlu0 %v3197_v7, %s5257_s17 }
0x105e   : > { %v4326_v31 = vpop.permute.xlu0 %1452  ;;  %v4333_v6 = vpop.permute.xlu1 %1454 }
0x105f   : > { %5321 = vst [vmem:[#allocation79_spill] sm:$0xff] %v4326_v31  ;;  %5322 = vst [vmem:[#allocation80_spill] sm:$0xff] %v4333_v6 }
0x1062   : > { %v1467_v38 = vpop.permute.xlu0 %1466 }
0x1063   : > { %v1469_v15 = vmul.f32 %v1467_v38, %v4216_v34  ;;  %v1470_v11 = vmul.f32 %v1467_v38, %v4218_v37  ;;  %v3199_v38 = vld [vmem:[#allocation6 + $0x38] ss:$0 sm:$0xff] }
0x1065   : > { %1475 = vrot.lane.b32.xlu0 %v1470_v11, %s5260_s26  ;;  %1473 = vrot.lane.b32.xlu1 %v1469_v15, %s5260_s26 }
0x1069   : > { %1487 = vrot.lane.b32.xlu1 %v3198_v33, %s5261_s12 }
0x10d7   : > { %v4335_v39 = vpop.permute.xlu1 %1473  ;;  %v4342_v15 = vpop.permute.xlu0 %1475 }
0x10d8   : > { %5323 = vst [vmem:[#allocation81_spill] sm:$0xff] %v4335_v39  ;;  %5325 = vst [vmem:[#allocation82_spill] sm:$0xff] %v4342_v15 }
0x10db   : > { %v1488_v7 = vpop.permute.xlu1 %1487 }
0x10dc   : > { %v1490_v8 = vmul.f32 %v1488_v7, %v4216_v34  ;;  %v1491_v31 = vmul.f32 %v1488_v7, %v4218_v37  ;;  %v3200_v7 = vld [vmem:[#allocation6 + $0x39] ss:$0 sm:$0xff] }
0x10de   : > { %1496 = vrot.lane.b32.xlu1 %v1491_v31, %s5324_s4  ;;  %1494 = vrot.lane.b32.xlu0 %v1490_v8, %s5324_s4 }
0x10e2   : > { %1508 = vrot.lane.b32.xlu0 %v3199_v38, %s5254_s24 }
0x1150   : > { %v4344_v11 = vpop.permute.xlu0 %1494  ;;  %v4351_v8 = vpop.permute.xlu1 %1496 }
0x1151   : > { %5326 = vst [vmem:[#allocation83_spill] sm:$0xff] %v4344_v11  ;;  %5327 = vst [vmem:[#allocation84_spill] sm:$0xff] %v4351_v8 }
0x1154   : > { %v1509_v33 = vpop.permute.xlu0 %1508 }
0x1155   : > { %v1511_v6 = vmul.f32 %v1509_v33, %v4216_v34  ;;  %v1512_v39 = vmul.f32 %v1509_v33, %v4218_v37  ;;  %v3201_v33 = vld [vmem:[#allocation6 + $0x3a] ss:$0 sm:$0xff] }
0x1157   : > { %1517 = vrot.lane.b32.xlu0 %v1512_v39, %s5319_s22  ;;  %1515 = vrot.lane.b32.xlu1 %v1511_v6, %s5319_s22 }
0x115b   : > { %1529 = vrot.lane.b32.xlu1 %v3200_v7, %s5257_s17 }
0x11c9   : > { %v4353_v31 = vpop.permute.xlu1 %1515  ;;  %v4360_v6 = vpop.permute.xlu0 %1517 }
0x11ca   : > { %5328 = vst [vmem:[#allocation85_spill] sm:$0xff] %v4353_v31  ;;  %5329 = vst [vmem:[#allocation86_spill] sm:$0xff] %v4360_v6 }
0x11cd   : > { %v1530_v38 = vpop.permute.xlu1 %1529 }
0x11ce   : > { %v1532_v15 = vmul.f32 %v1530_v38, %v4216_v34  ;;  %v1533_v11 = vmul.f32 %v1530_v38, %v4218_v37  ;;  %v3202_v38 = vld [vmem:[#allocation6 + $0x3b] ss:$0 sm:$0xff] }
0x11d0   : > { %1538 = vrot.lane.b32.xlu1 %v1533_v11, %s5260_s26  ;;  %1536 = vrot.lane.b32.xlu0 %v1532_v15, %s5260_s26 }
0x11d4   : > { %1550 = vrot.lane.b32.xlu0 %v3201_v33, %s5261_s12 }
0x1242   : > { %v4362_v39 = vpop.permute.xlu0 %1536  ;;  %v4369_v15 = vpop.permute.xlu1 %1538 }
0x1243   : > { %5330 = vst [vmem:[#allocation87_spill] sm:$0xff] %v4362_v39  ;;  %5331 = vst [vmem:[#allocation88_spill] sm:$0xff] %v4369_v15 }
0x1246   : > { %v1551_v7 = vpop.permute.xlu0 %1550 }
0x1247   : > { %v1553_v8 = vmul.f32 %v1551_v7, %v4216_v34  ;;  %v1554_v31 = vmul.f32 %v1551_v7, %v4218_v37  ;;  %v3203_v7 = vld [vmem:[#allocation6 + $0x3c] ss:$0 sm:$0xff] }
0x1249   : > { %1559 = vrot.lane.b32.xlu0 %v1554_v31, %s5324_s4  ;;  %1557 = vrot.lane.b32.xlu1 %v1553_v8, %s5324_s4 }
0x124d   : > { %1571 = vrot.lane.b32.xlu1 %v3202_v38, %s5270_s11 }
0x12bb   : > { %v4371_v11 = vpop.permute.xlu1 %1557  ;;  %v4378_v8 = vpop.permute.xlu0 %1559 }
0x12bc   : > { %5332 = vst [vmem:[#allocation89_spill] sm:$0xff] %v4371_v11  ;;  %5333 = vst [vmem:[#allocation90_spill] sm:$0xff] %v4378_v8 }
0x12bf   : > { %v1572_v33 = vpop.permute.xlu1 %1571 }
0x12c0   : > { %v1574_v6 = vmul.f32 %v1572_v33, %v4216_v34  ;;  %v1575_v39 = vmul.f32 %v1572_v33, %v4218_v37  ;;  %v3204_v33 = vld [vmem:[#allocation6 + $0x3d] ss:$0 sm:$0xff] }
0x12c2   : > { %1580 = vrot.lane.b32.xlu1 %v1575_v39, %s5237_s10  ;;  %1578 = vrot.lane.b32.xlu0 %v1574_v6, %s5237_s10  ;;  %s5408_s10 = smov 16  }
0x12c6   : > { %1592 = vrot.lane.b32.xlu0 %v3203_v7, %s5273_s14 }
0x1334   : > { %v4380_v31 = vpop.permute.xlu0 %1578  ;;  %v4387_v6 = vpop.permute.xlu1 %1580 }
0x1335   : > { %5334 = vst [vmem:[#allocation91_spill] sm:$0xff] %v4380_v31  ;;  %5335 = vst [vmem:[#allocation92_spill] sm:$0xff] %v4387_v6 }
0x1338   : > { %v1593_v38 = vpop.permute.xlu0 %1592 }
0x1339   : > { %v1595_v15 = vmul.f32 %v1593_v38, %v4216_v34  ;;  %v1596_v11 = vmul.f32 %v1593_v38, %v4218_v37  ;;  %v3205_v38 = vld [vmem:[#allocation6 + $0x3e] ss:$0 sm:$0xff] }
0x133b   : > { %1601 = vrot.lane.b32.xlu0 %v1596_v11, %s5276_s28  ;;  %1599 = vrot.lane.b32.xlu1 %v1595_v15, %s5276_s28  ;;  %v3142_v15 = vld [vmem:[%s5337_s2] ss:$0 sm:$0xff]  ;;  %s5409_s28 = smov 116   ;;  %s5423_s2 = smov 121  }
0x133c   : > { %v341_v11 = vadd.f32 %v3142_v15, %v3979_v54 }
0x133f   : > { %1613 = vrot.lane.b32.xlu1 %v3204_v33, %s5277_s0  ;;  %v342_v33 = vadd.f32 %v3142_v15, %v3993_v61  ;;  %v5339_v15 = vld [vmem:[#allocation26_spill] sm:$0xff] }
0x1341   : > { %v363_v6 = vadd.f32 %v3955_v42, %v342_v33  ;;  %v5341_v33 = vld [vmem:[#allocation28_spill] sm:$0xff] }
0x13ad   : > { %v4389_v39 = vpop.permute.xlu1 %1599 }
0x13ae   : > { %5336 = vst [vmem:[#allocation93_spill] sm:$0xff] %v4389_v39  ;;  %v362_v39 = vadd.f32 %v4030_v19, %v341_v11  ;;  %v5340_v11 = vld [vmem:[#allocation25_spill] sm:$0xff] }
0x13b1   : > { %v1614_v7 = vpop.permute.xlu1 %1613 }
0x13b2   : > { %v1616_v8 = vmul.f32 %v1614_v7, %v4216_v34  ;;  %v1617_v31 = vmul.f32 %v1614_v7, %v4218_v37  ;;  %v383_v7 = vadd.f32 %v3981_v55, %v362_v39  ;;  %v5338_v39 = vld [vmem:[#allocation24_spill] sm:$0xff] }
0x13b4   : > { %1622 = vrot.lane.b32.xlu1 %v1617_v31, %s5280_s1  ;;  %1620 = vrot.lane.b32.xlu0 %v1616_v8, %s5280_s1  ;;  %v384_v31 = vadd.f32 %v3997_v63, %v363_v6  ;;  %v404_v8 = vadd.f32 %v4032_v20, %v383_v7  ;;  %v5342_v7 = vld [vmem:[#allocation27_spill] sm:$0xff] }
0x13b6   : > { %v425_v40 = vadd.f32 %v3983_v56, %v404_v8  ;;  %v5344_v8 = vld [vmem:[#allocation29_spill] sm:$0xff] }
0x13b8   : > { %1634 = vrot.lane.b32.xlu0 %v3205_v38, %s5281_s3  ;;  %v405_v38 = vadd.f32 %v3957_v43, %v384_v31  ;;  %v446_v54 = vadd.f32 %v4034_v21, %v425_v40  ;;  %v5343_v31 = vld [vmem:[#allocation30_spill] sm:$0xff] }
0x13ba   : > { %v426_v5 = vadd.f32 %v4003_v2, %v405_v38  ;;  %v467_v19 = vadd.f32 %v3985_v57, %v446_v54  ;;  %v5345_v38 = vld [vmem:[#allocation32_spill] sm:$0xff]  ;;  %v5346_v54 = vld [vmem:[#allocation31_spill] sm:$0xff] }
0x13bc   : > { %v447_v61 = vadd.f32 %v3959_v44, %v426_v5  ;;  %v488_v55 = vadd.f32 %v4036_v22, %v467_v19  ;;  %v4421_v5 = vpop.permute.xlu0 %1601  ;;  %v5348_v19 = vld [vmem:[#allocation33_spill] sm:$0xff] }
0x13be   : > { %v468_v42 = vadd.f32 %v4007_v4, %v447_v61  ;;  %v509_v20 = vadd.f32 %v3987_v58, %v488_v55  ;;  %v5347_v61 = vld [vmem:[#allocation34_spill] sm:$0xff]  ;;  %v5349_v55 = vld [vmem:[#allocation36_spill] sm:$0xff] }
0x13c0   : > { %v489_v63 = vadd.f32 %v3961_v45, %v468_v42  ;;  %v530_v56 = vadd.f32 %v4038_v23, %v509_v20  ;;  %v5350_v20 = vld [vmem:[#allocation35_spill] sm:$0xff] }
0x13c2   : > { %v510_v43 = vadd.f32 %v4013_v9, %v489_v63  ;;  %v551_v21 = vadd.f32 %v3989_v59, %v530_v56  ;;  %v5351_v56 = vld [vmem:[#allocation38_spill] sm:$0xff] }
0x13c4   : > { %v531_v2 = vadd.f32 %v3963_v46, %v510_v43  ;;  %v572_v57 = vadd.f32 %v4040_v24, %v551_v21  ;;  %v5352_v21 = vld [vmem:[#allocation37_spill] sm:$0xff] }
0x13c6   : > { %v552_v44 = vadd.f32 %v4016_v10, %v531_v2  ;;  %v593_v45 = vadd.f32 %v3991_v60, %v572_v57  ;;  %v5353_v57 = vld [vmem:[#allocation40_spill] sm:$0xff] }
0x13c8   : > { %v573_v4 = vadd.f32 %v3965_v47, %v552_v44  ;;  %v614_v59 = vadd.f32 %v4042_v25, %v593_v45  ;;  %v5354_v45 = vld [vmem:[#allocation39_spill] sm:$0xff] }
0x13ca   : > { %v594_v58 = vadd.f32 %v4018_v12, %v573_v4  ;;  %v635_v47 = vadd.f32 %v3995_v62, %v614_v59 }
0x13cc   : > { %v615_v10 = vadd.f32 %v3967_v48, %v594_v58  ;;  %v656_v60 = vadd.f32 %v4044_v26, %v635_v47 }
0x13ce   : > { %v636_v24 = vadd.f32 %v4020_v13, %v615_v10  ;;  %v677_v40 = vadd.f32 %v3999_v0, %v656_v60  ;;  %v5357_v10 = vld [vmem:[#allocation44_spill] sm:$0xff] }
0x13d0   : > { %v657_v12 = vadd.f32 %v3969_v49, %v636_v24  ;;  %v698_v25 = vadd.f32 %v4046_v27, %v677_v40  ;;  %v5358_v24 = vld [vmem:[#allocation43_spill] sm:$0xff] }
0x13d2   : > { %v719_v6 = vadd.f32 %v4001_v1, %v698_v25 }
0x13d4   : > { %v740_v62 = vadd.f32 %v4048_v28, %v719_v6 }
0x13d6   : > { %v761_v26 = vadd.f32 %v4005_v3, %v740_v62 }
0x13d8   : > { %v784_v0 = vadd.f32 %v4028_v18, %v761_v26 }
0x1426   : > { %v4425_v22 = vpop.permute.xlu0 %1620 }
0x142a   : > { %v1635_v9 = vpop.permute.xlu0 %1634 }
0x142b   : > { %v1637_v23 = vmul.f32 %v1635_v9, %v4216_v34  ;;  %v1638_v46 = vmul.f32 %v1635_v9, %v4218_v37  ;;  %v678_v37 = vadd.f32 %v4022_v14, %v657_v12  ;;  %v5355_v9 = vld [vmem:[#allocation42_spill] sm:$0xff] }
0x142c   : > { %v5359_v12 = vld [vmem:[#allocation46_spill] sm:$0xff] }
0x142d   : > { %1643 = vrot.lane.b32.xlu0 %v1638_v46, %s5284_s27  ;;  %1641 = vrot.lane.b32.xlu1 %v1637_v23, %s5284_s27  ;;  %v699_v34 = vadd.f32 %v3971_v50, %v678_v37  ;;  %v805_v50 = vadd.f32 %v3977_v53, %v784_v0  ;;  %v5356_v46 = vld [vmem:[#allocation41_spill] sm:$0xff] }
0x142e   : > { %v5360_v37 = vld [vmem:[#allocation45_spill] sm:$0xff] }
0x142f   : > { %v720_v48 = vadd.f32 %v4024_v16, %v699_v34  ;;  %v826_v16 = vadd.f32 %v4052_v30, %v805_v50  ;;  %v5361_v34 = vld [vmem:[#allocation48_spill] sm:$0xff]  ;;  %v5366_v50 = vld [vmem:[#allocation51_spill] sm:$0xff] }
0x1431   : > { %v741_v13 = vadd.f32 %v3973_v51, %v720_v48  ;;  %v847_v51 = vadd.f32 %v4061_v36, %v826_v16  ;;  %v5362_v48 = vld [vmem:[#allocation47_spill] sm:$0xff]  ;;  %v5367_v16 = vld [vmem:[#allocation54_spill] sm:$0xff] }
0x1433   : > { %v762_v49 = vadd.f32 %v4026_v17, %v741_v13  ;;  %v868_v17 = vadd.f32 %v5338_v39, %v847_v51  ;;  %v5363_v13 = vld [vmem:[#allocation50_spill] sm:$0xff]  ;;  %v5368_v51 = vld [vmem:[#allocation53_spill] sm:$0xff]  ;;  %v5369_v39 = vld [vmem:[#allocation56_spill] sm:$0xff] }
0x1435   : > { %v785_v14 = vadd.f32 %v3975_v52, %v762_v49  ;;  %v889_v52 = vadd.f32 %v5340_v11, %v868_v17  ;;  %v5364_v49 = vld [vmem:[#allocation49_spill] sm:$0xff]  ;;  %v5371_v11 = vld [vmem:[#allocation58_spill] sm:$0xff] }
0x1437   : > { %v806_v27 = vadd.f32 %v4050_v29, %v785_v14  ;;  %v910_v53 = vadd.f32 %v5342_v7, %v889_v52  ;;  %v5365_v14 = vld [vmem:[#allocation52_spill] sm:$0xff] }
0x1438   : > { %v5373_v7 = vld [vmem:[#allocation60_spill] sm:$0xff] }
0x1439   : > { %v827_v1 = vadd.f32 %v4059_v35, %v806_v27  ;;  %v931_v30 = vadd.f32 %v5344_v8, %v910_v53  ;;  %v5375_v8 = vld [vmem:[#allocation62_spill] sm:$0xff] }
0x143b   : > { %v848_v28 = vadd.f32 %v4068_v41, %v827_v1  ;;  %v952_v36 = vadd.f32 %v5346_v54, %v931_v30  ;;  %v5377_v54 = vld [vmem:[#allocation64_spill] sm:$0xff] }
0x143d   : > { %v869_v3 = vadd.f32 %v4077_v32, %v848_v28  ;;  %v973_v42 = vadd.f32 %v5348_v19, %v952_v36  ;;  %v5379_v19 = vld [vmem:[#allocation66_spill] sm:$0xff] }
0x143f   : > { %v890_v18 = vadd.f32 %v5339_v15, %v869_v3  ;;  %v994_v43 = vadd.f32 %v5350_v20, %v973_v42  ;;  %v5370_v15 = vld [vmem:[#allocation55_spill] sm:$0xff]  ;;  %v5381_v20 = vld [vmem:[#allocation68_spill] sm:$0xff] }
0x1441   : > { %v911_v29 = vadd.f32 %v5341_v33, %v890_v18  ;;  %v1015_v44 = vadd.f32 %v5352_v21, %v994_v43  ;;  %v5372_v33 = vld [vmem:[#allocation57_spill] sm:$0xff]  ;;  %v5383_v21 = vld [vmem:[#allocation70_spill] sm:$0xff] }
0x1443   : > { %v932_v35 = vadd.f32 %v5343_v31, %v911_v29  ;;  %v1036_v58 = vadd.f32 %v5354_v45, %v1015_v44  ;;  %v5374_v31 = vld [vmem:[#allocation59_spill] sm:$0xff]  ;;  %v5385_v45 = vld [vmem:[#allocation72_spill] sm:$0xff] }
0x1445   : > { %v953_v41 = vadd.f32 %v5345_v38, %v932_v35  ;;  %v1057_v59 = vadd.f32 %v5356_v46, %v1036_v58  ;;  %v5376_v38 = vld [vmem:[#allocation61_spill] sm:$0xff]  ;;  %v5387_v46 = vld [vmem:[#allocation74_spill] sm:$0xff] }
0x1447   : > { %v974_v32 = vadd.f32 %v5347_v61, %v953_v41  ;;  %v1078_v60 = vadd.f32 %v5358_v24, %v1057_v59  ;;  %v5378_v61 = vld [vmem:[#allocation63_spill] sm:$0xff]  ;;  %v5389_v24 = vld [vmem:[#allocation76_spill] sm:$0xff] }
0x1449   : > { %v995_v63 = vadd.f32 %v5349_v55, %v974_v32  ;;  %v1099_v25 = vadd.f32 %v5360_v37, %v1078_v60  ;;  %v5380_v55 = vld [vmem:[#allocation65_spill] sm:$0xff]  ;;  %v5391_v37 = vld [vmem:[#allocation78_spill] sm:$0xff] }
0x144b   : > { %v1016_v2 = vadd.f32 %v5351_v56, %v995_v63  ;;  %v1120_v62 = vadd.f32 %v5362_v48, %v1099_v25  ;;  %v5382_v56 = vld [vmem:[#allocation67_spill] sm:$0xff]  ;;  %v5393_v48 = vld [vmem:[#allocation80_spill] sm:$0xff] }
0x144d   : > { %v1037_v4 = vadd.f32 %v5353_v57, %v1016_v2  ;;  %v1141_v0 = vadd.f32 %v5364_v49, %v1120_v62  ;;  %v5384_v57 = vld [vmem:[#allocation69_spill] sm:$0xff]  ;;  %v5395_v49 = vld [vmem:[#allocation82_spill] sm:$0xff] }
0x144f   : > { %v1058_v23 = vadd.f32 %v5355_v9, %v1037_v4  ;;  %v1162_v1 = vadd.f32 %v5366_v50, %v1141_v0  ;;  %v5386_v9 = vld [vmem:[#allocation71_spill] sm:$0xff]  ;;  %v5397_v50 = vld [vmem:[#allocation84_spill] sm:$0xff] }
0x1451   : > { %v1079_v47 = vadd.f32 %v5357_v10, %v1058_v23  ;;  %v1183_v3 = vadd.f32 %v5368_v51, %v1162_v1  ;;  %v5388_v10 = vld [vmem:[#allocation73_spill] sm:$0xff]  ;;  %v5399_v51 = vld [vmem:[#allocation86_spill] sm:$0xff] }
0x1453   : > { %v1100_v40 = vadd.f32 %v5359_v12, %v1079_v47  ;;  %v1204_v18 = vadd.f32 %v5370_v15, %v1183_v3  ;;  %v5390_v12 = vld [vmem:[#allocation75_spill] sm:$0xff]  ;;  %v5401_v15 = vld [vmem:[#allocation88_spill] sm:$0xff] }
0x1455   : > { %v1121_v6 = vadd.f32 %v5361_v34, %v1100_v40  ;;  %v1227_v29 = vadd.f32 %v5372_v33, %v1204_v18  ;;  %v5392_v34 = vld [vmem:[#allocation77_spill] sm:$0xff]  ;;  %v5403_v33 = vld [vmem:[#allocation90_spill] sm:$0xff] }
0x1457   : > { %v1142_v26 = vadd.f32 %v5363_v13, %v1121_v6  ;;  %v1248_v35 = vadd.f32 %v5374_v31, %v1227_v29  ;;  %v5394_v13 = vld [vmem:[#allocation79_spill] sm:$0xff]  ;;  %v5405_v31 = vld [vmem:[#allocation92_spill] sm:$0xff] }
0x1459   : > { %v1163_v27 = vadd.f32 %v5365_v14, %v1142_v26  ;;  %v1269_v41 = vadd.f32 %v5376_v38, %v1248_v35  ;;  %v5396_v14 = vld [vmem:[#allocation81_spill] sm:$0xff]  ;;  %v1623_v38 = vpop.permute.xlu1 %1622 }
0x145b   : > { %v1184_v28 = vadd.f32 %v5367_v16, %v1163_v27  ;;  %v1290_v32 = vadd.f32 %v5378_v61, %v1269_v41  ;;  %v5398_v16 = vld [vmem:[#allocation83_spill] sm:$0xff] }
0x145d   : > { %v1205_v17 = vadd.f32 %v5369_v39, %v1184_v28  ;;  %v1311_v63 = vadd.f32 %v5380_v55, %v1290_v32  ;;  %v5400_v39 = vld [vmem:[#allocation85_spill] sm:$0xff] }
0x145f   : > { %v1228_v52 = vadd.f32 %v5371_v11, %v1205_v17  ;;  %v1332_v2 = vadd.f32 %v5382_v56, %v1311_v63  ;;  %v5402_v11 = vld [vmem:[#allocation87_spill] sm:$0xff] }
0x1461   : > { %v1249_v53 = vadd.f32 %v5373_v7, %v1228_v52  ;;  %v1353_v4 = vadd.f32 %v5384_v57, %v1332_v2  ;;  %v5404_v7 = vld [vmem:[#allocation89_spill] sm:$0xff]  ;;  %v3212_v57 = vld [vmem:[#allocation8 + $0x5] ss:$0 sm:$0xff] }
0x1463   : > { %v1270_v30 = vadd.f32 %v5375_v8, %v1249_v53  ;;  %v1374_v23 = vadd.f32 %v5386_v9, %v1353_v4  ;;  %v5406_v8 = vld [vmem:[#allocation91_spill] sm:$0xff]  ;;  %v3211_v4 = vld [vmem:[#allocation8 + $0x4] ss:$0 sm:$0xff]  ;;  %v3216_v9 = vld [vmem:[#allocation8 + $0x9] ss:$0 sm:$0xff] }
0x1465   : > { %v1291_v36 = vadd.f32 %v5377_v54, %v1270_v30  ;;  %v1395_v47 = vadd.f32 %v5388_v10, %v1374_v23  ;;  %v5407_v54 = vld [vmem:[#allocation93_spill] sm:$0xff] }
0x1466   : > { %v3215_v23 = vld [vmem:[#allocation8 + $0x8] ss:$0 sm:$0xff]  ;;  %v3220_v10 = vld [vmem:[#allocation8 + $0xd] ss:$0 sm:$0xff] }
0x1467   : > { %v1312_v42 = vadd.f32 %v5379_v19, %v1291_v36  ;;  %v1416_v40 = vadd.f32 %v5390_v12, %v1395_v47  ;;  %v3219_v47 = vld [vmem:[#allocation8 + $0xc] ss:$0 sm:$0xff]  ;;  %v3224_v12 = vld [vmem:[#allocation8 + $0x11] ss:$0 sm:$0xff] }
0x1469   : > { %v1333_v43 = vadd.f32 %v5381_v20, %v1312_v42  ;;  %v1437_v6 = vadd.f32 %v5392_v34, %v1416_v40  ;;  %v3223_v40 = vld [vmem:[#allocation8 + $0x10] ss:$0 sm:$0xff]  ;;  %v3228_v34 = vld [vmem:[#allocation8 + $0x15] ss:$0 sm:$0xff] }
0x146b   : > { %v1354_v44 = vadd.f32 %v5383_v21, %v1333_v43  ;;  %v1458_v26 = vadd.f32 %v5394_v13, %v1437_v6  ;;  %v3210_v21 = vld [vmem:[#allocation8 + $0x3] ss:$0 sm:$0xff]  ;;  %v3227_v6 = vld [vmem:[#allocation8 + $0x14] ss:$0 sm:$0xff] }
0x146d   : > { %v1375_v58 = vadd.f32 %v5385_v45, %v1354_v44  ;;  %v1479_v27 = vadd.f32 %v5396_v14, %v1458_v26  ;;  %v3209_v44 = vld [vmem:[#allocation8 + $0x2] ss:$0 sm:$0xff]  ;;  %v3214_v45 = vld [vmem:[#allocation8 + $0x7] ss:$0 sm:$0xff] }
0x146f   : > { %v1396_v59 = vadd.f32 %v5387_v46, %v1375_v58  ;;  %v1500_v28 = vadd.f32 %v5398_v16, %v1479_v27  ;;  %v3213_v58 = vld [vmem:[#allocation8 + $0x6] ss:$0 sm:$0xff]  ;;  %v3218_v46 = vld [vmem:[#allocation8 + $0xb] ss:$0 sm:$0xff] }
0x1471   : > { %v1417_v60 = vadd.f32 %v5389_v24, %v1396_v59  ;;  %v1521_v17 = vadd.f32 %v5400_v39, %v1500_v28  ;;  %v3217_v59 = vld [vmem:[#allocation8 + $0xa] ss:$0 sm:$0xff]  ;;  %v3222_v24 = vld [vmem:[#allocation8 + $0xf] ss:$0 sm:$0xff] }
0x1473   : > { %v1438_v25 = vadd.f32 %v5391_v37, %v1417_v60  ;;  %v1542_v52 = vadd.f32 %v5402_v11, %v1521_v17  ;;  %v3221_v60 = vld [vmem:[#allocation8 + $0xe] ss:$0 sm:$0xff]  ;;  %v3226_v37 = vld [vmem:[#allocation8 + $0x13] ss:$0 sm:$0xff] }
0x1475   : > { %v1459_v62 = vadd.f32 %v5393_v48, %v1438_v25  ;;  %v1563_v53 = vadd.f32 %v5404_v7, %v1542_v52  ;;  %v3225_v25 = vld [vmem:[#allocation8 + $0x12] ss:$0 sm:$0xff] }
0x1477   : > { %v1480_v0 = vadd.f32 %v5395_v49, %v1459_v62  ;;  %v1584_v30 = vadd.f32 %v5406_v8, %v1563_v53 }
0x1479   : > { %v1501_v1 = vadd.f32 %v5397_v50, %v1480_v0  ;;  %v1605_v36 = vadd.f32 %v5407_v54, %v1584_v30 }
0x147b   : > { %v1522_v3 = vadd.f32 %v5399_v51, %v1501_v1  ;;  %v1626_v32 = vadd.f32 %v4425_v22, %v1605_v36  ;;  %v3207_v22 = vld [vmem:[#allocation8] ss:$0 sm:$0xff] }
0x147d   : > { %v1543_v18 = vadd.f32 %v5401_v15, %v1522_v3 }
0x147f   : > { %v1564_v29 = vadd.f32 %v5403_v33, %v1543_v18 }
0x1481   : > { %v1585_v35 = vadd.f32 %v5405_v31, %v1564_v29 }
0x1483   : > { %v1606_v41 = vadd.f32 %v4421_v5, %v1585_v35  ;;  %v3208_v5 = vld [vmem:[#allocation8 + $0x1] ss:$0 sm:$0xff] }
0x1485   : > { %v1627_v61 = vadd.f32 %v1623_v38, %v1606_v41 }
0x149f   : > { %v1644_v19 = vpop.permute.xlu0 %1643  ;;  %v1642_v42 = vpop.permute.xlu1 %1641 }
0x14a0   : > { %v1648_v55 = vadd.f32 %v1644_v19, %v1627_v61  ;;  %v1647_v63 = vadd.f32 %v1642_v42, %v1626_v32 }
0x14a2   : > { %v1652_v20 = vmul.f32 0.01, %v1648_v55  ;;  %v1651_v43 = vmul.f32 0.01, %v1647_v63  ;;  %vm1650_vm8 = vcmp.ge.f32.partialorder %v1648_v55, 0.0  ;;  %vm1649_vm9 = vcmp.ge.f32.partialorder %v1647_v63, 0.0 }
0x14a4   : > { %v1654_v56 = vsel %vm1650_vm8, %v1648_v55, %v1652_v20  ;;  %v1653_v2 = vsel %vm1649_vm9, %v1647_v63, %v1651_v43 }
0x14a5   : > { %1659 = vrot.lane.b32.xlu0 %v1654_v56, %s5251_s29  ;;  %1657 = vrot.lane.b32.xlu1 %v1653_v2, %s5251_s29 }
0x14a9   : > { %1669 = vrot.lane.b32.xlu0 %v1654_v56, %s5408_s10  ;;  %1667 = vrot.lane.b32.xlu1 %v1653_v2, %s5408_s10  ;;  %s5410_s10 = smov 115  }
0x14ad   : > { %1716 = vrot.lane.b32.xlu0 %v3208_v5, %s5289_s15  ;;  %1695 = vrot.lane.b32.xlu1 %v3207_v22, %s5285_s20 }
0x14b1   : > { %1758 = vrot.lane.b32.xlu0 %v3210_v21, %s5239_s9  ;;  %1737 = vrot.lane.b32.xlu1 %v3209_v44, %s5238_s6 }
0x14b5   : > { %1800 = vrot.lane.b32.xlu0 %v3212_v57, %s5241_s7  ;;  %1779 = vrot.lane.b32.xlu1 %v3211_v4, %s5240_s8 }
0x14b9   : > { %1842 = vrot.lane.b32.xlu0 %v3214_v45, %s5240_s8  ;;  %1821 = vrot.lane.b32.xlu1 %v3213_v58, %s5243_s16 }
0x14bd   : > { %1884 = vrot.lane.b32.xlu0 %v3216_v9, %s5243_s16  ;;  %1863 = vrot.lane.b32.xlu1 %v3215_v23, %s5241_s7 }
0x14c1   : > { %1926 = vrot.lane.b32.xlu0 %v3218_v46, %s5254_s24  ;;  %1905 = vrot.lane.b32.xlu1 %v3217_v59, %s5251_s29 }
0x14c5   : > { %1968 = vrot.lane.b32.xlu0 %v3220_v10, %s5261_s12  ;;  %1947 = vrot.lane.b32.xlu1 %v3219_v47, %s5257_s17 }
0x14c9   : > { %2010 = vrot.lane.b32.xlu0 %v3222_v24, %s5257_s17  ;;  %1989 = vrot.lane.b32.xlu1 %v3221_v60, %s5254_s24 }
0x14cd   : > { %2052 = vrot.lane.b32.xlu0 %v3224_v12, %s5270_s11  ;;  %2031 = vrot.lane.b32.xlu1 %v3223_v40, %s5261_s12 }
0x14d1   : > { %2094 = vrot.lane.b32.xlu0 %v3226_v37, %s5277_s0  ;;  %2073 = vrot.lane.b32.xlu1 %v3225_v25, %s5273_s14 }
0x14d5   : > { %2138 = vrot.lane.b32.xlu0 %v3228_v34, %s5285_s20  ;;  %2115 = vrot.lane.b32.xlu1 %v3227_v6, %s5281_s3 }
0x1517   : > { %v1660_v48 = vpop.permute.xlu0 %1659  ;;  %v1658_v62 = vpop.permute.xlu1 %1657 }
0x1518   : > { %1664 = vst.msk [vmem:[#allocation2 + $0x9] sm:$0xff] %vm292_vm4, %v1660_v48  ;;  %1663 = vst.msk [vmem:[#allocation2 + $0x1] sm:$0xff] %vm292_vm4, %v1658_v62 }
0x1519   : > { %1666 = vst.msk [vmem:[#allocation2 + $0x9] sm:$0xff] %vm295_vm5, %v1654_v56  ;;  %1665 = vst.msk [vmem:[#allocation2 + $0x1] sm:$0xff] %vm295_vm5, %v1653_v2 }
0x151b   : > { %v1670_v13 = vpop.permute.xlu0 %1669  ;;  %v1668_v26 = vpop.permute.xlu1 %1667 }
0x151c   : > { %1674 = vst.msk [vmem:[#allocation2 + $0x9] sm:$0xff] %vm304_vm6, %v1670_v13  ;;  %1673 = vst.msk [vmem:[#allocation2 + $0x1] sm:$0xff] %vm304_vm6, %v1668_v26 }
0x151f   : > { %v4562_v49 = vpop.permute.xlu0 %1716  ;;  %v4564_v0 = vpop.permute.xlu1 %1695 }
0x1523   : > { %v1677_v14 = vld [vmem:[#allocation2 + $0xf] sm:$0x1]  ;;  %v1675_v27 = vld [vmem:[#allocation2 + $0x2] sm:$0x1]  ;;  %v4566_v50 = vpop.permute.xlu0 %1758  ;;  %v4568_v1 = vpop.permute.xlu1 %1737 }
0x1524   : > { %1678 = vst.msk [vmem:[#allocation2 + $0x11] sm:$0x1] %vm308_vm7, %v1677_v14  ;;  %1676 = vst.msk [vmem:[#allocation2] sm:$0x1] %vm308_vm7, %v1675_v27  ;;  %v1688_v16 = vld [vmem:[#allocation2 + $0x8] sm:$0xff] }
0x1525   : > { %v1720_v28 = vmul.f32 %v4562_v49, %v1688_v16  ;;  %v1699_v51 = vmul.f32 %v4564_v0, %v1688_v16  ;;  %v1762_v17 = vmul.f32 %v4566_v50, %v1688_v16  ;;  %v1741_v15 = vmul.f32 %v4568_v1, %v1688_v16  ;;  %v4617_v46 = vld [vmem:[#allocation2 + $0x1] sm:$0xff] }
0x1527   : > { %1725 = vrot.lane.b32.xlu0 %v1720_v28, %s5292_s21  ;;  %1704 = vrot.lane.b32.xlu1 %v1699_v51, %s5288_s19  ;;  %v4576_v3 = vpop.permute.xlu0 %1800  ;;  %v4578_v39 = vpop.permute.xlu1 %1779  ;;  %v3229_v51 = vld [vmem:[#allocation8 + $0x16] ss:$0 sm:$0xff] }
0x1528   : > { %v1804_v52 = vmul.f32 %v4576_v3, %v1688_v16  ;;  %v1783_v33 = vmul.f32 %v4578_v39, %v1688_v16 }
0x152b   : > { %1767 = vrot.lane.b32.xlu0 %v1762_v17, %s5298_s18  ;;  %1746 = vrot.lane.b32.xlu1 %v1741_v15, %s5295_s25  ;;  %v4584_v18 = vpop.permute.xlu0 %1842  ;;  %v1822_v11 = vpop.permute.xlu1 %1821  ;;  %v1687_v4 = vld [vmem:[#allocation2] sm:$0xff] }
0x152c   : > { %v1846_v53 = vmul.f32 %v4584_v18, %v1688_v16  ;;  %v1825_v31 = vmul.f32 %v1822_v11, %v1688_v16  ;;  %v1698_v58 = vmul.f32 %v4564_v0, %v1687_v4  ;;  %v1740_v59 = vmul.f32 %v4568_v1, %v1687_v4  ;;  %v4649_v1 = vld [vmem:[#allocation2 + $0x9] sm:$0xff] }
0x152d   : > { %v1719_v47 = vmul.f32 %v4562_v49, %v1687_v4  ;;  %v1782_v24 = vmul.f32 %v4578_v39, %v1687_v4  ;;  %v1761_v60 = vmul.f32 %v4566_v50, %v1687_v4  ;;  %v1824_v12 = vmul.f32 %v1822_v11, %v1687_v4 }
0x152e   : > { %v1803_v40 = vmul.f32 %v4576_v3, %v1687_v4  ;;  %v1845_v25 = vmul.f32 %v4584_v18, %v1687_v4 }
0x152f   : > { %1809 = vrot.lane.b32.xlu0 %v1804_v52, %s5304_s23  ;;  %1788 = vrot.lane.b32.xlu1 %v1783_v33, %s5301_s5  ;;  %v4590_v29 = vpop.permute.xlu0 %1884  ;;  %v1864_v7 = vpop.permute.xlu1 %1863 }
0x1530   : > { %v1888_v30 = vmul.f32 %v4590_v29, %v1688_v16  ;;  %v1867_v38 = vmul.f32 %v1864_v7, %v1688_v16  ;;  %v1866_v37 = vmul.f32 %v1864_v7, %v1687_v4  ;;  %v1887_v6 = vmul.f32 %v4590_v29, %v1687_v4 }
0x1533   : > { %1851 = vrot.lane.b32.xlu0 %v1846_v53, %s5301_s5  ;;  %1830 = vrot.lane.b32.xlu1 %v1825_v31, %s5307_s30  ;;  %v4595_v35 = vpop.permute.xlu0 %1926  ;;  %v1906_v8 = vpop.permute.xlu1 %1905 }
0x1534   : > { %v1930_v36 = vmul.f32 %v4595_v35, %v1688_v16  ;;  %v1909_v61 = vmul.f32 %v1906_v8, %v1688_v16  ;;  %v1908_v34 = vmul.f32 %v1906_v8, %v1687_v4  ;;  %v1929_v62 = vmul.f32 %v4595_v35, %v1687_v4 }
0x1537   : > { %1893 = vrot.lane.b32.xlu0 %v1888_v30, %s5307_s30  ;;  %1872 = vrot.lane.b32.xlu1 %v1867_v38, %s5304_s23  ;;  %v4600_v41 = vpop.permute.xlu0 %1968  ;;  %v1948_v54 = vpop.permute.xlu1 %1947 }
0x1538   : > { %v1972_v42 = vmul.f32 %v4600_v41, %v1688_v16  ;;  %v1951_v55 = vmul.f32 %v1948_v54, %v1688_v16  ;;  %v1950_v48 = vmul.f32 %v1948_v54, %v1687_v4  ;;  %v1971_v26 = vmul.f32 %v4600_v41, %v1687_v4 }
0x153b   : > { %1935 = vrot.lane.b32.xlu0 %v1930_v36, %s5319_s22  ;;  %1914 = vrot.lane.b32.xlu1 %v1909_v61, %s5316_s13  ;;  %v2011_v32 = vpop.permute.xlu0 %2010  ;;  %v1990_v19 = vpop.permute.xlu1 %1989 }
0x153c   : > { %v2014_v43 = vmul.f32 %v2011_v32, %v1688_v16  ;;  %v1993_v56 = vmul.f32 %v1990_v19, %v1688_v16  ;;  %v1992_v13 = vmul.f32 %v1990_v19, %v1687_v4  ;;  %v2013_v0 = vmul.f32 %v2011_v32, %v1687_v4 }
0x153f   : > { %1977 = vrot.lane.b32.xlu0 %v1972_v42, %s5324_s4  ;;  %1956 = vrot.lane.b32.xlu1 %v1951_v55, %s5260_s26  ;;  %v2032_v63 = vpop.permute.xlu1 %2031  ;;  %v2053_v20 = vpop.permute.xlu0 %2052 }
0x1540   : > { %v2056_v5 = vmul.f32 %v2053_v20, %v1688_v16  ;;  %v2035_v22 = vmul.f32 %v2032_v63, %v1688_v16  ;;  %v2034_v49 = vmul.f32 %v2032_v63, %v1687_v4  ;;  %v2055_v27 = vmul.f32 %v2053_v20, %v1687_v4 }
0x1543   : > { %2019 = vrot.lane.b32.xlu0 %v2014_v43, %s5260_s26  ;;  %1998 = vrot.lane.b32.xlu1 %v1993_v56, %s5319_s22  ;;  %v2074_v2 = vpop.permute.xlu1 %2073  ;;  %v2095_v21 = vpop.permute.xlu0 %2094 }
0x1544   : > { %v2098_v44 = vmul.f32 %v2095_v21, %v1688_v16  ;;  %v2077_v57 = vmul.f32 %v2074_v2, %v1688_v16  ;;  %v2076_v14 = vmul.f32 %v2074_v2, %v1687_v4  ;;  %v3230_v2 = vld [vmem:[#allocation8 + $0x17] ss:$0 sm:$0xff] }
0x1547   : > { %2061 = vrot.lane.b32.xlu0 %v2056_v5, %s5409_s28  ;;  %2040 = vrot.lane.b32.xlu1 %v2035_v22, %s5324_s4  ;;  %v2116_v45 = vpop.permute.xlu1 %2115  ;;  %v2139_v23 = vpop.permute.xlu0 %2138 }
0x1548   : > { %v2119_v9 = vmul.f32 %v2116_v45, %v1688_v16  ;;  %v2141_v10 = vmul.f32 %v2139_v23, %v4617_v46  ;;  %v2118_v50 = vmul.f32 %v2116_v45, %v1687_v4  ;;  %v2097_v16 = vmul.f32 %v2095_v21, %v1687_v4 }
0x1549   : > { %v2142_v28 = vmul.f32 %v2139_v23, %v4649_v1 }
0x154b   : > { %2103 = vrot.lane.b32.xlu0 %v2098_v44, %s5280_s1  ;;  %2082 = vrot.lane.b32.xlu1 %v2077_v57, %s5410_s10 }
0x154f   : > { %1702 = vrot.lane.b32.xlu0 %v1698_v58, %s5288_s19  ;;  %2124 = vrot.lane.b32.xlu1 %v2119_v9, %s5284_s27 }
0x1553   : > { %1744 = vrot.lane.b32.xlu0 %v1740_v59, %s5295_s25  ;;  %2145 = vrot.lane.b32.xlu1 %v2141_v10, %s5288_s19 }
0x1557   : > { %1786 = vrot.lane.b32.xlu0 %v1782_v24, %s5301_s5  ;;  %1723 = vrot.lane.b32.xlu1 %v1719_v47, %s5292_s21 }
0x155b   : > { %1828 = vrot.lane.b32.xlu0 %v1824_v12, %s5307_s30  ;;  %1765 = vrot.lane.b32.xlu1 %v1761_v60, %s5298_s18 }
0x155f   : > { %1870 = vrot.lane.b32.xlu0 %v1866_v37, %s5304_s23  ;;  %1807 = vrot.lane.b32.xlu1 %v1803_v40, %s5304_s23 }
0x1563   : > { %1912 = vrot.lane.b32.xlu0 %v1908_v34, %s5316_s13  ;;  %1849 = vrot.lane.b32.xlu1 %v1845_v25, %s5301_s5 }
0x1567   : > { %1954 = vrot.lane.b32.xlu0 %v1950_v48, %s5260_s26  ;;  %1891 = vrot.lane.b32.xlu1 %v1887_v6, %s5307_s30 }
0x156b   : > { %1996 = vrot.lane.b32.xlu0 %v1992_v13, %s5319_s22  ;;  %1933 = vrot.lane.b32.xlu1 %v1929_v62, %s5319_s22  ;;  %v3231_v13 = vld [vmem:[#allocation8 + $0x18] ss:$0 sm:$0xff] }
0x156f   : > { %2038 = vrot.lane.b32.xlu0 %v2034_v49, %s5324_s4  ;;  %1975 = vrot.lane.b32.xlu1 %v1971_v26, %s5324_s4 }
0x1573   : > { %2080 = vrot.lane.b32.xlu0 %v2076_v14, %s5410_s10  ;;  %2017 = vrot.lane.b32.xlu1 %v2013_v0, %s5260_s26 }
0x1577   : > { %2059 = vrot.lane.b32.xlu1 %v2055_v27, %s5409_s28  ;;  %2122 = vrot.lane.b32.xlu0 %v2118_v50, %s5284_s27  ;;  %v3232_v50 = vld [vmem:[#allocation8 + $0x19] ss:$0 sm:$0xff] }
0x157b   : > { %2101 = vrot.lane.b32.xlu1 %v2097_v16, %s5280_s1  ;;  %2147 = vrot.lane.b32.xlu0 %v2142_v28, %s5288_s19 }
0x157f   : > { %2159 = vrot.lane.b32.xlu1 %v3229_v51, %s5289_s15 }
0x1599   : > { %v4655_v3 = vpop.permute.xlu1 %1704  ;;  %v4693_v61 = vpop.permute.xlu0 %1725 }
0x159d   : > { %v4657_v39 = vpop.permute.xlu1 %1746  ;;  %v4699_v42 = vpop.permute.xlu0 %1767 }
0x15a1   : > { %v4659_v17 = vpop.permute.xlu1 %1788  ;;  %v4703_v63 = vpop.permute.xlu0 %1809 }
0x15a5   : > { %v4661_v15 = vpop.permute.xlu1 %1830  ;;  %v4709_v5 = vpop.permute.xlu0 %1851 }
0x15a9   : > { %v4663_v18 = vpop.permute.xlu1 %1872  ;;  %v4712_v22 = vpop.permute.xlu0 %1893 }
0x15ad   : > { %v4665_v11 = vpop.permute.xlu1 %1914  ;;  %v4714_v21 = vpop.permute.xlu0 %1935 }
0x15b1   : > { %v4667_v52 = vpop.permute.xlu1 %1956  ;;  %v4716_v44 = vpop.permute.xlu0 %1977 }
0x15b5   : > { %v4669_v33 = vpop.permute.xlu1 %1998  ;;  %v4718_v57 = vpop.permute.xlu0 %2019 }
0x15b9   : > { %v4671_v29 = vpop.permute.xlu1 %2040  ;;  %v4720_v4 = vpop.permute.xlu0 %2061 }
0x15bd   : > { %v4673_v7 = vpop.permute.xlu1 %2082  ;;  %v4722_v45 = vpop.permute.xlu0 %2103 }
0x15c1   : > { %v4675_v53 = vpop.permute.xlu1 %2124  ;;  %v4724_v58 = vpop.permute.xlu0 %1702 }
0x15c2   : > { %5411 = vst [vmem:[#allocation24_spill] sm:$0xff] %v4675_v53 }
0x15c5   : > { %v4677_v31 = vpop.permute.xlu1 %2145  ;;  %v4726_v9 = vpop.permute.xlu0 %1744 }
0x15c9   : > { %v4679_v35 = vpop.permute.xlu1 %1723  ;;  %v4728_v23 = vpop.permute.xlu0 %1786 }
0x15cd   : > { %v4681_v8 = vpop.permute.xlu1 %1765  ;;  %v4730_v59 = vpop.permute.xlu0 %1828 }
0x15d1   : > { %v4683_v30 = vpop.permute.xlu1 %1807  ;;  %v4732_v10 = vpop.permute.xlu0 %1870 }
0x15d5   : > { %v4685_v38 = vpop.permute.xlu1 %1849  ;;  %v4734_v47 = vpop.permute.xlu0 %1912 }
0x15d9   : > { %v4687_v41 = vpop.permute.xlu1 %1891  ;;  %v4736_v24 = vpop.permute.xlu0 %1954 }
0x15dd   : > { %v4689_v54 = vpop.permute.xlu1 %1933  ;;  %v4738_v60 = vpop.permute.xlu0 %1996 }
0x15e1   : > { %v4691_v36 = vpop.permute.xlu1 %1975  ;;  %v4740_v12 = vpop.permute.xlu0 %2038 }
0x15e5   : > { %v4695_v32 = vpop.permute.xlu1 %2017  ;;  %v4742_v40 = vpop.permute.xlu0 %2080 }
0x15e9   : > { %v4697_v19 = vpop.permute.xlu1 %2059  ;;  %v4744_v37 = vpop.permute.xlu0 %2122 }
0x15ed   : > { %v4701_v55 = vpop.permute.xlu1 %2101  ;;  %v4746_v25 = vpop.permute.xlu0 %2147 }
0x15ee   : > { %5412 = vst [vmem:[#allocation26_spill] sm:$0xff] %v4746_v25 }
0x15f1   : > { %v2160_v20 = vpop.permute.xlu1 %2159 }
0x15f2   : > { %v2162_v43 = vmul.f32 %v2160_v20, %v4617_v46  ;;  %v2163_v56 = vmul.f32 %v2160_v20, %v4649_v1 }
0x15f4   : > { %2168 = vrot.lane.b32.xlu1 %v2163_v56, %s5292_s21  ;;  %2166 = vrot.lane.b32.xlu0 %v2162_v43, %s5292_s21  ;;  %v3233_v56 = vld [vmem:[#allocation8 + $0x1a] ss:$0 sm:$0xff] }
0x15f8   : > { %2180 = vrot.lane.b32.xlu0 %v3230_v2, %s5238_s6 }
0x1666   : > { %v4748_v34 = vpop.permute.xlu0 %2166  ;;  %v4755_v26 = vpop.permute.xlu1 %2168 }
0x1667   : > { %5413 = vst [vmem:[#allocation25_spill] sm:$0xff] %v4755_v26 }
0x166a   : > { %v2181_v6 = vpop.permute.xlu0 %2180 }
0x166b   : > { %v2183_v48 = vmul.f32 %v2181_v6, %v4617_v46  ;;  %v2184_v62 = vmul.f32 %v2181_v6, %v4649_v1 }
0x166d   : > { %2189 = vrot.lane.b32.xlu0 %v2184_v62, %s5295_s25  ;;  %2187 = vrot.lane.b32.xlu1 %v2183_v48, %s5295_s25 }
0x1671   : > { %2201 = vrot.lane.b32.xlu1 %v3231_v13, %s5239_s9 }
0x16df   : > { %v4757_v49 = vpop.permute.xlu1 %2187  ;;  %v4764_v16 = vpop.permute.xlu0 %2189 }
0x16e0   : > { %5414 = vst [vmem:[#allocation28_spill] sm:$0xff] %v4764_v16 }
0x16e3   : > { %v2202_v0 = vpop.permute.xlu1 %2201 }
0x16e4   : > { %v2204_v14 = vmul.f32 %v2202_v0, %v4617_v46  ;;  %v2205_v27 = vmul.f32 %v2202_v0, %v4649_v1  ;;  %v3234_v0 = vld [vmem:[#allocation8 + $0x1b] ss:$0 sm:$0xff] }
0x16e6   : > { %2210 = vrot.lane.b32.xlu1 %v2205_v27, %s5298_s18  ;;  %2208 = vrot.lane.b32.xlu0 %v2204_v14, %s5298_s18 }
0x16ea   : > { %2222 = vrot.lane.b32.xlu0 %v3232_v50, %s5240_s8 }
0x1758   : > { %v4766_v28 = vpop.permute.xlu0 %2208  ;;  %v4773_v2 = vpop.permute.xlu1 %2210 }
0x1759   : > { %5415 = vst [vmem:[#allocation27_spill] sm:$0xff] %v4773_v2 }
0x175c   : > { %v2223_v51 = vpop.permute.xlu0 %2222 }
0x175d   : > { %v2225_v20 = vmul.f32 %v2223_v51, %v4617_v46  ;;  %v2226_v43 = vmul.f32 %v2223_v51, %v4649_v1 }
0x175f   : > { %2231 = vrot.lane.b32.xlu0 %v2226_v43, %s5301_s5  ;;  %2229 = vrot.lane.b32.xlu1 %v2225_v20, %s5301_s5  ;;  %v3235_v43 = vld [vmem:[#allocation8 + $0x1c] ss:$0 sm:$0xff] }
0x1763   : > { %2243 = vrot.lane.b32.xlu1 %v3233_v56, %s5241_s7 }
0x17d1   : > { %v4775_v6 = vpop.permute.xlu1 %2229  ;;  %v4782_v14 = vpop.permute.xlu0 %2231 }
0x17d2   : > { %5416 = vst [vmem:[#allocation30_spill] sm:$0xff] %v4782_v14 }
0x17d5   : > { %v2244_v48 = vpop.permute.xlu1 %2243 }
0x17d6   : > { %v2246_v62 = vmul.f32 %v2244_v48, %v4617_v46  ;;  %v2247_v13 = vmul.f32 %v2244_v48, %v4649_v1 }
0x17d8   : > { %2252 = vrot.lane.b32.xlu1 %v2247_v13, %s5304_s23  ;;  %2250 = vrot.lane.b32.xlu0 %v2246_v62, %s5304_s23 }
0x17dc   : > { %2264 = vrot.lane.b32.xlu0 %v3234_v0, %s5243_s16 }
0x184a   : > { %v4784_v27 = vpop.permute.xlu0 %2250  ;;  %v4791_v56 = vpop.permute.xlu1 %2252 }
0x184b   : > { %5417 = vst [vmem:[#allocation29_spill] sm:$0xff] %v4791_v56 }
0x184e   : > { %v2265_v50 = vpop.permute.xlu0 %2264 }
0x184f   : > { %v2267_v51 = vmul.f32 %v2265_v50, %v4617_v46  ;;  %v2268_v20 = vmul.f32 %v2265_v50, %v4649_v1  ;;  %v3236_v50 = vld [vmem:[#allocation8 + $0x1d] ss:$0 sm:$0xff] }
0x1851   : > { %2273 = vrot.lane.b32.xlu0 %v2268_v20, %s5307_s30  ;;  %2271 = vrot.lane.b32.xlu1 %v2267_v51, %s5307_s30 }
0x1855   : > { %2285 = vrot.lane.b32.xlu1 %v3235_v43, %s5240_s8 }
0x18c3   : > { %v4793_v48 = vpop.permute.xlu1 %2271  ;;  %v4800_v51 = vpop.permute.xlu0 %2273 }
0x18c4   : > { %5418 = vst [vmem:[#allocation32_spill] sm:$0xff] %v4800_v51 }
0x18c7   : > { %v2286_v62 = vpop.permute.xlu1 %2285 }
0x18c8   : > { %v2288_v13 = vmul.f32 %v2286_v62, %v4617_v46  ;;  %v2289_v0 = vmul.f32 %v2286_v62, %v4649_v1  ;;  %v3237_v62 = vld [vmem:[#allocation8 + $0x1e] ss:$0 sm:$0xff] }
0x18ca   : > { %2294 = vrot.lane.b32.xlu1 %v2289_v0, %s5301_s5  ;;  %2292 = vrot.lane.b32.xlu0 %v2288_v13, %s5301_s5 }
0x18ce   : > { %2306 = vrot.lane.b32.xlu0 %v3236_v50, %s5241_s7 }
0x193c   : > { %v2293_v20 = vpop.permute.xlu0 %2292  ;;  %v4807_v0 = vpop.permute.xlu1 %2294 }
0x193d   : > { %5419 = vst [vmem:[#allocation31_spill] sm:$0xff] %v4807_v0 }
0x1940   : > { %v2307_v43 = vpop.permute.xlu0 %2306 }
0x1941   : > { %v2309_v56 = vmul.f32 %v2307_v43, %v4617_v46  ;;  %v2310_v14 = vmul.f32 %v2307_v43, %v4649_v1  ;;  %v3238_v43 = vld [vmem:[#allocation8 + $0x1f] ss:$0 sm:$0xff] }
0x1943   : > { %2315 = vrot.lane.b32.xlu0 %v2310_v14, %s5304_s23  ;;  %2313 = vrot.lane.b32.xlu1 %v2309_v56, %s5304_s23  ;;  %s5421_s23 = sld [smem:[#allocation98_spill]] }
0x1947   : > { %2327 = vrot.lane.b32.xlu1 %v3237_v62, %s5243_s16 }
0x19b5   : > { %v2314_v13 = vpop.permute.xlu1 %2313  ;;  %v4814_v14 = vpop.permute.xlu0 %2315 }
0x19b6   : > { %5420 = vst [vmem:[#allocation34_spill] sm:$0xff] %v4814_v14 }
0x19b9   : > { %v2328_v2 = vpop.permute.xlu1 %2327 }
0x19ba   : > { %v2330_v50 = vmul.f32 %v2328_v2, %v4617_v46  ;;  %v2331_v51 = vmul.f32 %v2328_v2, %v4649_v1  ;;  %v3239_v2 = vld [vmem:[#allocation8 + $0x20] ss:$0 sm:$0xff] }
0x19bc   : > { %2336 = vrot.lane.b32.xlu1 %v2331_v51, %s5307_s30  ;;  %2334 = vrot.lane.b32.xlu0 %v2330_v50, %s5307_s30  ;;  %v4824_v51 = vld [vmem:[%s5421_s23] ss:$0 sm:$0xff] }
0x19bd   : > { %v1708_v50 = vadd.f32 %v4824_v51, %v4724_v58 }
0x19c0   : > { %2348 = vrot.lane.b32.xlu0 %v3238_v43, %s5251_s29  ;;  %v1729_v43 = vadd.f32 %v4679_v35, %v1708_v50  ;;  %v3249_v50 = vld [vmem:[#allocation8 + $0x2a] ss:$0 sm:$0xff] }
0x19c2   : > { %v1750_v14 = vadd.f32 %v4726_v9, %v1729_v43  ;;  %v3248_v43 = vld [vmem:[#allocation8 + $0x29] ss:$0 sm:$0xff] }
0x1a2e   : > { %v2335_v56 = vpop.permute.xlu0 %2334 }
0x1a32   : > { %v2349_v16 = vpop.permute.xlu0 %2348 }
0x1a33   : > { %v2351_v62 = vmul.f32 %v2349_v16, %v4617_v46  ;;  %v2352_v0 = vmul.f32 %v2349_v16, %v4649_v1  ;;  %v1771_v16 = vadd.f32 %v4681_v8, %v1750_v14  ;;  %v3247_v14 = vld [vmem:[#allocation8 + $0x28] ss:$0 sm:$0xff] }
0x1a35   : > { %2357 = vrot.lane.b32.xlu0 %v2352_v0, %s5316_s13  ;;  %2355 = vrot.lane.b32.xlu1 %v2351_v62, %s5316_s13  ;;  %v1792_v0 = vadd.f32 %v4728_v23, %v1771_v16  ;;  %v3251_v16 = vld [vmem:[#allocation8 + $0x2c] ss:$0 sm:$0xff] }
0x1a37   : > { %v1813_v62 = vadd.f32 %v4683_v30, %v1792_v0  ;;  %v3250_v0 = vld [vmem:[#allocation8 + $0x2b] ss:$0 sm:$0xff] }
0x1a39   : > { %2369 = vrot.lane.b32.xlu1 %v3239_v2, %s5254_s24  ;;  %v1834_v2 = vadd.f32 %v4730_v59, %v1813_v62  ;;  %v3253_v62 = vld [vmem:[#allocation8 + $0x2e] ss:$0 sm:$0xff] }
0x1a3b   : > { %v1855_v26 = vadd.f32 %v4685_v38, %v1834_v2  ;;  %v3252_v2 = vld [vmem:[#allocation8 + $0x2d] ss:$0 sm:$0xff] }
0x1a3d   : > { %v1876_v25 = vadd.f32 %v4732_v10, %v1855_v26 }
0x1a3f   : > { %v1897_v53 = vadd.f32 %v4687_v41, %v1876_v25 }
0x1a41   : > { %v1918_v58 = vadd.f32 %v4734_v47, %v1897_v53 }
0x1a43   : > { %v1939_v35 = vadd.f32 %v4689_v54, %v1918_v58  ;;  %v3255_v58 = vld [vmem:[#allocation8 + $0x30] ss:$0 sm:$0xff] }
0x1a45   : > { %v1960_v9 = vadd.f32 %v4736_v24, %v1939_v35  ;;  %v3254_v35 = vld [vmem:[#allocation8 + $0x2f] ss:$0 sm:$0xff] }
0x1a47   : > { %v1981_v8 = vadd.f32 %v4691_v36, %v1960_v9  ;;  %v3257_v9 = vld [vmem:[#allocation8 + $0x32] ss:$0 sm:$0xff] }
0x1a49   : > { %v2002_v23 = vadd.f32 %v4738_v60, %v1981_v8  ;;  %v3256_v8 = vld [vmem:[#allocation8 + $0x31] ss:$0 sm:$0xff] }
0x1a4b   : > { %v2023_v30 = vadd.f32 %v4695_v32, %v2002_v23  ;;  %v3259_v23 = vld [vmem:[#allocation8 + $0x34] ss:$0 sm:$0xff] }
0x1a4d   : > { %v2044_v59 = vadd.f32 %v4740_v12, %v2023_v30  ;;  %v3258_v30 = vld [vmem:[#allocation8 + $0x33] ss:$0 sm:$0xff] }
0x1a4f   : > { %v2065_v38 = vadd.f32 %v4697_v19, %v2044_v59  ;;  %v3261_v59 = vld [vmem:[#allocation8 + $0x36] ss:$0 sm:$0xff] }
0x1a51   : > { %v2086_v10 = vadd.f32 %v4742_v40, %v2065_v38  ;;  %v4855_v40 = vpop.permute.xlu1 %2336  ;;  %v3260_v38 = vld [vmem:[#allocation8 + $0x35] ss:$0 sm:$0xff] }
0x1a53   : > { %v2107_v41 = vadd.f32 %v4701_v55, %v2086_v10  ;;  %v3263_v10 = vld [vmem:[#allocation8 + $0x38] ss:$0 sm:$0xff] }
0x1a55   : > { %v2128_v53 = vadd.f32 %v4744_v37, %v2107_v41  ;;  %v3262_v41 = vld [vmem:[#allocation8 + $0x37] ss:$0 sm:$0xff] }
0x1a57   : > { %v2151_v54 = vadd.f32 %v4677_v31, %v2128_v53  ;;  %v3265_v53 = vld [vmem:[#allocation8 + $0x3a] ss:$0 sm:$0xff] }
0x1a59   : > { %v2172_v47 = vadd.f32 %v4748_v34, %v2151_v54  ;;  %v3264_v54 = vld [vmem:[#allocation8 + $0x39] ss:$0 sm:$0xff] }
0x1a5b   : > { %v2193_v36 = vadd.f32 %v4757_v49, %v2172_v47  ;;  %v3267_v47 = vld [vmem:[#allocation8 + $0x3c] ss:$0 sm:$0xff] }
0x1a5d   : > { %v2214_v24 = vadd.f32 %v4766_v28, %v2193_v36  ;;  %v3241_v28 = vld [vmem:[#allocation8 + $0x22] ss:$0 sm:$0xff]  ;;  %v3266_v36 = vld [vmem:[#allocation8 + $0x3b] ss:$0 sm:$0xff] }
0x1a5f   : > { %v2235_v32 = vadd.f32 %v4775_v6, %v2214_v24  ;;  %v3240_v6 = vld [vmem:[#allocation8 + $0x21] ss:$0 sm:$0xff]  ;;  %v3269_v24 = vld [vmem:[#allocation8 + $0x3e] ss:$0 sm:$0xff] }
0x1a61   : > { %v2256_v60 = vadd.f32 %v4784_v27, %v2235_v32  ;;  %v3243_v27 = vld [vmem:[#allocation8 + $0x24] ss:$0 sm:$0xff]  ;;  %v3268_v32 = vld [vmem:[#allocation8 + $0x3d] ss:$0 sm:$0xff] }
0x1a63   : > { %v2277_v19 = vadd.f32 %v4793_v48, %v2256_v60  ;;  %v3242_v48 = vld [vmem:[#allocation8 + $0x23] ss:$0 sm:$0xff] }
0x1a65   : > { %v2298_v12 = vadd.f32 %v2293_v20, %v2277_v19  ;;  %v3245_v20 = vld [vmem:[#allocation8 + $0x26] ss:$0 sm:$0xff] }
0x1a67   : > { %v2319_v55 = vadd.f32 %v2314_v13, %v2298_v12  ;;  %v3244_v13 = vld [vmem:[#allocation8 + $0x25] ss:$0 sm:$0xff] }
0x1a69   : > { %v2340_v25 = vadd.f32 %v2335_v56, %v2319_v55  ;;  %v3246_v56 = vld [vmem:[#allocation8 + $0x27] ss:$0 sm:$0xff] }
0x1aa7   : > { %v2356_v37 = vpop.permute.xlu1 %2355  ;;  %v4893_v60 = vpop.permute.xlu0 %2357 }
0x1aa8   : > { %v4857_v26 = vadd.f32 %v2356_v37, %v2340_v25 }
0x1aab   : > { %v2370_v31 = vpop.permute.xlu1 %2369 }
0x1aac   : > { %v2372_v34 = vmul.f32 %v2370_v31, %v4617_v46  ;;  %v2373_v49 = vmul.f32 %v2370_v31, %v4649_v1 }
0x1aae   : > { %2378 = vrot.lane.b32.xlu1 %v2373_v49, %s5319_s22  ;;  %2376 = vrot.lane.b32.xlu0 %v2372_v34, %s5319_s22 }
0x1ab2   : > { %2411 = vrot.lane.b32.xlu1 %v3241_v28, %s5261_s12  ;;  %2390 = vrot.lane.b32.xlu0 %v3240_v6, %s5257_s17 }
0x1ab6   : > { %2453 = vrot.lane.b32.xlu1 %v3243_v27, %s5257_s17  ;;  %2432 = vrot.lane.b32.xlu0 %v3242_v48, %s5254_s24 }
0x1aba   : > { %2495 = vrot.lane.b32.xlu1 %v3245_v20, %s5270_s11  ;;  %2474 = vrot.lane.b32.xlu0 %v3244_v13, %s5261_s12 }
0x1abe   : > { %2537 = vrot.lane.b32.xlu1 %v3247_v14, %s5277_s0  ;;  %2516 = vrot.lane.b32.xlu0 %v3246_v56, %s5273_s14 }
0x1ac2   : > { %2581 = vrot.lane.b32.xlu1 %v3249_v50, %s5285_s20  ;;  %2558 = vrot.lane.b32.xlu0 %v3248_v43, %s5281_s3 }
0x1ac6   : > { %2623 = vrot.lane.b32.xlu1 %v3251_v16, %s5238_s6  ;;  %2602 = vrot.lane.b32.xlu0 %v3250_v0, %s5289_s15  ;;  %s5439_s15 = sld [smem:[#allocation99_spill]] }
0x1aca   : > { %2665 = vrot.lane.b32.xlu1 %v3253_v62, %s5240_s8  ;;  %2644 = vrot.lane.b32.xlu0 %v3252_v2, %s5239_s9 }
0x1ace   : > { %2707 = vrot.lane.b32.xlu1 %v3255_v58, %s5243_s16  ;;  %2686 = vrot.lane.b32.xlu0 %v3254_v35, %s5241_s7 }
0x1ad2   : > { %2749 = vrot.lane.b32.xlu1 %v3257_v9, %s5241_s7  ;;  %2728 = vrot.lane.b32.xlu0 %v3256_v8, %s5240_s8  ;;  %s3566_s8 = smov [#allocation9]  }
0x1ad6   : > { %2791 = vrot.lane.b32.xlu1 %v3259_v23, %s5251_s29  ;;  %2770 = vrot.lane.b32.xlu0 %v3258_v30, %s5243_s16 }
0x1ada   : > { %2833 = vrot.lane.b32.xlu1 %v3261_v59, %s5257_s17  ;;  %2812 = vrot.lane.b32.xlu0 %v3260_v38, %s5254_s24 }
0x1ade   : > { %2875 = vrot.lane.b32.xlu1 %v3263_v10, %s5254_s24  ;;  %2854 = vrot.lane.b32.xlu0 %v3262_v41, %s5261_s12  ;;  %v4936_v10 = vld [vmem:[#allocation2 + $0xa] sm:$0xff]  ;;  %v4938_v41 = vld [vmem:[#allocation2 + $0x2] sm:$0xff] }
0x1ae2   : > { %2917 = vrot.lane.b32.xlu1 %v3265_v53, %s5261_s12  ;;  %2896 = vrot.lane.b32.xlu0 %v3264_v54, %s5257_s17 }
0x1ae6   : > { %2959 = vrot.lane.b32.xlu1 %v3267_v47, %s5273_s14  ;;  %2938 = vrot.lane.b32.xlu0 %v3266_v36, %s5270_s11 }
0x1aea   : > { %3001 = vrot.lane.b32.xlu1 %v3269_v24, %s5281_s3  ;;  %2980 = vrot.lane.b32.xlu0 %v3268_v32, %s5277_s0  ;;  %s5422_s0 = smov 122   ;;  %s5435_s3 = sld [smem:[#allocation23_spill]] }
0x1b20   : > { %v4895_v19 = vpop.permute.xlu1 %2378  ;;  %v2377_v12 = vpop.permute.xlu0 %2376 }
0x1b21   : > { %v4898_v55 = vadd.f32 %v2377_v12, %v4857_v26 }
0x1b24   : > { %v2391_v25 = vpop.permute.xlu0 %2390  ;;  %v2412_v34 = vpop.permute.xlu1 %2411 }
0x1b25   : > { %v2393_v37 = vmul.f32 %v2391_v25, %v4617_v46  ;;  %v2394_v31 = vmul.f32 %v2391_v25, %v4649_v1  ;;  %v2414_v49 = vmul.f32 %v2412_v34, %v4617_v46  ;;  %v2415_v28 = vmul.f32 %v2412_v34, %v4649_v1 }
0x1b27   : > { %2399 = vrot.lane.b32.xlu1 %v2394_v31, %s5260_s26  ;;  %2397 = vrot.lane.b32.xlu0 %v2393_v37, %s5260_s26 }
0x1b28   : > { %v2433_v6 = vpop.permute.xlu0 %2432  ;;  %v2454_v48 = vpop.permute.xlu1 %2453 }
0x1b29   : > { %v2435_v26 = vmul.f32 %v2433_v6, %v4617_v46  ;;  %v2436_v27 = vmul.f32 %v2433_v6, %v4649_v1  ;;  %v2456_v20 = vmul.f32 %v2454_v48, %v4617_v46  ;;  %v2457_v13 = vmul.f32 %v2454_v48, %v4649_v1 }
0x1b2b   : > { %2420 = vrot.lane.b32.xlu1 %v2415_v28, %s5324_s4  ;;  %2418 = vrot.lane.b32.xlu0 %v2414_v49, %s5324_s4 }
0x1b2c   : > { %v2475_v14 = vpop.permute.xlu0 %2474  ;;  %v2496_v43 = vpop.permute.xlu1 %2495 }
0x1b2d   : > { %v2477_v56 = vmul.f32 %v2475_v14, %v4617_v46  ;;  %v2478_v50 = vmul.f32 %v2475_v14, %v4649_v1  ;;  %v2498_v16 = vmul.f32 %v2496_v43, %v4617_v46  ;;  %v2499_v0 = vmul.f32 %v2496_v43, %v4649_v1 }
0x1b2f   : > { %2441 = vrot.lane.b32.xlu1 %v2436_v27, %s5319_s22  ;;  %2439 = vrot.lane.b32.xlu0 %v2435_v26, %s5319_s22 }
0x1b30   : > { %v2517_v62 = vpop.permute.xlu0 %2516  ;;  %v2538_v35 = vpop.permute.xlu1 %2537 }
0x1b31   : > { %v2519_v2 = vmul.f32 %v2517_v62, %v4617_v46  ;;  %v2520_v58 = vmul.f32 %v2517_v62, %v4649_v1  ;;  %v2540_v9 = vmul.f32 %v2538_v35, %v4617_v46  ;;  %v2541_v8 = vmul.f32 %v2538_v35, %v4649_v1 }
0x1b33   : > { %2462 = vrot.lane.b32.xlu1 %v2457_v13, %s5260_s26  ;;  %2460 = vrot.lane.b32.xlu0 %v2456_v20, %s5260_s26 }
0x1b34   : > { %v2559_v23 = vpop.permute.xlu0 %2558  ;;  %v2582_v38 = vpop.permute.xlu1 %2581 }
0x1b35   : > { %v2561_v30 = vmul.f32 %v2559_v23, %v4617_v46  ;;  %v2562_v59 = vmul.f32 %v2559_v23, %v4649_v1  ;;  %v2584_v53 = vmul.f32 %v2582_v38, %v4938_v41  ;;  %v2585_v54 = vmul.f32 %v2582_v38, %v4936_v10 }
0x1b37   : > { %2483 = vrot.lane.b32.xlu1 %v2478_v50, %s5324_s4  ;;  %2481 = vrot.lane.b32.xlu0 %v2477_v56, %s5324_s4 }
0x1b38   : > { %v2603_v47 = vpop.permute.xlu0 %2602  ;;  %v2624_v36 = vpop.permute.xlu1 %2623 }
0x1b39   : > { %v2605_v46 = vmul.f32 %v2603_v47, %v4938_v41  ;;  %v2606_v1 = vmul.f32 %v2603_v47, %v4936_v10  ;;  %v2626_v24 = vmul.f32 %v2624_v36, %v4938_v41  ;;  %v2627_v32 = vmul.f32 %v2624_v36, %v4936_v10 }
0x1b3b   : > { %2504 = vrot.lane.b32.xlu1 %v2499_v0, %s5409_s28  ;;  %2502 = vrot.lane.b32.xlu0 %v2498_v16, %s5409_s28  ;;  %v1709_v0 = vadd.f32 %v4824_v51, %v4655_v3 }
0x1b3c   : > { %v2645_v12 = vpop.permute.xlu0 %2644  ;;  %v2666_v31 = vpop.permute.xlu1 %2665 }
0x1b3d   : > { %v2647_v25 = vmul.f32 %v2645_v12, %v4938_v41  ;;  %v2648_v37 = vmul.f32 %v2645_v12, %v4936_v10  ;;  %v2668_v34 = vmul.f32 %v2666_v31, %v4938_v41  ;;  %v2669_v49 = vmul.f32 %v2666_v31, %v4936_v10 }
0x1b3e   : > { %v1730_v35 = vadd.f32 %v4693_v61, %v1709_v0 }
0x1b3f   : > { %2525 = vrot.lane.b32.xlu1 %v2520_v58, %s5410_s10  ;;  %2523 = vrot.lane.b32.xlu0 %v2519_v2, %s5410_s10 }
0x1b40   : > { %v2687_v28 = vpop.permute.xlu0 %2686  ;;  %v2708_v27 = vpop.permute.xlu1 %2707  ;;  %v1751_v51 = vadd.f32 %v4657_v39, %v1730_v35 }
0x1b41   : > { %v2689_v6 = vmul.f32 %v2687_v28, %v4938_v41  ;;  %v2690_v26 = vmul.f32 %v2687_v28, %v4936_v10  ;;  %v2710_v48 = vmul.f32 %v2708_v27, %v4938_v41  ;;  %v2711_v20 = vmul.f32 %v2708_v27, %v4936_v10 }
0x1b43   : > { %2546 = vrot.lane.b32.xlu1 %v2541_v8, %s5280_s1  ;;  %2544 = vrot.lane.b32.xlu0 %v2540_v9, %s5280_s1 }
0x1b44   : > { %v2729_v13 = vpop.permute.xlu0 %2728  ;;  %v2750_v50 = vpop.permute.xlu1 %2749 }
0x1b45   : > { %v2731_v14 = vmul.f32 %v2729_v13, %v4938_v41  ;;  %v2732_v56 = vmul.f32 %v2729_v13, %v4936_v10  ;;  %v2752_v43 = vmul.f32 %v2750_v50, %v4938_v41  ;;  %v2753_v16 = vmul.f32 %v2750_v50, %v4936_v10 }
0x1b47   : > { %2567 = vrot.lane.b32.xlu1 %v2562_v59, %s5284_s27  ;;  %2565 = vrot.lane.b32.xlu0 %v2561_v30, %s5284_s27  ;;  %v1772_v59 = vadd.f32 %v4699_v42, %v1751_v51 }
0x1b48   : > { %v2771_v62 = vpop.permute.xlu0 %2770  ;;  %v2792_v9 = vpop.permute.xlu1 %2791 }
0x1b49   : > { %v2773_v2 = vmul.f32 %v2771_v62, %v4938_v41  ;;  %v2774_v58 = vmul.f32 %v2771_v62, %v4936_v10  ;;  %v2794_v8 = vmul.f32 %v2792_v9, %v4938_v41  ;;  %v2795_v3 = vmul.f32 %v2792_v9, %v4936_v10 }
0x1b4b   : > { %2590 = vrot.lane.b32.xlu1 %v2585_v54, %s5288_s19  ;;  %2588 = vrot.lane.b32.xlu0 %v2584_v53, %s5288_s19  ;;  %v1793_v54 = vadd.f32 %v4659_v17, %v1772_v59 }
0x1b4c   : > { %v2813_v23 = vpop.permute.xlu0 %2812  ;;  %v2834_v38 = vpop.permute.xlu1 %2833 }
0x1b4d   : > { %v2815_v30 = vmul.f32 %v2813_v23, %v4938_v41  ;;  %v2816_v61 = vmul.f32 %v2813_v23, %v4936_v10  ;;  %v2836_v53 = vmul.f32 %v2834_v38, %v4938_v41  ;;  %v2837_v39 = vmul.f32 %v2834_v38, %v4936_v10 }
0x1b4f   : > { %2611 = vrot.lane.b32.xlu1 %v2606_v1, %s5292_s21  ;;  %2609 = vrot.lane.b32.xlu0 %v2605_v46, %s5292_s21  ;;  %v1814_v1 = vadd.f32 %v4703_v63, %v1793_v54 }
0x1b50   : > { %v2855_v47 = vpop.permute.xlu0 %2854  ;;  %v2876_v36 = vpop.permute.xlu1 %2875 }
0x1b51   : > { %v2857_v46 = vmul.f32 %v2855_v47, %v4938_v41  ;;  %v2858_v42 = vmul.f32 %v2855_v47, %v4936_v10  ;;  %v2879_v17 = vmul.f32 %v2876_v36, %v4936_v10 }
0x1b53   : > { %2632 = vrot.lane.b32.xlu1 %v2627_v32, %s5295_s25  ;;  %2630 = vrot.lane.b32.xlu0 %v2626_v24, %s5295_s25  ;;  %v2878_v24 = vmul.f32 %v2876_v36, %v4938_v41  ;;  %v1835_v32 = vadd.f32 %v4661_v15, %v1814_v1  ;;  %v5425_v1 = vld [vmem:[#allocation26_spill] sm:$0xff] }
0x1b54   : > { %v2897_v12 = vpop.permute.xlu0 %2896  ;;  %v2918_v31 = vpop.permute.xlu1 %2917 }
0x1b55   : > { %v2900_v63 = vmul.f32 %v2897_v12, %v4936_v10  ;;  %v2921_v15 = vmul.f32 %v2918_v31, %v4936_v10 }
0x1b57   : > { %2653 = vrot.lane.b32.xlu1 %v2648_v37, %s5298_s18  ;;  %2651 = vrot.lane.b32.xlu0 %v2647_v25, %s5298_s18  ;;  %v2899_v25 = vmul.f32 %v2897_v12, %v4938_v41  ;;  %v1856_v37 = vadd.f32 %v4709_v5, %v1835_v32  ;;  %v5427_v12 = vld [vmem:[#allocation28_spill] sm:$0xff]  ;;  %s5437_s18 = sld [smem:[#allocation20_spill]] }
0x1b58   : > { %v2939_v28 = vpop.permute.xlu0 %2938  ;;  %v2960_v27 = vpop.permute.xlu1 %2959 }
0x1b59   : > { %v2942_v5 = vmul.f32 %v2939_v28, %v4936_v10 }
0x1b5b   : > { %2674 = vrot.lane.b32.xlu1 %v2669_v49, %s5301_s5  ;;  %2672 = vrot.lane.b32.xlu0 %v2668_v34, %s5301_s5  ;;  %v2920_v34 = vmul.f32 %v2918_v31, %v4938_v41  ;;  %v1877_v49 = vadd.f32 %v4663_v18, %v1856_v37  ;;  %v2963_v18 = vmul.f32 %v2960_v27, %v4936_v10  ;;  %v5428_v37 = vld [vmem:[#allocation27_spill] sm:$0xff]  ;;  %v5429_v31 = vld [vmem:[#allocation30_spill] sm:$0xff] }
0x1b5c   : > { %v2981_v13 = vpop.permute.xlu0 %2980 }
0x1b5d   : > { %p5440_p2 = scmp.ne.s32.totalorder %s5437_s18, 0 }
0x1b5f   : > { %2695 = vrot.lane.b32.xlu1 %v2690_v26, %s5422_s0  ;;  %2693 = vrot.lane.b32.xlu0 %v2689_v6, %s5422_s0  ;;  %v2941_v6 = vmul.f32 %v2939_v28, %v4938_v41  ;;  %v1898_v26 = vadd.f32 %v4712_v22, %v1877_v49  ;;  %v2984_v22 = vmul.f32 %v2981_v13, %v4936_v10  ;;  %v5430_v49 = vld [vmem:[#allocation29_spill] sm:$0xff] }
0x1b63   : > { %2716 = vrot.lane.b32.xlu1 %v2711_v20, %s5423_s2  ;;  %2714 = vrot.lane.b32.xlu0 %v2710_v48, %s5423_s2  ;;  %v2962_v48 = vmul.f32 %v2960_v27, %v4938_v41  ;;  %v1919_v20 = vadd.f32 %v4665_v11, %v1898_v26 }
0x1b65   : > { %v1940_v50 = vadd.f32 %v4714_v21, %v1919_v20  ;;  %v5433_v20 = vld [vmem:[#allocation34_spill] sm:$0xff] }
0x1b67   : > { %2737 = vrot.lane.b32.xlu1 %v2732_v56, %s5301_s5  ;;  %2735 = vrot.lane.b32.xlu0 %v2731_v14, %s5301_s5  ;;  %v3002_v14 = vpop.permute.xlu1 %3001  ;;  %v2983_v56 = vmul.f32 %v2981_v13, %v4938_v41  ;;  %v1961_v62 = vadd.f32 %v4667_v52, %v1940_v50 }
0x1b68   : > { %v3005_v11 = vmul.f32 %v3002_v14, %v4936_v10 }
0x1b69   : > { %v1982_v21 = vadd.f32 %v4716_v44, %v1961_v62 }
0x1b6b   : > { %2758 = vrot.lane.b32.xlu1 %v2753_v16, %s5422_s0  ;;  %2756 = vrot.lane.b32.xlu0 %v2752_v43, %s5422_s0  ;;  %v3004_v43 = vmul.f32 %v3002_v14, %v4938_v41 }
0x1b6f   : > { %2779 = vrot.lane.b32.xlu1 %v2774_v58, %s5423_s2  ;;  %2777 = vrot.lane.b32.xlu0 %v2773_v2, %s5423_s2 }
0x1b73   : > { %2800 = vrot.lane.b32.xlu1 %v2795_v3, %s5316_s13  ;;  %2798 = vrot.lane.b32.xlu0 %v2794_v8, %s5316_s13  ;;  %v2003_v8 = vadd.f32 %v4669_v33, %v1982_v21  ;;  %s3463_s13 = sshll.u32 %s3566_s8, 4  ;;  %s3464_s13 = int_to_ptr.vmem [resolvable:$false] %s3463_s13 }
0x1b74   : > { %s3465_s24 = scalar_lea.vmem %s3464_s13, 512 }
0x1b75   : > { %v2024_v10 = vadd.f32 %v4718_v57, %v2003_v8 }
0x1b77   : > { %2821 = vrot.lane.b32.xlu1 %v2816_v61, %s5319_s22  ;;  %2819 = vrot.lane.b32.xlu0 %v2815_v30, %s5319_s22  ;;  %v2045_v52 = vadd.f32 %v4671_v29, %v2024_v10 }
0x1b79   : > { %v2066_v59 = vadd.f32 %v4720_v4, %v2045_v52 }
0x1b7b   : > { %2842 = vrot.lane.b32.xlu1 %v2837_v39, %s5260_s26  ;;  %2840 = vrot.lane.b32.xlu0 %v2836_v53, %s5260_s26  ;;  %v2087_v44 = vadd.f32 %v4673_v7, %v2066_v59 }
0x1b7d   : > { %v2108_v33 = vadd.f32 %v4722_v45, %v2087_v44 }
0x1b7f   : > { %2863 = vrot.lane.b32.xlu1 %v2858_v42, %s5324_s4  ;;  %2861 = vrot.lane.b32.xlu0 %v2857_v46, %s5324_s4  ;;  %v5424_v42 = vld [vmem:[#allocation24_spill] sm:$0xff] }
0x1b80   : > { %v2129_v57 = vadd.f32 %v5424_v42, %v2108_v33 }
0x1b82   : > { %v2152_v36 = vadd.f32 %v5425_v1, %v2129_v57 }
0x1b83   : > { %2884 = vrot.lane.b32.xlu1 %v2879_v17, %s5319_s22  ;;  %2882 = vrot.lane.b32.xlu0 %v2878_v24, %s5319_s22  ;;  %v5426_v17 = vld [vmem:[#allocation25_spill] sm:$0xff] }
0x1b84   : > { %v2173_v32 = vadd.f32 %v5426_v17, %v2152_v36 }
0x1b86   : > { %v2194_v4 = vadd.f32 %v5427_v12, %v2173_v32 }
0x1b87   : > { %2905 = vrot.lane.b32.xlu1 %v2900_v63, %s5260_s26  ;;  %2903 = vrot.lane.b32.xlu0 %v2899_v25, %s5260_s26 }
0x1b88   : > { %v2215_v7 = vadd.f32 %v5428_v37, %v2194_v4 }
0x1b8b   : > { %2926 = vrot.lane.b32.xlu1 %v2921_v15, %s5324_s4  ;;  %2924 = vrot.lane.b32.xlu0 %v2920_v34, %s5324_s4  ;;  %v2236_v34 = vadd.f32 %v5429_v31, %v2215_v7  ;;  %s5436_s4 = sld [smem:[#allocation22_spill]] }
0x1b8d   : > { %v2257_v28 = vadd.f32 %v5430_v49, %v2236_v34 }
0x1b8f   : > { %2947 = vrot.lane.b32.xlu1 %v2942_v5, %s5409_s28  ;;  %2945 = vrot.lane.b32.xlu0 %v2941_v6, %s5409_s28  ;;  %v5431_v6 = vld [vmem:[#allocation32_spill] sm:$0xff] }
0x1b90   : > { %v2278_v5 = vadd.f32 %v5431_v6, %v2257_v28 }
0x1b91   : > { %s5438_s19 = sshll.u32 %s5436_s4, 4 }
0x1b92   : > { %s271_s20 = scalar_lea.vmem [#allocation9], %s5438_s19 }
0x1b93   : > { %2968 = vrot.lane.b32.xlu1 %v2963_v18, %s5410_s10  ;;  %2966 = vrot.lane.b32.xlu0 %v2962_v48, %s5410_s10  ;;  %v5432_v48 = vld [vmem:[#allocation31_spill] sm:$0xff]  ;;  %s3037_s21 = sshll.u32 %s271_s20, 4  ;;  %s5069_s21 = int_to_ptr.vmem [resolvable:$true] %s3037_s21 }
0x1b94   : > { %v2299_v18 = vadd.f32 %v5432_v48, %v2278_v5  ;;  %s3459_s30 = scalar_lea.vmem %s5069_s21, 256  ;;  %p3466_p13 = scmp.lt.s32.totalorder %s5069_s21, %s3464_s13 }
0x1b95   : > { %p3460_p5 = scmp.ne.s32.totalorder %s5069_s21, %s3459_s30  ;;  %p3467_p0 = scmp.lt.s32.totalorder %s3465_s24, %s3459_s30 }
0x1b96   : > { %v2320_v13 = vadd.f32 %v5433_v20, %v2299_v18 }
0x1b97   : > { %2989 = vrot.lane.b32.xlu1 %v2984_v22, %s5280_s1  ;;  %2987 = vrot.lane.b32.xlu0 %v2983_v56, %s5280_s1  ;;  %s5434_s1 = sld [smem:[#allocation17_spill]]  ;;  %p3461_p7 = pnand %p3460_p5, %p5440_p2 }
0x1b98   : > { %v2341_v22 = vadd.f32 %v4855_v40, %v2320_v13  ;;  %p3468_p10 = por %p3467_p0, %p3466_p13 }
0x1b99   : > { %v2400_v16 = vpop.permute.xlu1 %2399  ;;  %v2398_v0 = vpop.permute.xlu0 %2397  ;;  %p3462_p12 = pneg %p3461_p7 }
0x1b9a   : > { %v2362_v50 = vadd.f32 %v4893_v60, %v2341_v22  ;;  %v2403_v8 = vadd.f32 %v2398_v0, %v4898_v55 }
0x1b9b   : > { %3010 = vrot.lane.b32.xlu1 %v3005_v11, %s5284_s27  ;;  %3008 = vrot.lane.b32.xlu0 %v3004_v43, %s5284_s27  ;;  %s3024_s27 = scalar_lea.sflag [#allocation5], %s5436_s4  ;;  %p3469_p3 = pnand %p3468_p10, %p3462_p12 }
0x1b9c   : > { %v2383_v62 = vadd.f32 %v4895_v19, %v2362_v50 }
0x1b9d   : > { %v2421_v2 = vpop.permute.xlu1 %2420  ;;  %v2419_v58 = vpop.permute.xlu0 %2418  ;;  %s3276_s5 = sshll.u32 %s5434_s1, 8 }
0x1b9e   : > { %v2404_v21 = vadd.f32 %v2400_v16, %v2383_v62  ;;  %v2424_v44 = vadd.f32 %v2419_v58, %v2403_v8  ;;  %s5067_s23 = scalar_lea.hbm %s5439_s15, %s3276_s5 }
0x1ba0   : > { %v2425_v59 = vadd.f32 %v2421_v2, %v2404_v21 }
0x1ba1   : > { %v2442_v35 = vpop.permute.xlu1 %2441  ;;  %v2440_v9 = vpop.permute.xlu0 %2439 }
0x1ba2   : > { %v2446_v33 = vadd.f32 %v2442_v35, %v2425_v59  ;;  %v2445_v42 = vadd.f32 %v2440_v9, %v2424_v44 }
0x1ba5   : > { %v2463_v3 = vpop.permute.xlu1 %2462  ;;  %v2461_v41 = vpop.permute.xlu0 %2460 }
0x1ba6   : > { %v2467_v36 = vadd.f32 %v2463_v3, %v2446_v33  ;;  %v2466_v17 = vadd.f32 %v2461_v41, %v2445_v42 }
0x1ba9   : > { %v2484_v51 = vpop.permute.xlu1 %2483  ;;  %v2482_v23 = vpop.permute.xlu0 %2481 }
0x1baa   : > { %v2488_v40 = vadd.f32 %v2484_v51, %v2467_v36  ;;  %v2487_v32 = vadd.f32 %v2482_v23, %v2466_v17 }
0x1bad   : > { %v2505_v30 = vpop.permute.xlu1 %2504  ;;  %v2503_v61 = vpop.permute.xlu0 %2502 }
0x1bae   : > { %v2509_v4 = vadd.f32 %v2505_v30, %v2488_v40  ;;  %v2508_v37 = vadd.f32 %v2503_v61, %v2487_v32 }
0x1bb1   : > { %v2526_v38 = vpop.permute.xlu1 %2525  ;;  %v2524_v53 = vpop.permute.xlu0 %2523 }
0x1bb2   : > { %v2530_v19 = vadd.f32 %v2526_v38, %v2509_v4  ;;  %v2529_v16 = vadd.f32 %v2524_v53, %v2508_v37 }
0x1bb5   : > { %v2547_v39 = vpop.permute.xlu1 %2546  ;;  %v2545_v54 = vpop.permute.xlu0 %2544 }
0x1bb6   : > { %v2551_v0 = vadd.f32 %v2547_v39, %v2530_v19  ;;  %v2550_v31 = vadd.f32 %v2545_v54, %v2529_v16 }
0x1bb9   : > { %v2568_v47 = vpop.permute.xlu1 %2567  ;;  %v2566_v46 = vpop.permute.xlu0 %2565 }
0x1bba   : > { %v2572_v2 = vadd.f32 %v2568_v47, %v2551_v0  ;;  %v2571_v58 = vadd.f32 %v2566_v46, %v2550_v31  ;;  %v3017_v0 = vld [vmem:[%s5435_s3 + $0x8] sm:$0xff] }
0x1bbd   : > { %v2591_v24 = vpop.permute.xlu1 %2590  ;;  %v2589_v29 = vpop.permute.xlu0 %2588 }
0x1bbe   : > { %v2595_v34 = vadd.f32 %v2591_v24, %v2572_v2  ;;  %v2594_v49 = vadd.f32 %v2589_v29, %v2571_v58  ;;  %v3016_v2 = vld [vmem:[%s5435_s3] sm:$0xff] }
0x1bc1   : > { %v2612_v25 = vpop.permute.xlu1 %2611  ;;  %v2610_v63 = vpop.permute.xlu0 %2609 }
0x1bc2   : > { %v2616_v3 = vadd.f32 %v2612_v25, %v2595_v34  ;;  %v2615_v41 = vadd.f32 %v2610_v63, %v2594_v49 }
0x1bc5   : > { %v2633_v15 = vpop.permute.xlu1 %2632  ;;  %v2631_v45 = vpop.permute.xlu0 %2630 }
0x1bc6   : > { %v2637_v28 = vadd.f32 %v2633_v15, %v2616_v3  ;;  %v2636_v6 = vadd.f32 %v2631_v45, %v2615_v41 }
0x1bc9   : > { %v2654_v26 = vpop.permute.xlu1 %2653  ;;  %v2652_v27 = vpop.permute.xlu0 %2651 }
0x1bca   : > { %v2658_v30 = vadd.f32 %v2654_v26, %v2637_v28  ;;  %v2657_v61 = vadd.f32 %v2652_v27, %v2636_v6 }
0x1bcd   : > { %v2675_v14 = vpop.permute.xlu1 %2674  ;;  %v2673_v56 = vpop.permute.xlu0 %2672 }
0x1bce   : > { %v2679_v5 = vadd.f32 %v2675_v14, %v2658_v30  ;;  %v2678_v48 = vadd.f32 %v2673_v56, %v2657_v61 }
0x1bd1   : > { %v2696_v43 = vpop.permute.xlu1 %2695  ;;  %v2694_v11 = vpop.permute.xlu0 %2693 }
0x1bd2   : > { %v2700_v39 = vadd.f32 %v2696_v43, %v2679_v5  ;;  %v2699_v54 = vadd.f32 %v2694_v11, %v2678_v48 }
0x1bd5   : > { %v2717_v10 = vpop.permute.xlu1 %2716  ;;  %v2715_v52 = vpop.permute.xlu0 %2714 }
0x1bd6   : > { %v2721_v18 = vadd.f32 %v2717_v10, %v2700_v39  ;;  %v2720_v20 = vadd.f32 %v2715_v52, %v2699_v54 }
0x1bd9   : > { %v2738_v57 = vpop.permute.xlu1 %2737  ;;  %v2736_v1 = vpop.permute.xlu0 %2735 }
0x1bda   : > { %v2742_v24 = vadd.f32 %v2738_v57, %v2721_v18  ;;  %v2741_v29 = vadd.f32 %v2736_v1, %v2720_v20 }
0x1bdd   : > { %v2759_v60 = vpop.permute.xlu1 %2758  ;;  %v2757_v12 = vpop.permute.xlu0 %2756 }
0x1bde   : > { %v2763_v13 = vadd.f32 %v2759_v60, %v2742_v24  ;;  %v2762_v22 = vadd.f32 %v2757_v12, %v2741_v29 }
0x1be1   : > { %v2780_v7 = vpop.permute.xlu1 %2779  ;;  %v2778_v55 = vpop.permute.xlu0 %2777 }
0x1be2   : > { %v2784_v15 = vadd.f32 %v2780_v7, %v2763_v13  ;;  %v2783_v45 = vadd.f32 %v2778_v55, %v2762_v22 }
0x1be5   : > { %v2801_v35 = vpop.permute.xlu1 %2800  ;;  %v2799_v9 = vpop.permute.xlu0 %2798 }
0x1be6   : > { %v2805_v50 = vadd.f32 %v2801_v35, %v2784_v15  ;;  %v2804_v62 = vadd.f32 %v2799_v9, %v2783_v45 }
0x1be9   : > { %v2822_v51 = vpop.permute.xlu1 %2821  ;;  %v2820_v23 = vpop.permute.xlu0 %2819 }
0x1bea   : > { %v2826_v14 = vadd.f32 %v2822_v51, %v2805_v50  ;;  %v2825_v56 = vadd.f32 %v2820_v23, %v2804_v62 }
0x1bed   : > { %v2843_v38 = vpop.permute.xlu1 %2842  ;;  %v2841_v53 = vpop.permute.xlu0 %2840 }
0x1bee   : > { %v2847_v21 = vadd.f32 %v2843_v38, %v2826_v14  ;;  %v2846_v8 = vadd.f32 %v2841_v53, %v2825_v56 }
0x1bf1   : > { %v2864_v47 = vpop.permute.xlu1 %2863  ;;  %v2862_v46 = vpop.permute.xlu0 %2861 }
0x1bf2   : > { %v2868_v10 = vadd.f32 %v2864_v47, %v2847_v21  ;;  %v2867_v52 = vadd.f32 %v2862_v46, %v2846_v8 }
0x1bf5   : > { %v2885_v25 = vpop.permute.xlu1 %2884  ;;  %v2883_v63 = vpop.permute.xlu0 %2882 }
0x1bf6   : > { %v2889_v33 = vadd.f32 %v2885_v25, %v2868_v10  ;;  %v2888_v42 = vadd.f32 %v2883_v63, %v2867_v52 }
0x1bf9   : > { %v2906_v26 = vpop.permute.xlu1 %2905  ;;  %v2904_v27 = vpop.permute.xlu0 %2903 }
0x1bfa   : > { %v2910_v57 = vadd.f32 %v2906_v26, %v2889_v33  ;;  %v2909_v1 = vadd.f32 %v2904_v27, %v2888_v42 }
0x1bfd   : > { %v2927_v43 = vpop.permute.xlu1 %2926  ;;  %v2925_v11 = vpop.permute.xlu0 %2924 }
0x1bfe   : > { %v2931_v40 = vadd.f32 %v2927_v43, %v2910_v57  ;;  %v2930_v32 = vadd.f32 %v2925_v11, %v2909_v1 }
0x1c01   : > { %v2948_v59 = vpop.permute.xlu1 %2947  ;;  %v2946_v44 = vpop.permute.xlu0 %2945 }
0x1c02   : > { %v2952_v60 = vadd.f32 %v2948_v59, %v2931_v40  ;;  %v2951_v12 = vadd.f32 %v2946_v44, %v2930_v32 }
0x1c05   : > { %v2969_v36 = vpop.permute.xlu1 %2968  ;;  %v2967_v17 = vpop.permute.xlu0 %2966 }
0x1c06   : > { %v2973_v19 = vadd.f32 %v2969_v36, %v2952_v60  ;;  %v2972_v16 = vadd.f32 %v2967_v17, %v2951_v12 }
0x1c09   : > { %v2990_v4 = vpop.permute.xlu1 %2989  ;;  %v2988_v37 = vpop.permute.xlu0 %2987 }
0x1c0a   : > { %v2994_v7 = vadd.f32 %v2990_v4, %v2973_v19  ;;  %v2993_v55 = vadd.f32 %v2988_v37, %v2972_v16 }
0x1c0d   : > { %v3011_v31 = vpop.permute.xlu1 %3010  ;;  %v3009_v58 = vpop.permute.xlu0 %3008 }
0x1c0e   : > { %v3015_v35 = vadd.f32 %v3011_v31, %v2994_v7  ;;  %v3014_v9 = vadd.f32 %v3009_v58, %v2993_v55 }
0x1c10   : > { %v3019_v34 = vadd.f32 %v3017_v0, %v3015_v35  ;;  %v3018_v49 = vadd.f32 %v3016_v2, %v3014_v9 }
0x1c12   : > { %3022 = vst.msk [vmem:[%s271_s20 + $0x8] sm:$0xff] %vm3020_vm10, %v3019_v34  ;;  %3021 = vst.msk [vmem:[%s271_s20] sm:$0xff] %vm3020_vm10, %v3018_v49 }
0x1c13   : > { %3472 = shalt.err (!%p3469_p3)
}
0x1c14   : > { %s3473_s26 = scalar_lea.hbm %s5067_s23, 256  ;;  %s3477_s14 = scalar_lea.hbm %s5439_s15, 512 }
0x1c15   : > { %p3474_p11 = scmp.ne.s32.totalorder %s5067_s23, %s3473_s26  ;;  %p3478_p4 = scmp.lt.s32.totalorder %s5067_s23, %s5439_s15 }
0x1c16   : > { %p3479_p6 = scmp.lt.s32.totalorder %s3477_s14, %s3473_s26 }
0x1c17   : > { %p3475_p9 = pnand %p3474_p11, %p5440_p2 }
0x1c18   : > { %p3480_p8 = por %p3479_p6, %p3478_p4 }
0x1c19   : > { %p3476_p1 = pneg %p3475_p9 }
0x1c1b   : > { %p3481_p5 = pnand %p3480_p8, %p3476_p1 }
0x1c1d   : > { %3484 = shalt.err (!%p3481_p5)
}
0x1c1e   : > { %s3567_s11 = smov 128  }
0x1c1f   : > { %3287 = dma.vmem_to_hbm [thread:$0]  (%p5440_p2), %s5069_s21, 256, %s5067_s23, %s3024_s27, %s3567_s11, %s3567_s11, %s5251_s29  }
0x1c20 PF: > { %s5441_s17 = sld [smem:[#allocation13_spill]] }
0x1c21   : > { %s5442_s16 = sld [smem:[#allocation18_spill]] }
0x1c22   : > { %s5443_s28 = sld [smem:[#allocation16_spill]] }
0x1c26   : > { %s3052_s10 = sand.u32 1, %s5441_s17  }
0x1c27   : > { %p5444_p7 = scmp.ne.s32.totalorder %s5442_s16, 0  ;;  %s3053_s0 = scalar_lea.sflag [#allocation5], %s3052_s10 }
0x1c28   : > { %p5445_p12 = scmp.ge.s32.totalorder %s5443_s28, 2 }
0x1c2a   : > { %p3301_p13 = pnand %p5445_p12, %p5444_p7 }
0x1c2c   : > { %p3302_p0 = pneg %p3301_p13 }
0x1c2e   : > { %3510 = dma.done.wait (%p3302_p0), %s3053_s0, 256  }
0x1c2f   : > { %3512 = vsyncadd (%p3302_p0), %s3053_s0, 4294967040  ;;  %s5446_s21 = sld [smem:[#allocation19_spill]] }
0x1c30   : > { %s5447_s18 = sld [smem:[#allocation14_spill]] }
0x1c31   : > { %s5448_s19 = sld [smem:[#allocation15_spill]] }
0x1c32   : > { %s5449_s20 = sld [smem:[#allocation21_spill]] }
0x1c35   : > { %p19_p10 = scmp.ge.s32.totalorder %s5446_s21, 4  }
0x1c37   :  { %21 = sbr.rel (!%p19_p10) target bundleno = 13 (0xd), region = 93 }
0x1c3c   :  { %3058 = vsyncpa [#allocation4], 1 }
0x1c3d   :  { %3060 = vsyncpa [#allocation4 + $0x1], 1 }
0x1c3e   :  { %3061 = vsyncpa [#allocation7], 1 }
0x1c3f   :  { %3062 = vsyncpa [#allocation5], 1 }
0x1c40   :  { %3064 = vsyncpa [#allocation5 + $0x1], 1 }

</bundles_post_ra>
